<compile_context>
chip_gen: v6e
topology: v6e:2x2x1
jax: 0.10.0
libtpu: 0.0.40
codegen_flags: <defaults>
</compile_context>

<pallas_src>
import math
from functools import partial
from types import SimpleNamespace

import numpy as np
import jax
import jax.numpy as jnp
from jax import lax
from jax.experimental import pallas as pl
from jax.experimental.pallas import tpu as pltpu


_VMEM_LIMIT = 32 * 1024 * 1024   # explicit scoped-VMEM limit (v5e default is 16 MiB)


# --------------------- shared in-kernel helpers ------------------------------

def _conv_image(xpad_ref, col_ref, wmat, *, H, W, Cin, kh, kw):
    """One kh x kw conv of a single image as a single MXU matmul.

    xpad_ref : (Cin, H+2ph, W+2pw) zero-bordered scratch; interior holds the image.
    col_ref  : (kh*kw*Cin + 1, H*W) im2col scratch; last row is a constant ones
               row so the bias is folded into the weight matrix.
    wmat     : (Cout, kh*kw*Cin + 1) weight (+ bias column) value.
    returns  : (Cout, H*W) float32.
    """
    HW = H * W
    for dy in range(kh):
        for dx in range(kw):
            tap = dy * kw + dx
            col_ref[tap * Cin:(tap + 1) * Cin, :] = (
                xpad_ref[:, dy:dy + H, dx:dx + W].reshape(Cin, HW))
    return jnp.dot(wmat, col_ref[...], preferred_element_type=jnp.float32)


def _correlate(fpad, filt, *, outH, outW, fH, fW):
    """Single-sequence correlation, lane-dense accumulation.

    fpad : (C, outH+fH-1, outW+fW-1) zero-bordered feature value.
    filt : (C, fH*fW) filter value.
    returns (1, outH*outW) float32 -- spatial P on lanes, C reduced on sublanes.
    """
    C = fpad.shape[0]
    P = outH * outW
    acc = jnp.zeros((C, P), jnp.float32)
    for dy in range(fH):
        for dx in range(fW):
            tap = dy * fW + dx
            patch = fpad[:, dy:dy + outH, dx:dx + outW].reshape(C, P)
            acc = acc + patch * filt[:, tap:tap + 1]
    return jnp.sum(acc, axis=0, keepdims=True)


def _fold_conv_weight(weight, bias):
    """(Cout, Cin, kh, kw) + (Cout,) -> (Cout, kh*kw*Cin + 1), tap-major columns,
    bias folded as the last column (matches the im2col row order above)."""
    Cout, Cin, kh, kw = weight.shape
    wmat = jnp.transpose(weight, (0, 2, 3, 1)).reshape(Cout, kh * kw * Cin)
    return jnp.concatenate([wmat, bias[:, None]], axis=1)


# ---------------- Pallas kernel 1: feature-extractor conv (NCHW) -------------

def _conv_feat_kernel(x_ref, w_ref, o_ref, xpad_ref, col_ref, *,
                      H, W, Cin, kh, kw, n_blk):
    # x_ref : (n_blk, Cin, H, W)          o_ref : (n_blk, Cout, H*W)
    # w_ref : (Cout, kh*kw*Cin + 1)
    ph, pw = kh // 2, kw // 2
    K = kh * kw * Cin
    # Re-zero the padded scratch every step (cheap, and keeps the border correct
    # on every core when the grid axis is split across TensorCores).
    xpad_ref[...] = jnp.zeros_like(xpad_ref)
    col_ref[K:K + 1, :] = jnp.ones((1, H * W), col_ref.dtype)   # folded-bias row
    wmat = w_ref[...]
    for n in range(n_blk):
        xpad_ref[:, ph:ph + H, pw:pw + W] = x_ref[n]
        o_ref[n] = _conv_image(xpad_ref, col_ref, wmat, H=H, W=W, Cin=Cin, kh=kh, kw=kw)


def feature_extractor_conv(x, weight, bias):
    """Conv2d(Cin, Cout, 3, stride=1, padding=1) on NCHW input, NCHW output."""
    N, Cin, H, W = x.shape
    Cout, Cin2, kh, kw = weight.shape
    assert Cin == Cin2 and kh % 2 == 1 and kw % 2 == 1
    ph, pw = kh // 2, kw // 2
    K = kh * kw * Cin
    wmat = _fold_conv_weight(weight, bias)

    n_blk = 2 if (N % 2 == 0 and N >= 4) else 1   # amortize per-step overhead,
    grid = (N // n_blk,)                          # keep >= 2 steps for megacore
    out = pl.pallas_call(
        partial(_conv_feat_kernel, H=H, W=W, Cin=Cin, kh=kh, kw=kw, n_blk=n_blk),
        out_shape=jax.ShapeDtypeStruct((N, Cout, H * W), jnp.float32),
        grid=grid,
        in_specs=[
            pl.BlockSpec((n_blk, Cin, H, W), lambda i: (i, 0, 0, 0)),
            pl.BlockSpec((Cout, K + 1), lambda i: (0, 0)),
        ],
        out_specs=pl.BlockSpec((n_blk, Cout, H * W), lambda i: (i, 0, 0)),
        scratch_shapes=[pltpu.VMEM((Cin, H + 2 * ph, W + 2 * pw), x.dtype),
                        pltpu.VMEM((K + 1, H * W), x.dtype)],
        compiler_params=pltpu.CompilerParams(
            dimension_semantics=("parallel",),
            vmem_limit_bytes=_VMEM_LIMIT),
    )(x, wmat)
    return out.reshape(N, Cout, H, W)


# ------------ Pallas kernel 2: fused conv + apply_filter (test path) ---------

def _conv_classify_kernel(x_ref, w_ref, f_ref, o_ref, xpad_ref, col_ref, fpad_ref, *,
                          H, W, Cin, kh, kw, Cout, fH, fW, outH, outW, s_blk):
    # x_ref : (1, s_blk, Cin, H, W)       f_ref : (s_blk, Cout, fH*fW)
    # w_ref : (Cout, kh*kw*Cin + 1)       o_ref : (1, s_blk, outH*outW)
    ph, pw = kh // 2, kw // 2
    pf = fW // 2
    K = kh * kw * Cin
    xpad_ref[...] = jnp.zeros_like(xpad_ref)
    fpad_ref[...] = jnp.zeros_like(fpad_ref)
    col_ref[K:K + 1, :] = jnp.ones((1, H * W), col_ref.dtype)
    wmat = w_ref[...]
    for s in range(s_blk):
        xpad_ref[:, ph:ph + H, pw:pw + W] = x_ref[0, s]
        feat = _conv_image(xpad_ref, col_ref, wmat, H=H, W=W, Cin=Cin, kh=kh, kw=kw)
        fpad_ref[:, pf:pf + H, pf:pf + W] = feat.reshape(Cout, H, W)
        o_ref[0, s:s + 1, :] = _correlate(fpad_ref[...], f_ref[s],
                                          outH=outH, outW=outW, fH=fH, fW=fW)


def conv_and_classify(test_feat, weights, conv_weight, conv_bias):
    """Fused feature-extractor conv + grouped correlation for the test path.

    test_feat : (n, S, Cin, H, W) raw backbone features (NCHW).
    weights   : (S, Cout, fH, fW) per-sequence filters.
    returns   : (n, S, outH, outW) == apply_filter(conv(test_feat), weights)."""
    n, S, Cin, H, W = test_feat.shape
    S2, Cout, fH, fW = weights.shape
    Cout2, Cin2, kh, kw = conv_weight.shape
    assert S == S2 and Cin == Cin2 and Cout == Cout2
    assert fH == fW and kh % 2 == 1 and kw % 2 == 1
    ph, pw = kh // 2, kw // 2
    pf = fW // 2
    outH = H + 2 * pf - fH + 1
    outW = W + 2 * pf - fW + 1
    P = outH * outW
    K = kh * kw * Cin

    wmat = _fold_conv_weight(conv_weight, conv_bias)
    wflat = weights.reshape(S, Cout, fH * fW)

    s_blk = 8 if S % 8 == 0 else S            # bound per-step VMEM at real S,
    grid = (n, S // s_blk)                    # and give megacore parallel steps

    scores = pl.pallas_call(
        partial(_conv_classify_kernel, H=H, W=W, Cin=Cin, kh=kh, kw=kw, Cout=Cout,
                fH=fH, fW=fW, outH=outH, outW=outW, s_blk=s_blk),
        out_shape=jax.ShapeDtypeStruct((n, S, P), jnp.float32),
        grid=grid,
        in_specs=[
            pl.BlockSpec((1, s_blk, Cin, H, W), lambda i, j: (i, j, 0, 0, 0)),
            pl.BlockSpec((Cout, K + 1), lambda i, j: (0, 0)),
            pl.BlockSpec((s_blk, Cout, fH * fW), lambda i, j: (j, 0, 0)),
        ],
        out_specs=pl.BlockSpec((1, s_blk, P), lambda i, j: (i, j, 0)),
        scratch_shapes=[pltpu.VMEM((Cin, H + 2 * ph, W + 2 * pw), test_feat.dtype),
                        pltpu.VMEM((K + 1, H * W), test_feat.dtype),
                        pltpu.VMEM((Cout, H + 2 * pf, W + 2 * pf), jnp.float32)],
        compiler_params=pltpu.CompilerParams(
            dimension_semantics=("parallel", "parallel"),
            vmem_limit_bytes=_VMEM_LIMIT),
    )(test_feat, wmat, wflat)
    return scores.reshape(n, S, outH, outW)


# ---------------- Pallas kernel 3: standalone apply_filter -------------------

def _apply_filter_kernel(feat_ref, f_ref, o_ref, fpad_ref, *,
                         H, W, fH, fW, outH, outW, s_blk):
    # feat_ref : (1, s_blk, C, H, W)      f_ref : (s_blk, C, fH*fW)
    # o_ref    : (1, s_blk, outH*outW)
    pf = fW // 2
    fpad_ref[...] = jnp.zeros_like(fpad_ref)
    for s in range(s_blk):
        fpad_ref[:, pf:pf + H, pf:pf + W] = feat_ref[0, s]
        o_ref[0, s:s + 1, :] = _correlate(fpad_ref[...], f_ref[s],
                                          outH=outH, outW=outW, fH=fH, fW=fW)


def apply_filter(feat, weights):
    """filter_layer.apply_filter equivalent (NCHW).
    feat    : (n_images, S, C, H, W)
    weights : (S, C, fH, fW)
    returns : (n_images, S, outH, outW), matching
              F.conv2d(feat.view(n, S*C, H, W), weights, padding=fW//2, groups=S)."""
    n, S, C, H, W = feat.shape
    S2, C2, fH, fW = weights.shape
    assert S == S2 and C == C2 and fH == fW
    pf = fW // 2
    outH = H + 2 * pf - fH + 1
    outW = W + 2 * pf - fW + 1
    P = outH * outW
    wflat = weights.reshape(S, C, fH * fW)
    s_blk = 8 if S % 8 == 0 else S
    grid = (n, S // s_blk)
    scores = pl.pallas_call(
        partial(_apply_filter_kernel, H=H, W=W, fH=fH, fW=fW,
                outH=outH, outW=outW, s_blk=s_blk),
        out_shape=jax.ShapeDtypeStruct((n, S, P), jnp.float32),
        grid=grid,
        in_specs=[
            pl.BlockSpec((1, s_blk, C, H, W), lambda i, j: (i, j, 0, 0, 0)),
            pl.BlockSpec((s_blk, C, fH * fW), lambda i, j: (j, 0, 0)),
        ],
        out_specs=pl.BlockSpec((1, s_blk, P), lambda i, j: (i, j, 0)),
        scratch_shapes=[pltpu.VMEM((C, H + 2 * pf, W + 2 * pf), feat.dtype)],
        compiler_params=pltpu.CompilerParams(
            dimension_semantics=("parallel", "parallel"),
            vmem_limit_bytes=_VMEM_LIMIT),
    )(feat, wflat)
    return scores.reshape(n, S, outH, outW)


# ---------------- Glue: synthetic filter initializer --------------------------

def filter_initializer(feat, bb, filter_size, feature_stride=16.0):
    # TODO(synk): the real DiMP FilterInitializerLinear / steepest-descent optimizer
    # are injected modules (PrRoIPool2D based); replaced by a deterministic
    # center-crop-and-average initializer here.
    # feat: (n_im, S, C, H, W) NCHW.
    n_im, S, C, H, W = feat.shape
    cx = (bb[..., 0] + 0.5 * bb[..., 2]) / feature_stride
    cy = (bb[..., 1] + 0.5 * bb[..., 3]) / feature_stride
    x0 = jnp.clip(jnp.round(cx - filter_size / 2).astype(jnp.int32), 0, W - filter_size)
    y0 = jnp.clip(jnp.round(cy - filter_size / 2).astype(jnp.int32), 0, H - filter_size)

    def crop(f, y, x):
        return lax.dynamic_slice(f, (0, y, x), (C, filter_size, filter_size))

    crops = jax.vmap(jax.vmap(crop))(feat, y0, x0)     # (n_im, S, C, f, f)
    return jnp.mean(crops, axis=0)                     # (S, C, f, f) — PyTorch filter layout


# ---------------- LinearFilter module ----------------------------------------

class LinearFilter:
    def __init__(self, settings, filter_size, conv_weight, conv_bias):
        self.settings = settings
        self.filter_size = filter_size
        self.conv_weight = conv_weight
        self.conv_bias = conv_bias
        self.filter_optimizer = None   # TODO(synk): injected optimizer module omitted.

    def extract_classification_feat(self, feat, num_sequences=None):
        out = feature_extractor_conv(feat, self.conv_weight, self.conv_bias)
        if num_sequences is None:
            return out
        return out.reshape(-1, num_sequences, *out.shape[-3:])

    def get_filter(self, feat, bb, train_depths, test_depths):
        weights = filter_initializer(feat, bb, self.filter_size)
        weights_iter = [weights]
        return weights, weights_iter, None

    def classify(self, weights, feat):
        """Run classifier (filter) on already-extracted features."""
        return apply_filter(feat, weights)

    def classify_fused(self, weights, raw_test_feat):
        """Fused feature extraction + classification (single Pallas pass)."""
        return conv_and_classify(raw_test_feat, weights, self.conv_weight, self.conv_bias)

    def forward(self, train_feat, test_feat, train_bb, train_depths, test_depths):
        assert train_bb.ndim == 3
        num_sequences = train_bb.shape[1]
        if train_feat.ndim == 5:
            train_feat = train_feat.reshape(-1, *train_feat.shape[-3:])
        if test_feat.ndim == 4:
            test_feat = test_feat.reshape(-1, num_sequences, *test_feat.shape[-3:])
        train_feat = self.extract_classification_feat(train_feat, num_sequences)
        filt, filter_iter, losses = self.get_filter(
            train_feat, train_bb, train_depths, test_depths)
        # settings.depthaware_for_classiferonline is False for this synthetic config.
        # TODO(synk): depthaware_classify (bilinear upsample + depth-aware filter) omitted.
        # Test path uses the fused conv+correlation kernel: identical result to
        # extract_classification_feat(test) -> classify(), without the HBM
        # intermediate (the learned filter does not depend on the test features).
        test_scores = [self.classify_fused(f, test_feat) for f in filter_iter]
        return test_scores


# ---------------- Main --------------------------------------------------------

if __name__ == "__main__":
    key = jax.random.PRNGKey(0)
    n_train, n_test, S = 2, 2, 2
    Cin, Cout = 4, 8
    H = W = 16
    filter_size = 3

    k1, k2, k3, k4, k5, k6, k7 = jax.random.split(key, 7)
    train_feat = jax.random.normal(k1, (n_train, S, Cin, H, W), jnp.float32)
    test_feat = jax.random.normal(k2, (n_test, S, Cin, H, W), jnp.float32)
    bb_xy = jax.random.uniform(k3, (n_train, S, 2), minval=32.0, maxval=192.0)
    bb_wh = jax.random.uniform(k4, (n_train, S, 2), minval=32.0, maxval=64.0)
    train_bb = jnp.concatenate([bb_xy, bb_wh], axis=-1)
    train_depths = jax.random.uniform(k6, (n_train * S, 1, H, W), dtype=jnp.float32)
    test_depths = jax.random.uniform(k7, (n_test * S, 1, H, W), dtype=jnp.float32)

    # Conv2d(Cin, Cout, 3) parameters, He-initialized exactly as LinearFilter.__init__
    n_fan = 3 * 3 * Cout
    conv_weight = jax.random.normal(k5, (Cout, Cin, 3, 3), jnp.float32) * math.sqrt(2.0 / n_fan)
    conv_bias = jnp.zeros((Cout,), jnp.float32)

    settings = SimpleNamespace(depthaware_for_classiferonline=False, depthaware_alpha=0.1)
    module = LinearFilter(settings, filter_size, conv_weight, conv_bias)

    # Fused test path (what forward uses).
    scores = module.forward(train_feat, test_feat, train_bb, train_depths, test_depths)
    scores = [jax.block_until_ready(s) for s in scores]

    # Unfused path (standalone conv kernel + standalone apply_filter kernel).
    train_cls = module.extract_classification_feat(train_feat.reshape(-1, Cin, H, W), S)
    test_cls = module.extract_classification_feat(test_feat.reshape(-1, Cin, H, W), S)
    filt, _, _ = module.get_filter(train_cls, train_bb, train_depths, test_depths)
    scores_sep = jax.block_until_ready(module.classify(filt, test_cls))

    # ---- pure-JAX reference check ----
    def ref_conv(x):
        y = lax.conv_general_dilated(
            x, conv_weight, (1, 1), 'SAME',
            dimension_numbers=('NCHW', 'OIHW', 'NCHW'))
        return y + conv_bias[None, :, None, None]

    tr = ref_conv(train_feat.reshape(-1, Cin, H, W)).reshape(n_train, S, Cout, H, W)
    te = ref_conv(test_feat.reshape(-1, Cin, H, W)).reshape(n_test, S, Cout, H, W)
    w_ref = filter_initializer(tr, train_bb, filter_size)           # (S, Cout, f, f)
    pad = filter_size // 2
    outH = H + 2 * pad - filter_size + 1
    outW = W + 2 * pad - filter_size + 1
    tep = jnp.pad(te, ((0, 0), (0, 0), (0, 0), (pad, pad), (pad, pad)))
    ref = jnp.zeros((n_test, S, outH, outW), jnp.float32)
    for dy in range(filter_size):
        for dx in range(filter_size):
            ref = ref + jnp.einsum(
                'nschw,sc->nshw',
                tep[:, :, :, dy:dy + outH, dx:dx + outW],
                w_ref[:, :, dy, dx])

    np.testing.assert_allclose(np.asarray(scores[0]), np.asarray(ref), rtol=1e-4, atol=1e-4)
    np.testing.assert_allclose(np.asarray(scores_sep), np.asarray(ref), rtol=1e-4, atol=1e-4)
    print("KERNEL_OK")
</pallas_src>

<mosaic_0001>
module attributes {stable_mosaic.version = 11 : i64} {
  func.func @_conv_feat_kernel(%arg0: i32, %arg1: memref<2x4x16x16xf32, #tpu.memory_space<vmem>>, %arg2: memref<8x37xf32, #tpu.memory_space<vmem>>, %arg3: memref<2x8x256xf32, #tpu.memory_space<vmem>>, %arg4: memref<4x18x18xf32, #tpu.memory_space<vmem>>, %arg5: memref<37x256xf32, #tpu.memory_space<vmem>>) attributes {dimension_semantics = [#tpu.dimension_semantics<parallel>], iteration_bounds = array<i64: 2>, scalar_prefetch = 0 : i64, scratch_operands = 2 : i64, tpu.core_type = #tpu.core_type<tc>, window_params = [{transform_indices = @transform_0, window_bounds = array<i64: 2, 4, 16, 16>}, {pipeline_mode = #tpu.pipeline_mode<synchronous>, transform_indices = @transform_1, window_bounds = array<i64: 8, 37>}, {transform_indices = @transform_2, window_bounds = array<i64: 2, 8, 256>}]} {
    %cst = arith.constant 0.000000e+00 : f32
    %0 = vector.broadcast %cst : f32 to vector<4x18x18xf32>
    %c0 = arith.constant 0 : index
    %c0_0 = arith.constant 0 : index
    %c0_1 = arith.constant 0 : index
    %1 = vector.load %arg4[%c0, %c0_0, %c0_1] : memref<4x18x18xf32, #tpu.memory_space<vmem>>, vector<4x18x18xf32>
    tpu.vector_store %arg4[%c0, %c0_0, %c0_1], %0 {strides = array<i32>} : memref<4x18x18xf32, #tpu.memory_space<vmem>>, vector<4x18x18xf32>,
    %cst_2 = arith.constant 1.000000e+00 : f32
    %2 = vector.broadcast %cst_2 : f32 to vector<1x256xf32>
    %c36 = arith.constant 36 : index
    %c0_3 = arith.constant 0 : index
    %3 = vector.load %arg5[%c36, %c0_3] : memref<37x256xf32, #tpu.memory_space<vmem>>, vector<1x256xf32>
    tpu.vector_store %arg5[%c36, %c0_3], %2 {strides = array<i32>} : memref<37x256xf32, #tpu.memory_space<vmem>>, vector<1x256xf32>,
    %c0_4 = arith.constant 0 : index
    %c0_5 = arith.constant 0 : index
    %4 = vector.load %arg2[%c0_4, %c0_5] : memref<8x37xf32, #tpu.memory_space<vmem>>, vector<8x37xf32>
    %c0_6 = arith.constant 0 : index
    %c0_7 = arith.constant 0 : index
    %c0_8 = arith.constant 0 : index
    %c0_9 = arith.constant 0 : index
    %5 = vector.load %arg1[%c0_6, %c0_7, %c0_8, %c0_9] : memref<2x4x16x16xf32, #tpu.memory_space<vmem>>, vector<1x4x16x16xf32>
    %6 = vector.shape_cast %5 : vector<1x4x16x16xf32> to vector<4x16x16xf32>
    %c0_10 = arith.constant 0 : index
    %c1 = arith.constant 1 : index
    %c1_11 = arith.constant 1 : index
    %7 = vector.load %arg4[%c0_10, %c1, %c1_11] : memref<4x18x18xf32, #tpu.memory_space<vmem>>, vector<4x16x16xf32>
    tpu.vector_store %arg4[%c0_10, %c1, %c1_11], %6 {strides = array<i32>} : memref<4x18x18xf32, #tpu.memory_space<vmem>>, vector<4x16x16xf32>,
    %c0_12 = arith.constant 0 : index
    %c0_13 = arith.constant 0 : index
    %c0_14 = arith.constant 0 : index
    %8 = vector.load %arg4[%c0_12, %c0_13, %c0_14] : memref<4x18x18xf32, #tpu.memory_space<vmem>>, vector<4x16x16xf32>
    %9 = vector.shape_cast %8 : vector<4x16x16xf32> to vector<4x256xf32>
    %c0_15 = arith.constant 0 : index
    %c0_16 = arith.constant 0 : index
    %10 = vector.load %arg5[%c0_15, %c0_16] : memref<37x256xf32, #tpu.memory_space<vmem>>, vector<4x256xf32>
    tpu.vector_store %arg5[%c0_15, %c0_16], %9 {strides = array<i32>} : memref<37x256xf32, #tpu.memory_space<vmem>>, vector<4x256xf32>,
    %c0_17 = arith.constant 0 : index
    %c0_18 = arith.constant 0 : index
    %c1_19 = arith.constant 1 : index
    %11 = vector.load %arg4[%c0_17, %c0_18, %c1_19] : memref<4x18x18xf32, #tpu.memory_space<vmem>>, vector<4x16x16xf32>
    %12 = vector.shape_cast %11 : vector<4x16x16xf32> to vector<4x256xf32>
    %c4 = arith.constant 4 : index
    %c0_20 = arith.constant 0 : index
    %13 = vector.load %arg5[%c4, %c0_20] : memref<37x256xf32, #tpu.memory_space<vmem>>, vector<4x256xf32>
    tpu.vector_store %arg5[%c4, %c0_20], %12 {strides = array<i32>} : memref<37x256xf32, #tpu.memory_space<vmem>>, vector<4x256xf32>,
    %c0_21 = arith.constant 0 : index
    %c0_22 = arith.constant 0 : index
    %c2 = arith.constant 2 : index
    %14 = vector.load %arg4[%c0_21, %c0_22, %c2] : memref<4x18x18xf32, #tpu.memory_space<vmem>>, vector<4x16x16xf32>
    %15 = vector.shape_cast %14 : vector<4x16x16xf32> to vector<4x256xf32>
    %c8 = arith.constant 8 : index
    %c0_23 = arith.constant 0 : index
    %16 = vector.load %arg5[%c8, %c0_23] : memref<37x256xf32, #tpu.memory_space<vmem>>, vector<4x256xf32>
    tpu.vector_store %arg5[%c8, %c0_23], %15 {strides = array<i32>} : memref<37x256xf32, #tpu.memory_space<vmem>>, vector<4x256xf32>,
    %c0_24 = arith.constant 0 : index
    %c1_25 = arith.constant 1 : index
    %c0_26 = arith.constant 0 : index
    %17 = vector.load %arg4[%c0_24, %c1_25, %c0_26] : memref<4x18x18xf32, #tpu.memory_space<vmem>>, vector<4x16x16xf32>
    %18 = vector.shape_cast %17 : vector<4x16x16xf32> to vector<4x256xf32>
    %c12 = arith.constant 12 : index
    %c0_27 = arith.constant 0 : index
    %19 = vector.load %arg5[%c12, %c0_27] : memref<37x256xf32, #tpu.memory_space<vmem>>, vector<4x256xf32>
    tpu.vector_store %arg5[%c12, %c0_27], %18 {strides = array<i32>} : memref<37x256xf32, #tpu.memory_space<vmem>>, vector<4x256xf32>,
    %c0_28 = arith.constant 0 : index
    %c1_29 = arith.constant 1 : index
    %c1_30 = arith.constant 1 : index
    %20 = vector.load %arg4[%c0_28, %c1_29, %c1_30] : memref<4x18x18xf32, #tpu.memory_space<vmem>>, vector<4x16x16xf32>
    %21 = vector.shape_cast %20 : vector<4x16x16xf32> to vector<4x256xf32>
    %c16 = arith.constant 16 : index
    %c0_31 = arith.constant 0 : index
    %22 = vector.load %arg5[%c16, %c0_31] : memref<37x256xf32, #tpu.memory_space<vmem>>, vector<4x256xf32>
    tpu.vector_store %arg5[%c16, %c0_31], %21 {strides = array<i32>} : memref<37x256xf32, #tpu.memory_space<vmem>>, vector<4x256xf32>,
    %c0_32 = arith.constant 0 : index
    %c1_33 = arith.constant 1 : index
    %c2_34 = arith.constant 2 : index
    %23 = vector.load %arg4[%c0_32, %c1_33, %c2_34] : memref<4x18x18xf32, #tpu.memory_space<vmem>>, vector<4x16x16xf32>
    %24 = vector.shape_cast %23 : vector<4x16x16xf32> to vector<4x256xf32>
    %c20 = arith.constant 20 : index
    %c0_35 = arith.constant 0 : index
    %25 = vector.load %arg5[%c20, %c0_35] : memref<37x256xf32, #tpu.memory_space<vmem>>, vector<4x256xf32>
    tpu.vector_store %arg5[%c20, %c0_35], %24 {strides = array<i32>} : memref<37x256xf32, #tpu.memory_space<vmem>>, vector<4x256xf32>,
    %c0_36 = arith.constant 0 : index
    %c2_37 = arith.constant 2 : index
    %c0_38 = arith.constant 0 : index
    %26 = vector.load %arg4[%c0_36, %c2_37, %c0_38] : memref<4x18x18xf32, #tpu.memory_space<vmem>>, vector<4x16x16xf32>
    %27 = vector.shape_cast %26 : vector<4x16x16xf32> to vector<4x256xf32>
    %c24 = arith.constant 24 : index
    %c0_39 = arith.constant 0 : index
    %28 = vector.load %arg5[%c24, %c0_39] : memref<37x256xf32, #tpu.memory_space<vmem>>, vector<4x256xf32>
    tpu.vector_store %arg5[%c24, %c0_39], %27 {strides = array<i32>} : memref<37x256xf32, #tpu.memory_space<vmem>>, vector<4x256xf32>,
    %c0_40 = arith.constant 0 : index
    %c2_41 = arith.constant 2 : index
    %c1_42 = arith.constant 1 : index
    %29 = vector.load %arg4[%c0_40, %c2_41, %c1_42] : memref<4x18x18xf32, #tpu.memory_space<vmem>>, vector<4x16x16xf32>
    %30 = vector.shape_cast %29 : vector<4x16x16xf32> to vector<4x256xf32>
    %c28 = arith.constant 28 : index
    %c0_43 = arith.constant 0 : index
    %31 = vector.load %arg5[%c28, %c0_43] : memref<37x256xf32, #tpu.memory_space<vmem>>, vector<4x256xf32>
    tpu.vector_store %arg5[%c28, %c0_43], %30 {strides = array<i32>} : memref<37x256xf32, #tpu.memory_space<vmem>>, vector<4x256xf32>,
    %c0_44 = arith.constant 0 : index
    %c2_45 = arith.constant 2 : index
    %c2_46 = arith.constant 2 : index
    %32 = vector.load %arg4[%c0_44, %c2_45, %c2_46] : memref<4x18x18xf32, #tpu.memory_space<vmem>>, vector<4x16x16xf32>
    %33 = vector.shape_cast %32 : vector<4x16x16xf32> to vector<4x256xf32>
    %c32 = arith.constant 32 : index
    %c0_47 = arith.constant 0 : index
    %34 = vector.load %arg5[%c32, %c0_47] : memref<37x256xf32, #tpu.memory_space<vmem>>, vector<4x256xf32>
    tpu.vector_store %arg5[%c32, %c0_47], %33 {strides = array<i32>} : memref<37x256xf32, #tpu.memory_space<vmem>>, vector<4x256xf32>,
    %c0_48 = arith.constant 0 : index
    %c0_49 = arith.constant 0 : index
    %35 = vector.load %arg5[%c0_48, %c0_49] : memref<37x256xf32, #tpu.memory_space<vmem>>, vector<37x256xf32>
    %cst_50 = arith.constant dense<0.000000e+00> : vector<8x256xf32>
    %36 = tpu.matmul %4, %35, %cst_50 {dimension_numbers = #tpu.dot_dimension_numbers<[1], [0], [0], [1], [0, 0, 1, 1], [], []>} : vector<8x37xf32>, vector<37x256xf32>, vector<8x256xf32> -> vector<8x256xf32>
    %c0_51 = arith.constant 0 : index
    %c0_52 = arith.constant 0 : index
    %c0_53 = arith.constant 0 : index
    %37 = vector.load %arg3[%c0_51, %c0_52, %c0_53] : memref<2x8x256xf32, #tpu.memory_space<vmem>>, vector<1x8x256xf32>
    %38 = vector.shape_cast %37 : vector<1x8x256xf32> to vector<8x256xf32>
    %39 = vector.shape_cast %36 : vector<8x256xf32> to vector<1x8x256xf32>
    tpu.vector_store %arg3[%c0_51, %c0_52, %c0_53], %39 {strides = array<i32>} : memref<2x8x256xf32, #tpu.memory_space<vmem>>, vector<1x8x256xf32>,
    %c1_54 = arith.constant 1 : index
    %c0_55 = arith.constant 0 : index
    %c0_56 = arith.constant 0 : index
    %c0_57 = arith.constant 0 : index
    %40 = vector.load %arg1[%c1_54, %c0_55, %c0_56, %c0_57] : memref<2x4x16x16xf32, #tpu.memory_space<vmem>>, vector<1x4x16x16xf32>
    %41 = vector.shape_cast %40 : vector<1x4x16x16xf32> to vector<4x16x16xf32>
    %c0_58 = arith.constant 0 : index
    %c1_59 = arith.constant 1 : index
    %c1_60 = arith.constant 1 : index
    %42 = vector.load %arg4[%c0_58, %c1_59, %c1_60] : memref<4x18x18xf32, #tpu.memory_space<vmem>>, vector<4x16x16xf32>
    tpu.vector_store %arg4[%c0_58, %c1_59, %c1_60], %41 {strides = array<i32>} : memref<4x18x18xf32, #tpu.memory_space<vmem>>, vector<4x16x16xf32>,
    %c0_61 = arith.constant 0 : index
    %c0_62 = arith.constant 0 : index
    %c0_63 = arith.constant 0 : index
    %43 = vector.load %arg4[%c0_61, %c0_62, %c0_63] : memref<4x18x18xf32, #tpu.memory_space<vmem>>, vector<4x16x16xf32>
    %44 = vector.shape_cast %43 : vector<4x16x16xf32> to vector<4x256xf32>
    %c0_64 = arith.constant 0 : index
    %c0_65 = arith.constant 0 : index
    %45 = vector.load %arg5[%c0_64, %c0_65] : memref<37x256xf32, #tpu.memory_space<vmem>>, vector<4x256xf32>
    tpu.vector_store %arg5[%c0_64, %c0_65], %44 {strides = array<i32>} : memref<37x256xf32, #tpu.memory_space<vmem>>, vector<4x256xf32>,
    %c0_66 = arith.constant 0 : index
    %c0_67 = arith.constant 0 : index
    %c1_68 = arith.constant 1 : index
    %46 = vector.load %arg4[%c0_66, %c0_67, %c1_68] : memref<4x18x18xf32, #tpu.memory_space<vmem>>, vector<4x16x16xf32>
    %47 = vector.shape_cast %46 : vector<4x16x16xf32> to vector<4x256xf32>
    %c4_69 = arith.constant 4 : index
    %c0_70 = arith.constant 0 : index
    %48 = vector.load %arg5[%c4_69, %c0_70] : memref<37x256xf32, #tpu.memory_space<vmem>>, vector<4x256xf32>
    tpu.vector_store %arg5[%c4_69, %c0_70], %47 {strides = array<i32>} : memref<37x256xf32, #tpu.memory_space<vmem>>, vector<4x256xf32>,
    %c0_71 = arith.constant 0 : index
    %c0_72 = arith.constant 0 : index
    %c2_73 = arith.constant 2 : index
    %49 = vector.load %arg4[%c0_71, %c0_72, %c2_73] : memref<4x18x18xf32, #tpu.memory_space<vmem>>, vector<4x16x16xf32>
    %50 = vector.shape_cast %49 : vector<4x16x16xf32> to vector<4x256xf32>
    %c8_74 = arith.constant 8 : index
    %c0_75 = arith.constant 0 : index
    %51 = vector.load %arg5[%c8_74, %c0_75] : memref<37x256xf32, #tpu.memory_space<vmem>>, vector<4x256xf32>
    tpu.vector_store %arg5[%c8_74, %c0_75], %50 {strides = array<i32>} : memref<37x256xf32, #tpu.memory_space<vmem>>, vector<4x256xf32>,
    %c0_76 = arith.constant 0 : index
    %c1_77 = arith.constant 1 : index
    %c0_78 = arith.constant 0 : index
    %52 = vector.load %arg4[%c0_76, %c1_77, %c0_78] : memref<4x18x18xf32, #tpu.memory_space<vmem>>, vector<4x16x16xf32>
    %53 = vector.shape_cast %52 : vector<4x16x16xf32> to vector<4x256xf32>
    %c12_79 = arith.constant 12 : index
    %c0_80 = arith.constant 0 : index
    %54 = vector.load %arg5[%c12_79, %c0_80] : memref<37x256xf32, #tpu.memory_space<vmem>>, vector<4x256xf32>
    tpu.vector_store %arg5[%c12_79, %c0_80], %53 {strides = array<i32>} : memref<37x256xf32, #tpu.memory_space<vmem>>, vector<4x256xf32>,
    %c0_81 = arith.constant 0 : index
    %c1_82 = arith.constant 1 : index
    %c1_83 = arith.constant 1 : index
    %55 = vector.load %arg4[%c0_81, %c1_82, %c1_83] : memref<4x18x18xf32, #tpu.memory_space<vmem>>, vector<4x16x16xf32>
    %56 = vector.shape_cast %55 : vector<4x16x16xf32> to vector<4x256xf32>
    %c16_84 = arith.constant 16 : index
    %c0_85 = arith.constant 0 : index
    %57 = vector.load %arg5[%c16_84, %c0_85] : memref<37x256xf32, #tpu.memory_space<vmem>>, vector<4x256xf32>
    tpu.vector_store %arg5[%c16_84, %c0_85], %56 {strides = array<i32>} : memref<37x256xf32, #tpu.memory_space<vmem>>, vector<4x256xf32>,
    %c0_86 = arith.constant 0 : index
    %c1_87 = arith.constant 1 : index
    %c2_88 = arith.constant 2 : index
    %58 = vector.load %arg4[%c0_86, %c1_87, %c2_88] : memref<4x18x18xf32, #tpu.memory_space<vmem>>, vector<4x16x16xf32>
    %59 = vector.shape_cast %58 : vector<4x16x16xf32> to vector<4x256xf32>
    %c20_89 = arith.constant 20 : index
    %c0_90 = arith.constant 0 : index
    %60 = vector.load %arg5[%c20_89, %c0_90] : memref<37x256xf32, #tpu.memory_space<vmem>>, vector<4x256xf32>
    tpu.vector_store %arg5[%c20_89, %c0_90], %59 {strides = array<i32>} : memref<37x256xf32, #tpu.memory_space<vmem>>, vector<4x256xf32>,
    %c0_91 = arith.constant 0 : index
    %c2_92 = arith.constant 2 : index
    %c0_93 = arith.constant 0 : index
    %61 = vector.load %arg4[%c0_91, %c2_92, %c0_93] : memref<4x18x18xf32, #tpu.memory_space<vmem>>, vector<4x16x16xf32>
    %62 = vector.shape_cast %61 : vector<4x16x16xf32> to vector<4x256xf32>
    %c24_94 = arith.constant 24 : index
    %c0_95 = arith.constant 0 : index
    %63 = vector.load %arg5[%c24_94, %c0_95] : memref<37x256xf32, #tpu.memory_space<vmem>>, vector<4x256xf32>
    tpu.vector_store %arg5[%c24_94, %c0_95], %62 {strides = array<i32>} : memref<37x256xf32, #tpu.memory_space<vmem>>, vector<4x256xf32>,
    %c0_96 = arith.constant 0 : index
    %c2_97 = arith.constant 2 : index
    %c1_98 = arith.constant 1 : index
    %64 = vector.load %arg4[%c0_96, %c2_97, %c1_98] : memref<4x18x18xf32, #tpu.memory_space<vmem>>, vector<4x16x16xf32>
    %65 = vector.shape_cast %64 : vector<4x16x16xf32> to vector<4x256xf32>
    %c28_99 = arith.constant 28 : index
    %c0_100 = arith.constant 0 : index
    %66 = vector.load %arg5[%c28_99, %c0_100] : memref<37x256xf32, #tpu.memory_space<vmem>>, vector<4x256xf32>
    tpu.vector_store %arg5[%c28_99, %c0_100], %65 {strides = array<i32>} : memref<37x256xf32, #tpu.memory_space<vmem>>, vector<4x256xf32>,
    %c0_101 = arith.constant 0 : index
    %c2_102 = arith.constant 2 : index
    %c2_103 = arith.constant 2 : index
    %67 = vector.load %arg4[%c0_101, %c2_102, %c2_103] : memref<4x18x18xf32, #tpu.memory_space<vmem>>, vector<4x16x16xf32>
    %68 = vector.shape_cast %67 : vector<4x16x16xf32> to vector<4x256xf32>
    %c32_104 = arith.constant 32 : index
    %c0_105 = arith.constant 0 : index
    %69 = vector.load %arg5[%c32_104, %c0_105] : memref<37x256xf32, #tpu.memory_space<vmem>>, vector<4x256xf32>
    tpu.vector_store %arg5[%c32_104, %c0_105], %68 {strides = array<i32>} : memref<37x256xf32, #tpu.memory_space<vmem>>, vector<4x256xf32>,
    %c0_106 = arith.constant 0 : index
    %c0_107 = arith.constant 0 : index
    %70 = vector.load %arg5[%c0_106, %c0_107] : memref<37x256xf32, #tpu.memory_space<vmem>>, vector<37x256xf32>
    %cst_108 = arith.constant dense<0.000000e+00> : vector<8x256xf32>
    %71 = tpu.matmul %4, %70, %cst_108 {dimension_numbers = #tpu.dot_dimension_numbers<[1], [0], [0], [1], [0, 0, 1, 1], [], []>} : vector<8x37xf32>, vector<37x256xf32>, vector<8x256xf32> -> vector<8x256xf32>
    %c1_109 = arith.constant 1 : index
    %c0_110 = arith.constant 0 : index
    %c0_111 = arith.constant 0 : index
    %72 = vector.load %arg3[%c1_109, %c0_110, %c0_111] : memref<2x8x256xf32, #tpu.memory_space<vmem>>, vector<1x8x256xf32>
    %73 = vector.shape_cast %72 : vector<1x8x256xf32> to vector<8x256xf32>
    %74 = vector.shape_cast %71 : vector<8x256xf32> to vector<1x8x256xf32>
    tpu.vector_store %arg3[%c1_109, %c0_110, %c0_111], %74 {strides = array<i32>} : memref<2x8x256xf32, #tpu.memory_space<vmem>>, vector<1x8x256xf32>,
    return
  }
  func.func @transform_0(%arg0: i32) -> (i32, i32, i32, i32) {
    %c0_i32 = arith.constant 0 : i32
    %c0_i32_0 = arith.constant 0 : i32
    %c0_i32_1 = arith.constant 0 : i32
    %c0_i32_2 = arith.constant 0 : i32
    return %arg0, %c0_i32, %c0_i32_0, %c0_i32_1 : i32, i32, i32, i32
  }
  func.func @transform_1(%arg0: i32) -> (i32, i32) {
    %c0_i32 = arith.constant 0 : i32
    %c0_i32_0 = arith.constant 0 : i32
    %c0_i32_1 = arith.constant 0 : i32
    return %c0_i32, %c0_i32_0 : i32, i32
  }
  func.func @transform_2(%arg0: i32) -> (i32, i32, i32) {
    %c0_i32 = arith.constant 0 : i32
    %c0_i32_0 = arith.constant 0 : i32
    %c0_i32_1 = arith.constant 0 : i32
    return %arg0, %c0_i32, %c0_i32_0 : i32, i32, i32
  }
}

</mosaic_0001>

<bundles_post_ra>
// kernel: tpu_custom_call.1
= control target key start
LH: loop header
LB: loop body
LE: loop exit
PB: predicated region body
PF: predicated region fallthrough
CT: control target
= control target key end

     0   :  { %7 = vsyncpa [#allocation5], 0  ;;  %s7942_s0 = inlined_call_operand.hbm [shape: f32[4,4,16,16], index: 0, kind: input, shape index: {}]   ;;  %s7943_s1 = inlined_call_operand.hbm [shape: f32[8,37], index: 1, kind: input, shape index: {}]   ;;  %s7944_s2 = inlined_call_operand.hbm [shape: f32[4,8,256], index: 2, kind: output, shape index: {}]  }
   0x1   :  { %9 = vsyncpa [#allocation5 + $0x1], 0 }
   0x2   :  { %10 = vsyncpa [#allocation8], 0 }
   0x3   :  { %11 = vsyncpa [#allocation6], 0 }
   0x4   :  { %13 = vsyncpa [#allocation6 + $0x1], 0  ;;  %s5212_s9 = smov 0   ;;  %s5214_s10 = smov 0  }
   0x5   :  { %s5216_s11 = smov 0   ;;  %s5218_s12 = smov 0  }
   0x6 LB: > { %s5233_s13 = sadd.s32 4294967295, %s5175_s12   ;;  %s4907_s14 = sadd.s32 4294967294, %s5175_s12   ;;  %s5175_s12 = sphi %s5218_s12, %s8094_s12   ;;  %s5171_s11 = sphi %s5216_s11, %s8093_s11   ;;  %s5167_s10 = sphi %s5214_s10, %s8092_s10   ;;  %s5163_s9 = sphi %s5212_s9, %s8091_s9  }
   0x7   : > { %s5237_s15 = sadd.s32 1, %s5175_s12   ;;  %s26_s16 = sadd.s32 1, %s5171_s11 }
   0x8   : > { %s23_s17 = ssub.s32 %s5175_s12, %s5237_s15  ;;  %p33_p0 = scmp.ne.s32.totalorder %s5171_s11, %s5167_s10 }
   0x9   : > { %p24_p1 = scmp.eq.s32.totalorder %s23_s17, 0  ;;  %p34_p2 = scmp.eq.s32.totalorder %s5175_s12, 0 }
   0xa   : > { %p39_p3 = scmp.ne.s32.totalorder %s5167_s10, %s5163_s9  ;;  %p7945_p4 = scmp.eq.s32.totalorder %s5233_s13, 0 }
   0xb   : > { %s5249_s18 = scalar_select %p24_p1, %s5171_s11, %s26_s16  }
   0xc   : > { %p5251_p5 = por %p34_p2, %p33_p0  ;;  %p5257_p6 = por %p7945_p4, %p39_p3 }
   0xd   : > { %p84_p7 = scmp.eq.s32.totalorder %s5233_s13, 1  ;;  %p90_p8 = scmp.eq.s32.totalorder %s4907_s14, 1 }
   0xe   : > { %s7988_s20 = scalar_select %p5257_p6, 1, 0 }
   0xf   : > { %p4908_p9 = scmp.ge.s32.totalorder %s5175_s12, 1  ;;  %p97_p10 = scmp.lt.s32.totalorder %s5175_s12, 3 }
  0x10   : > { %p5264_p11 = por %p84_p7, %p33_p0  ;;  %p5268_p12 = por %p90_p8, %p39_p3 }
  0x11   : > { %p5272_p13 = pnand %p4908_p9, %p97_p10  ;;  %s5177_s24 = smov [#allocation7]  }
  0x12   : > { %s7989_s21 = scalar_select %p5264_p11, 1, 0 }
  0x13   : > { %s7990_s22 = scalar_select %p5268_p12, 1, 0 }
  0x14   : > { %s7991_s23 = scalar_select %p5272_p13, 1, 0 }
  0x15   : > { %p4953_p2 = pneg %p5272_p13  ;;  %s110_s25 = sshll.u32 %s5177_s24, 4  ;;  %s111_s25 = int_to_ptr.vmem [resolvable:$true] %s110_s25 }
  0x16   : > { %p4966_p4 = scmp.lt.s32.totalorder %s5175_s12, 2  ;;  %p7992_p0 = scmp.eq.s32.totalorder %s5233_s13, 0 }
  0x17   : > { %s121_s27 = sand.u32 1, %s5171_s11   ;;  %s5064_s30 = scalar_lea.vmem %s111_s25, 128 }
  0x18   : > { %p5282_p7 = pnand %p4953_p2, %p7992_p0  ;;  %p5289_p3 = pnand %p4966_p4, %p5251_p5 }
  0x19   : > { %s4911_s29 = sshll.u32 %s121_s27, 7  ;;  %p5065_p9 = scmp.ne.s32.totalorder %s111_s25, %s5064_s30 }
  0x1a   : > { %p5055_p8 = pneg %p5282_p7  ;;  %p5072_p12 = scmp.lt.s32.totalorder %s111_s25, %s111_s25 }
  0x1b   : > { %p5073_p11 = scmp.lt.s32.totalorder %s5064_s30, %s5064_s30 }
  0x1c   : > { %p5067_p10 = pnand %p5065_p9, %p5055_p8 }
  0x1d   : > { %p5074_p2 = por %p5073_p11, %p5072_p12 }
  0x1e   : > { %p5068_p1 = pneg %p5067_p10 }
  0x20   : > { %p5075_p0 = pnand %p5074_p2, %p5068_p1 }
  0x22   : > { %5078 = shalt.err (!%p5075_p0)
}
  0x23   : > { %4956 = dma.hbm_to_vmem [thread:$0]  (!%p5282_p7), %s7943_s1, 128, %s111_s25, [#allocation8]  }
  0x24   : > { %s4942_s5 = sshll.u32 %s5175_s12, 11  ;;  %s125_s6 = scalar_lea.vmem [#allocation4], %s4911_s29 }
  0x25   : > { %s133_s7 = sshll.u32 %s125_s6, 4  ;;  %s5304_s16 = scalar_lea.hbm %s7942_s0, %s4942_s5  ;;  %s5306_s7 = int_to_ptr.vmem [resolvable:$true] %s133_s7 }
  0x26   : > { %s5308_s17 = scalar_lea.sflag [#allocation5], %s121_s27  ;;  %s5079_s19 = scalar_lea.hbm %s5304_s16, 2048 }
  0x27   : > { %p5080_p4 = scmp.ne.s32.totalorder %s5304_s16, %s5079_s19  ;;  %p5081_p5 = pneg %p5289_p3 }
  0x28   : > { %s5084_s26 = scalar_lea.hbm %s7942_s0, 4096  ;;  %p5085_p1 = scmp.lt.s32.totalorder %s5304_s16, %s7942_s0 }
  0x29   : > { %p5082_p11 = pnand %p5081_p5, %p5080_p4  ;;  %p5086_p7 = scmp.lt.s32.totalorder %s5084_s26, %s5079_s19 }
  0x2b   : > { %p5083_p12 = pneg %p5082_p11  ;;  %p5087_p8 = por %p5086_p7, %p5085_p1 }
  0x2d   : > { %p5088_p9 = pnand %p5087_p8, %p5083_p12 }
  0x2f   : > { %5091 = shalt.err (!%p5088_p9)
}
  0x30   : > { %s5092_s27 = scalar_lea.vmem %s5306_s7, 2048  ;;  %s5178_s3 = smov [#allocation4]  }
  0x31   : > { %p5093_p10 = scmp.ne.s32.totalorder %s5306_s7, %s5092_s27  ;;  %s5097_s4 = sshll.u32 %s5178_s3, 4  ;;  %s5098_s4 = int_to_ptr.vmem [resolvable:$false] %s5097_s4 }
  0x32   : > { %s5099_s5 = scalar_lea.vmem %s5098_s4, 4096  ;;  %p5100_p4 = scmp.lt.s32.totalorder %s5306_s7, %s5098_s4 }
  0x33   : > { %p5095_p2 = pnand %p5093_p10, %p5081_p5  ;;  %p5101_p11 = scmp.lt.s32.totalorder %s5099_s5, %s5092_s27 }
  0x35   : > { %p5096_p0 = pneg %p5095_p2  ;;  %p5102_p6 = por %p5101_p11, %p5100_p4 }
  0x37   : > { %p5103_p13 = pnand %p5102_p6, %p5096_p0 }
  0x39   : > { %5106 = shalt.err (!%p5103_p13)
}
  0x3a   : > { %s5179_s6 = smov 128   ;;  %s5180_s8 = smov 8  }
  0x3b   : > { %4960 = dma.hbm_to_vmem [thread:$0]  (!%p5289_p3), %s5304_s16, 2048, %s5306_s7, %s5308_s17, %s5179_s6, %s5179_s6, %s5180_s8  }
  0x3c   : > { %p7995_p5 = scmp.ne.s32.totalorder %s7991_s23, 0 }
  0x3e   : > { %145 = sbr.rel (%p7995_p5) target bundleno = 1560 (0x618), region = 28 }
  0x43   : > { %s5332_s14 = sand.u32 1, %s5167_s10   ;;  %p7996_p6 = scmp.ne.s32.totalorder %s7988_s20, 0 }
  0x44   : > { %s4916_s19 = sshll.u32 %s5332_s14, 7  ;;  %s148_s24 = scalar_lea.sflag [#allocation5], %s5332_s14 }
  0x45   : > { %s5336_s25 = scalar_lea.vmem [#allocation4], %s4916_s19 }
  0x46   : > { %5150 = dma.done.wait (%p7996_p6), %s148_s24, 2048  }
  0x47   : > { %5152 = vsyncadd (%p7996_p6), %s148_s24, 4294965248  ;;  %p7997_p13 = scmp.eq.s32.totalorder %s5233_s13, 0 }
  0x49   : > { %5154 = dma.done.wait (%p7997_p13), [#allocation8], 128   ;;  %p7998_p3 = pmov %p7997_p13 }
  0x4a   : > { %vm178_vm0 = vcmask 146432   ;;  %v7950_v0 = vmov 0.0   ;;  %vm181_vm1 = vcmask 140288   ;;  %v202_v1 = vld [vmem:[%s5336_s25 + $0x10] sm:$0xff]  ;;  %v200_v2 = vld [vmem:[%s5336_s25] sm:$0xff]  ;;  %s5182_s20 = smov 1   ;;  %v7949_v32 = vlaneseq }
  0x4b   : > { %5156 = vsyncadd (%p7998_p3), [#allocation8], 4294967168  ;;  %183 = vst.msk [vmem:[#allocation2 + $0x18] sm:$0xff] %vm178_vm0, %v7950_v0  ;;  %2501 = vmatprep.mubr.f32.mxu0 %v7950_v0  ;;  %4799 = vmatprep.mubr.f32.mxu1 %v7950_v0  ;;  %v203_v3 = vld [vmem:[%s5336_s25 + $0x18] sm:$0xff]  ;;  %v201_v4 = vld [vmem:[%s5336_s25 + $0x8] sm:$0xff]  ;;  %vm240_vm2 = vcmask 138248  }
  0x4c   : > { %184 = vst.msk [vmem:[#allocation2 + $0x20] sm:$0xff] %vm178_vm0, %v7950_v0  ;;  %179 = vst.msk [vmem:[#allocation2] sm:$0xff] %vm178_vm0, %v7950_v0  ;;  %220 = vrot.lane.b32.xlu1 %v202_v1, %s5182_s20  ;;  %216 = vrot.lane.b32.xlu0 %v200_v2, %s5182_s20  ;;  %v205_v5 = vld [vmem:[%s5336_s25 + $0x28] sm:$0xff]  ;;  %v204_v6 = vld [vmem:[%s5336_s25 + $0x20] sm:$0xff]  ;;  %s5183_s23 = smov 127   ;;  %s5184_s28 = smov 126  }
  0x4d   : > { %180 = vst.msk [vmem:[#allocation2 + $0x8] sm:$0xff] %vm178_vm0, %v7950_v0  ;;  %186 = vst.msk [vmem:[#allocation2 + $0x30] sm:$0xff] %vm178_vm0, %v7950_v0  ;;  %v207_v7 = vld [vmem:[%s5336_s25 + $0x38] sm:$0xff]  ;;  %v206_v8 = vld [vmem:[%s5336_s25 + $0x30] sm:$0xff]  ;;  %v5185_v33 = vmov 1983009808  }
  0x4e   : > { %187 = vst.msk [vmem:[#allocation2 + $0x38] sm:$0xff] %vm178_vm0, %v7950_v0  ;;  %189 = vst.msk [vmem:[#allocation2 + $0x48] sm:$0xff] %vm178_vm0, %v7950_v0  ;;  %v260_v34 = vunpack.c.l.s4 %v5185_v33  ;;  %v263_v37 = vshrl.u32 %v7949_v32, 7  ;;  %v5186_v38 = vmov 1934713408   ;;  %s5187_s7 = smov 32  }
  0x4f   : > { %190 = vst.msk [vmem:[#allocation2 + $0x50] sm:$0xff] %vm178_vm0, %v7950_v0  ;;  %v292_v39 = vunpack.c.l.s4 %v5186_v38  ;;  %s5188_s16 = smov 64   ;;  %s5189_s17 = smov 96   ;;  %vm449_vm3 = vcmask 130048   ;;  %vm451_vm4 = vcmask 261120   ;;  %vm453_vm5 = vcmask 392192  }
  0x50   : > { %185 = vst.msk [vmem:[#allocation2 + $0x28] sm:$0x3] %vm181_vm1, %v7950_v0  ;;  %182 = vst.msk [vmem:[#allocation2 + $0x10] sm:$0x3] %vm181_vm1, %v7950_v0  ;;  %222 = vrot.lane.b32.xlu1 %v203_v3, %s5182_s20  ;;  %218 = vrot.lane.b32.xlu0 %v201_v4, %s5182_s20  ;;  %v261_v36 = vunpack.c.0.s8 %v260_v34  ;;  %s5190_s26 = smov 16   ;;  %s5191_s29 = smov 48  }
  0x51   : > { %188 = vst.msk [vmem:[#allocation2 + $0x40] sm:$0x3] %vm181_vm1, %v7950_v0  ;;  %191 = vst.msk [vmem:[#allocation2 + $0x58] sm:$0x3] %vm181_vm1, %v7950_v0  ;;  %v293_v43 = vunpack.c.0.s8 %v292_v39  ;;  %s5192_s30 = smov 80   ;;  %s5193_s27 = smov 112  }
  0x52   : > { %v5456_v41 = vsub.s32 %v261_v36, %v263_v37  ;;  %vm455_vm6 = vcmask 523264   ;;  %vm457_vm7 = vcmask 654336   ;;  %vm459_vm8 = vcmask 785408   ;;  %s4918_s3 = sshll.u32 %s5332_s14, 5  ;;  %s4944_s6 = sshll.u32 %s5233_s13, 9 }
  0x53   : > { %v5474_v50 = vsub.s32 %v293_v43, %v263_v37  ;;  %vm461_vm9 = vcmask 916480   ;;  %vm2430_vm11 = vcmask 1044480   ;;  %vm2426_vm12 = vcmask 302080   ;;  %s175_s4 = scalar_lea.vmem [#allocation9], %s4918_s3  ;;  %s7898_s24 = scalar_lea.hbm %s7944_s2, %s4944_s6 }
  0x54   : > { %226 = vrot.lane.b32.xlu1 %v205_v5, %s5182_s20  ;;  %224 = vrot.lane.b32.xlu0 %v204_v6, %s5182_s20  ;;  %s4824_s5 = sshll.u32 %s175_s4, 4  ;;  %p8088_p1 = scmp.ne.s32.totalorder %s7989_s21, 0  ;;  %s7893_s5 = int_to_ptr.vmem [resolvable:$true] %s4824_s5 }
  0x55   : > { %s5195_s13 = smov [#allocation9]  }
  0x58   : > { %230 = vrot.lane.b32.xlu1 %v207_v7, %s5182_s20  ;;  %228 = vrot.lane.b32.xlu0 %v206_v8, %s5182_s20 }
  0xbe   : > { %v221_v9 = vpop.permute.xlu1 %220  ;;  %v217_v10 = vpop.permute.xlu0 %216 }
  0xbf   : > { %243 = vst.msk [vmem:[#allocation2 + $0x19] sm:$0xff] %vm240_vm2, %v221_v9  ;;  %241 = vst.msk [vmem:[#allocation2 + $0x1] sm:$0xff] %vm240_vm2, %v217_v10 }
  0xc2   : > { %v223_v11 = vpop.permute.xlu1 %222  ;;  %v219_v12 = vpop.permute.xlu0 %218 }
  0xc3   : > { %244 = vst.msk [vmem:[#allocation2 + $0x21] sm:$0xff] %vm240_vm2, %v223_v11  ;;  %242 = vst.msk [vmem:[#allocation2 + $0x9] sm:$0xff] %vm240_vm2, %v219_v12 }
  0xc6   : > { %v227_v13 = vpop.permute.xlu1 %226  ;;  %v225_v14 = vpop.permute.xlu0 %224  ;;  %v5380_v15 = vld [vmem:[#allocation2] sm:$0xff]  ;;  %v5386_v16 = vld [vmem:[#allocation2 + $0x18] sm:$0xff] }
  0xc7   : > { %246 = vst.msk [vmem:[#allocation2 + $0x39] sm:$0xff] %vm240_vm2, %v227_v13  ;;  %245 = vst.msk [vmem:[#allocation2 + $0x31] sm:$0xff] %vm240_vm2, %v225_v14  ;;  %488 = vrot.lane.b32.xlu0 %v5380_v15, %s5183_s23  ;;  %v5419_v25 = vld [vmem:[#allocation2 + $0x1] sm:$0xff]  ;;  %v5426_v27 = vld [vmem:[#allocation2 + $0x19] sm:$0xff] }
  0xca   : > { %v231_v17 = vpop.permute.xlu1 %230  ;;  %v229_v18 = vpop.permute.xlu0 %228  ;;  %v5388_v19 = vld [vmem:[#allocation2 + $0x8] sm:$0xff]  ;;  %v475_v20 = vld [vmem:[#allocation2 + $0x20] sm:$0xff] }
  0xcb   : > { %248 = vst.msk [vmem:[#allocation2 + $0x51] sm:$0xff] %vm240_vm2, %v231_v17  ;;  %247 = vst.msk [vmem:[#allocation2 + $0x49] sm:$0xff] %vm240_vm2, %v229_v18  ;;  %490 = vrot.lane.b32.xlu1 %v5388_v19, %s5183_s23  ;;  %492 = vrot.lane.b32.xlu0 %v5386_v16, %s5183_s23  ;;  %v5424_v26 = vld [vmem:[#allocation2 + $0x9] sm:$0xff]  ;;  %v5432_v28 = vld [vmem:[#allocation2 + $0x21] sm:$0xff] }
  0xcc   : > { %v5566_v38 = vld [vmem:[#allocation2 + $0x2] sm:$0xff] }
  0xce   : > { %v5396_v21 = vld [vmem:[#allocation2 + $0x30] sm:$0xff]  ;;  %v477_v22 = vld [vmem:[#allocation2 + $0x38] sm:$0xff] }
  0xcf   : > { %494 = vrot.lane.b32.xlu1 %v475_v20, %s5183_s23  ;;  %496 = vrot.lane.b32.xlu0 %v5396_v21, %s5183_s23  ;;  %v5434_v29 = vld [vmem:[#allocation2 + $0x31] sm:$0xff]  ;;  %v5440_v30 = vld [vmem:[#allocation2 + $0x39] sm:$0xff]  ;;  %v325_v42 = vcombine.low %v5388_v19, %v477_v22  ;;  %v326_v48 = vcombine.high %v5388_v19, %v477_v22  ;;  %v257_v49 = vcombine.low %v5380_v15, %v5396_v21 }
  0xd0   : > { %v258_v57 = vcombine.high %v5380_v15, %v5396_v21  ;;  %v1050_v63 = vcombine.low %v5424_v26, %v5440_v30  ;;  %v1051_v10 = vcombine.high %v5424_v26, %v5440_v30  ;;  %v982_v11 = vcombine.low %v5419_v25, %v5434_v29  ;;  %v5558_v33 = vld [vmem:[#allocation2 + $0x32] sm:$0xff] }
  0xd1   : > { %v5469_v47 = vrot.slane %v325_v42, %v5456_v41  ;;  %v340_v55 = vrot.slane %v326_v48, %v5456_v41  ;;  %v265_v56 = vrot.slane %v257_v49, %v5456_v41  ;;  %8000 = vst [vmem:[#allocation14_spill] sm:$0xff] %v5558_v33  ;;  %v1706_v39 = vcombine.low %v5566_v38, %v5558_v33 }
  0xd2   : > { %v5401_v23 = vld [vmem:[#allocation2 + $0x48] sm:$0xff]  ;;  %v479_v24 = vld [vmem:[#allocation2 + $0x50] sm:$0xff]  ;;  %v272_v1 = vrot.slane %v258_v57, %v5456_v41  ;;  %v5515_v9 = vrot.slane %v1050_v63, %v5456_v41 }
  0xd3   : > { %498 = vrot.lane.b32.xlu1 %v477_v22, %s5183_s23  ;;  %500 = vrot.lane.b32.xlu0 %v5401_v23, %s5183_s23  ;;  %v5442_v31 = vld [vmem:[#allocation2 + $0x49] sm:$0xff]  ;;  %v1203_v35 = vld [vmem:[#allocation2 + $0x51] sm:$0xff]  ;;  %v341_v40 = vcombine.low %v475_v20, %v479_v24  ;;  %v342_v45 = vcombine.high %v475_v20, %v479_v24  ;;  %v273_v46 = vcombine.low %v5386_v16, %v5401_v23 }
  0xd4   : > { %v274_v54 = vcombine.high %v5386_v16, %v5401_v23  ;;  %v1066_v58 = vcombine.low %v5432_v28, %v1203_v35  ;;  %v1067_v3 = vcombine.high %v5432_v28, %v1203_v35  ;;  %v998_v4 = vcombine.low %v5426_v27, %v5442_v31 }
  0xd5   : > { %v5460_v44 = vrot.slane %v341_v40, %v5456_v41  ;;  %v356_v52 = vrot.slane %v342_v45, %v5456_v41  ;;  %v5480_v53 = vrot.slane %v273_v46, %v5456_v41  ;;  %v999_v18 = vcombine.high %v5426_v27, %v5442_v31 }
  0xd6   : > { %v288_v62 = vrot.slane %v274_v54, %v5456_v41  ;;  %v5505_v2 = vrot.slane %v1066_v58, %v5456_v41  ;;  %v1081_v13 = vrot.slane %v1067_v3, %v5456_v41  ;;  %v5528_v14 = vrot.slane %v998_v4, %v5456_v41 }
  0xd7   : > { %502 = vrot.lane.b32.xlu1 %v479_v24, %s5183_s23  ;;  %742 = vrot.lane.b32.xlu0 %v5380_v15, %s5184_s28  ;;  %v358_v51 = vcombine.high %v5469_v47, %v5460_v44  ;;  %v373_v60 = vcombine.low %v340_v55, %v356_v52  ;;  %v290_v61 = vcombine.high %v265_v56, %v5480_v53 }
  0xd8   : > { %v374_v7 = vcombine.high %v340_v55, %v356_v52  ;;  %v305_v8 = vcombine.low %v272_v1, %v288_v62  ;;  %v1083_v12 = vcombine.high %v5515_v9, %v5505_v2  ;;  %v306_v17 = vcombine.high %v272_v1, %v288_v62 }
  0xd9   : > { %v5494_v59 = vrot.slane %v358_v51, %v5474_v50  ;;  %v5511_v5 = vrot.slane %v373_v60, %v5474_v50  ;;  %v304_v6 = vrot.slane %v290_v61, %v5474_v50  ;;  %v1714_v49 = vrot.slane %v1706_v39, %v5456_v41 }
  0xda   : > { %v5531_v15 = vrot.slane %v374_v7, %v5474_v50  ;;  %v1707_v51 = vcombine.high %v5566_v38, %v5558_v33  ;;  %v357_v61 = vcombine.low %v5469_v47, %v5460_v44 }
  0xdb   : > { %744 = vrot.lane.b32.xlu1 %v5388_v19, %s5184_s28  ;;  %746 = vrot.lane.b32.xlu0 %v5386_v16, %s5184_s28  ;;  %v313_v16 = vrot.slane %v305_v8, %v5474_v50  ;;  %v1065_v19 = vrot.slane %v1051_v10, %v5456_v41  ;;  %v322_v58 = vcombine.high %v304_v6, %v7950_v0 }
  0xdc   : > { %v5611_v1 = vrot.slane %v357_v61, %v5474_v50  ;;  %v391_v8 = vcombine.high %v5511_v5, %v7950_v0 }
  0xdd   : > { %v323_v63 = vcombine.high %v313_v16, %v7950_v0 }
  0xde   : > { %v389_v44 = vcombine.high %v5611_v1, %v7950_v0 }
  0xdf   : > { %748 = vrot.lane.b32.xlu1 %v475_v20, %s5184_s28  ;;  %750 = vrot.lane.b32.xlu0 %v5396_v21, %s5184_s28  ;;  %v990_v20 = vrot.slane %v982_v11, %v5456_v41  ;;  %v983_v21 = vcombine.high %v5419_v25, %v5434_v29  ;;  %v1082_v11 = vcombine.low %v5515_v9, %v5505_v2 }
  0xe1   : > { %v1014_v3 = vcombine.low %v990_v20, %v5528_v14 }
  0xe3   : > { %752 = vrot.lane.b32.xlu1 %v477_v22, %s5184_s28  ;;  %754 = vrot.lane.b32.xlu0 %v5401_v23, %s5184_s28  ;;  %v1098_v22 = vcombine.low %v1065_v19, %v1081_v13  ;;  %v5544_v23 = vrot.slane %v1083_v12, %v5474_v50  ;;  %v5620_v4 = vrot.slane %v1014_v3, %v5474_v50 }
  0xe5   : > { %v5561_v34 = vrot.slane %v1098_v22, %v5474_v50  ;;  %v1046_v7 = vcombine.high %v5620_v4, %v7950_v0 }
  0xe7   : > { %756 = vrot.lane.b32.xlu1 %v479_v24, %s5184_s28  ;;  %1212 = vrot.lane.b32.xlu0 %v5419_v25, %s5183_s23  ;;  %v320_v24 = vrot.slane %v306_v17, %v5474_v50  ;;  %v1116_v22 = vcombine.high %v5561_v34, %v7950_v0 }
  0xe9   : > { %v324_v47 = vcombine.high %v320_v24, %v7950_v0 }
  0xeb   : > { %1214 = vrot.lane.b32.xlu1 %v5424_v26, %s5183_s23  ;;  %1216 = vrot.lane.b32.xlu0 %v5426_v27, %s5183_s23 }
  0xef   : > { %1218 = vrot.lane.b32.xlu1 %v5432_v28, %s5183_s23  ;;  %1220 = vrot.lane.b32.xlu0 %v5434_v29, %s5183_s23 }
  0xf3   : > { %1222 = vrot.lane.b32.xlu1 %v5440_v30, %s5183_s23  ;;  %1224 = vrot.lane.b32.xlu0 %v5442_v31, %s5183_s23 }
  0xf7   : > { %1226 = vrot.lane.b32.xlu1 %v1203_v35, %s5183_s23  ;;  %1460 = vrot.lane.b32.xlu0 %v5419_v25, %s5184_s28  ;;  %v1099_v25 = vcombine.high %v1065_v19, %v1081_v13  ;;  %v5641_v13 = vrot.slane %v1082_v11, %v5474_v50 }
  0xf9   : > { %v5574_v40 = vrot.slane %v1099_v25, %v5474_v50  ;;  %v1114_v2 = vcombine.high %v5641_v13, %v7950_v0 }
  0xfb   : > { %1462 = vrot.lane.b32.xlu1 %v5424_v26, %s5184_s28  ;;  %1464 = vrot.lane.b32.xlu0 %v5426_v27, %s5184_s28  ;;  %v1015_v26 = vcombine.high %v990_v20, %v5528_v14  ;;  %v1013_v27 = vrot.slane %v999_v18, %v5456_v41  ;;  %v1115_v18 = vcombine.high %v5544_v23, %v7950_v0 }
  0xff   : > { %1466 = vrot.lane.b32.xlu1 %v5432_v28, %s5184_s28  ;;  %1468 = vrot.lane.b32.xlu0 %v5434_v29, %s5184_s28  ;;  %v5549_v28 = vld [vmem:[#allocation2 + $0x4a] sm:$0xff]  ;;  %v289_v29 = vcombine.low %v265_v56, %v5480_v53  ;;  %v5598_v56 = vrot.slane %v1707_v51, %v5456_v41 }
 0x100   : > { %7999 = vst [vmem:[#allocation13_spill] sm:$0xff] %v5549_v28 }
 0x101   : > { %v5577_v42 = vrot.slane %v289_v29, %v5474_v50 }
 0x103   : > { %1470 = vrot.lane.b32.xlu1 %v5440_v30, %s5184_s28  ;;  %1472 = vrot.lane.b32.xlu0 %v5442_v31, %s5184_s28  ;;  %v997_v30 = vrot.slane %v983_v21, %v5456_v41  ;;  %v5556_v31 = vld [vmem:[#allocation2 + $0x1a] sm:$0xff]  ;;  %v321_v53 = vcombine.high %v5577_v42, %v7950_v0 }
 0x104   : > { %v1722_v37 = vcombine.low %v5556_v31, %v5549_v28  ;;  %v1723_v48 = vcombine.high %v5556_v31, %v5549_v28 }
 0x105   : > { %v1030_v36 = vcombine.low %v997_v30, %v1013_v27  ;;  %v1031_v45 = vcombine.high %v997_v30, %v1013_v27  ;;  %v1117_v30 = vcombine.high %v5574_v40, %v7950_v0 }
 0x106   : > { %v1730_v46 = vrot.slane %v1722_v37, %v5456_v41  ;;  %v5593_v55 = vrot.slane %v1723_v48, %v5456_v41 }
 0x107   : > { %1474 = vrot.lane.b32.xlu1 %v1203_v35, %s5184_s28  ;;  %426 = vrot.lane.b32.xlu0 %v5494_v59, %s5187_s7  ;;  %v1029_v35 = vrot.slane %v1015_v26, %v5474_v50  ;;  %v1038_v43 = vrot.slane %v1030_v36, %v5474_v50  ;;  %v1045_v52 = vrot.slane %v1031_v45, %v5474_v50 }
 0x108   : > { %v1739_v54 = vcombine.high %v1714_v49, %v1730_v46  ;;  %v1754_v60 = vcombine.low %v5598_v56, %v5593_v55  ;;  %v1738_v14 = vcombine.low %v1714_v49, %v1730_v46  ;;  %v1755_v29 = vcombine.high %v5598_v56, %v5593_v55 }
 0x109   : > { %v1047_v10 = vcombine.high %v1029_v35, %v7950_v0  ;;  %v1048_v12 = vcombine.high %v1038_v43, %v7950_v0  ;;  %v1049_v9 = vcombine.high %v1045_v52, %v7950_v0 }
 0x10a   : > { %v1753_v57 = vrot.slane %v1739_v54, %v5474_v50  ;;  %v1762_v62 = vrot.slane %v1754_v60, %v5474_v50  ;;  %v5679_v48 = vrot.slane %v1755_v29, %v5474_v50 }
 0x10b   : > { %434 = vrot.lane.b32.xlu0 %v5511_v5, %s5188_s16  ;;  %398 = vrot.lane.b32.xlu1 %v304_v6, %s5187_s7  ;;  %v390_v6 = vcombine.high %v5494_v59, %v7950_v0  ;;  %v392_v59 = vcombine.high %v5531_v15, %v7950_v0 }
 0x10c   : > { %v1772_v25 = vcombine.high %v1762_v62, %v7950_v0 }
 0x10f   : > { %442 = vrot.lane.b32.xlu0 %v5531_v15, %s5189_s17  ;;  %406 = vrot.lane.b32.xlu1 %v313_v16, %s5188_s16  ;;  %v5649_v16 = vrot.slane %v1738_v14, %v5474_v50 }
 0x111   : > { %8001 = vst [vmem:[#allocation15_spill] sm:$0xff] %v5649_v16  ;;  %v1770_v19 = vcombine.high %v5649_v16, %v7950_v0 }
 0x113   : > { %1151 = vrot.lane.b32.xlu0 %v5544_v23, %s5187_s7  ;;  %414 = vrot.lane.b32.xlu1 %v320_v24, %s5189_s17  ;;  %v1771_v24 = vcombine.high %v1753_v57, %v7950_v0 }
 0x117   : > { %1159 = vrot.lane.b32.xlu0 %v5561_v34, %s5188_s16  ;;  %1123 = vrot.lane.b32.xlu1 %v1029_v35, %s5187_s7 }
 0x11b   : > { %1167 = vrot.lane.b32.xlu0 %v5574_v40, %s5189_s17  ;;  %1131 = vrot.lane.b32.xlu1 %v1038_v43, %s5188_s16 }
 0x11f   : > { %1139 = vrot.lane.b32.xlu1 %v1045_v52, %s5189_s17  ;;  %394 = vrot.lane.b32.xlu0 %v321_v53, %s5190_s26 }
 0x123   : > { %1847 = vrot.lane.b32.xlu1 %v1753_v57, %s5187_s7  ;;  %402 = vrot.lane.b32.xlu0 %v322_v58, %s5191_s29 }
 0x127   : > { %1855 = vrot.lane.b32.xlu1 %v1762_v62, %s5188_s16  ;;  %410 = vrot.lane.b32.xlu0 %v323_v63, %s5192_s30 }
 0x12b   : > { %422 = vrot.lane.b32.xlu1 %v389_v44, %s5190_s26  ;;  %418 = vrot.lane.b32.xlu0 %v324_v47, %s5193_s27 }
 0x12f   : > { %430 = vrot.lane.b32.xlu1 %v390_v6, %s5191_s29  ;;  %1119 = vrot.lane.b32.xlu0 %v1046_v7, %s5190_s26 }
 0x133   : > { %438 = vrot.lane.b32.xlu1 %v391_v8, %s5192_s30  ;;  %1127 = vrot.lane.b32.xlu0 %v1047_v10, %s5191_s29 }
 0x137   : > { %446 = vrot.lane.b32.xlu1 %v392_v59, %s5193_s27  ;;  %1135 = vrot.lane.b32.xlu0 %v1048_v12, %s5192_s30 }
 0x139   : > { %v489_v5 = vpop.permute.xlu0 %488 }
 0x13b   : > { %1147 = vrot.lane.b32.xlu1 %v1114_v2, %s5190_s26  ;;  %1143 = vrot.lane.b32.xlu0 %v1049_v9, %s5193_s27 }
 0x13d   : > { %v491_v15 = vpop.permute.xlu1 %490  ;;  %v493_v17 = vpop.permute.xlu0 %492 }
 0x13f   : > { %1155 = vrot.lane.b32.xlu1 %v1115_v18, %s5191_s29  ;;  %1843 = vrot.lane.b32.xlu0 %v1770_v19, %s5190_s26 }
 0x141   : > { %v495_v20 = vpop.permute.xlu1 %494  ;;  %v497_v21 = vpop.permute.xlu0 %496 }
 0x142   : > { %v512_v26 = vcombine.low %v489_v5, %v497_v21  ;;  %v513_v34 = vcombine.high %v489_v5, %v497_v21 }
 0x143   : > { %1163 = vrot.lane.b32.xlu1 %v1116_v22, %s5192_s30  ;;  %1851 = vrot.lane.b32.xlu0 %v1771_v24, %s5191_s29 }
 0x144   : > { %v5672_v37 = vrot.slane %v512_v26, %v5456_v41  ;;  %v527_v54 = vrot.slane %v513_v34, %v5456_v41 }
 0x145   : > { %v499_v23 = vpop.permute.xlu1 %498  ;;  %v501_v27 = vpop.permute.xlu0 %500 }
 0x146   : > { %v528_v35 = vcombine.low %v493_v17, %v501_v27  ;;  %v529_v36 = vcombine.high %v493_v17, %v501_v27  ;;  %v580_v39 = vcombine.low %v491_v15, %v499_v23  ;;  %v581_v49 = vcombine.high %v491_v15, %v499_v23 }
 0x147   : > { %1171 = vrot.lane.b32.xlu1 %v1117_v30, %s5193_s27  ;;  %1859 = vrot.lane.b32.xlu0 %v1772_v25, %s5192_s30 }
 0x148   : > { %v5675_v43 = vrot.slane %v528_v35, %v5456_v41  ;;  %v543_v40 = vrot.slane %v529_v36, %v5456_v41  ;;  %v5687_v55 = vrot.slane %v580_v39, %v5456_v41  ;;  %v595_v63 = vrot.slane %v581_v49, %v5456_v41 }
 0x149   : > { %v503_v45 = vpop.permute.xlu1 %502  ;;  %v743_v46 = vpop.permute.xlu0 %742 }
 0x14a   : > { %v596_v51 = vcombine.low %v495_v20, %v503_v45  ;;  %v597_v52 = vcombine.high %v495_v20, %v503_v45  ;;  %v545_v53 = vcombine.high %v5672_v37, %v5675_v43  ;;  %v560_v62 = vcombine.low %v527_v54, %v543_v40 }
 0x14b   : > { %1863 = vrot.lane.b32.xlu1 %v5679_v48, %s5189_s17  ;;  %v561_v10 = vcombine.high %v527_v54, %v543_v40 }
 0x14c   : > { %v5690_v56 = vrot.slane %v596_v51, %v5456_v41  ;;  %v611_v57 = vrot.slane %v597_v52, %v5456_v41  ;;  %v5694_v58 = vrot.slane %v545_v53, %v5474_v50  ;;  %v5705_v8 = vrot.slane %v560_v62, %v5474_v50 }
 0x14d   : > { %v745_v60 = vpop.permute.xlu1 %744  ;;  %v747_v61 = vpop.permute.xlu0 %746  ;;  %v5715_v2 = vrot.slane %v561_v10, %v5474_v50 }
 0x14e   : > { %v613_v3 = vcombine.high %v5687_v55, %v5690_v56  ;;  %v628_v47 = vcombine.low %v595_v63, %v611_v57  ;;  %v629_v11 = vcombine.high %v595_v63, %v611_v57 }
 0x14f   : > { %653 = vrot.lane.b32.xlu1 %v5694_v58, %s5187_s7 }
 0x150   : > { %v5702_v44 = vrot.slane %v613_v3, %v5474_v50  ;;  %v5712_v12 = vrot.slane %v628_v47, %v5474_v50  ;;  %v5722_v18 = vrot.slane %v629_v11, %v5474_v50 }
 0x151   : > { %v749_v6 = vpop.permute.xlu1 %748  ;;  %v751_v7 = vpop.permute.xlu0 %750 }
 0x152   : > { %681 = vrot.lane.b32.xlu0 %v5702_v44, %s5187_s7  ;;  %v766_v59 = vcombine.low %v743_v46, %v751_v7  ;;  %v767_v9 = vcombine.high %v743_v46, %v751_v7 }
 0x153   : > { %661 = vrot.lane.b32.xlu1 %v5705_v8, %s5188_s16 }
 0x154   : > { %v5725_v19 = vrot.slane %v766_v59, %v5456_v41  ;;  %v781_v23 = vrot.slane %v767_v9, %v5456_v41 }
 0x155   : > { %v753_v14 = vpop.permute.xlu1 %752  ;;  %v755_v5 = vpop.permute.xlu0 %754 }
 0x156   : > { %v782_v15 = vcombine.low %v747_v61, %v755_v5  ;;  %v783_v17 = vcombine.high %v747_v61, %v755_v5  ;;  %689 = vrot.lane.b32.xlu0 %v5712_v12, %s5188_s16  ;;  %v834_v20 = vcombine.low %v745_v60, %v753_v14  ;;  %v835_v29 = vcombine.high %v745_v60, %v753_v14 }
 0x157   : > { %669 = vrot.lane.b32.xlu1 %v5715_v2, %s5189_s17 }
 0x158   : > { %v5728_v21 = vrot.slane %v782_v15, %v5456_v41  ;;  %v797_v22 = vrot.slane %v783_v17, %v5456_v41  ;;  %v5737_v35 = vrot.slane %v834_v20, %v5456_v41  ;;  %v849_v51 = vrot.slane %v835_v29, %v5456_v41 }
 0x159   : > { %v757_v24 = vpop.permute.xlu1 %756  ;;  %v1213_v26 = vpop.permute.xlu0 %1212 }
 0x15a   : > { %v850_v27 = vcombine.low %v749_v6, %v757_v24  ;;  %v851_v30 = vcombine.high %v749_v6, %v757_v24  ;;  %697 = vrot.lane.b32.xlu0 %v5722_v18, %s5189_s17  ;;  %v799_v25 = vcombine.high %v5725_v19, %v5728_v21  ;;  %v814_v39 = vcombine.low %v781_v23, %v797_v22 }
 0x15b   : > { %v815_v54 = vcombine.high %v781_v23, %v797_v22 }
 0x15c   : > { %v5740_v36 = vrot.slane %v850_v27, %v5456_v41  ;;  %v5743_v34 = vrot.slane %v799_v25, %v5474_v50  ;;  %v865_v40 = vrot.slane %v851_v30, %v5456_v41  ;;  %v5752_v52 = vrot.slane %v814_v39, %v5474_v50 }
 0x15d   : > { %v1215_v45 = vpop.permute.xlu1 %1214  ;;  %v1217_v46 = vpop.permute.xlu0 %1216  ;;  %v5762_v63 = vrot.slane %v815_v54, %v5474_v50 }
 0x15e   : > { %907 = vrot.lane.b32.xlu1 %v5743_v34, %s5187_s7  ;;  %v867_v49 = vcombine.high %v5737_v35, %v5740_v36  ;;  %v882_v61 = vcombine.low %v849_v51, %v865_v40  ;;  %v883_v7 = vcombine.high %v849_v51, %v865_v40 }
 0x160   : > { %v5755_v53 = vrot.slane %v867_v49, %v5474_v50  ;;  %v5765_v6 = vrot.slane %v882_v61, %v5474_v50  ;;  %v5779_v22 = vrot.slane %v883_v7, %v5474_v50 }
 0x161   : > { %v1219_v57 = vpop.permute.xlu1 %1218  ;;  %v1221_v60 = vpop.permute.xlu0 %1220 }
 0x162   : > { %915 = vrot.lane.b32.xlu1 %v5752_v52, %s5188_s16  ;;  %935 = vrot.lane.b32.xlu0 %v5755_v53, %s5187_s7  ;;  %v1236_v62 = vcombine.low %v1213_v26, %v1221_v60  ;;  %v1237_v10 = vcombine.high %v1213_v26, %v1221_v60 }
 0x164   : > { %v5772_v14 = vrot.slane %v1236_v62, %v5456_v41  ;;  %v1251_v24 = vrot.slane %v1237_v10, %v5456_v41 }
 0x165   : > { %v1223_v3 = vpop.permute.xlu1 %1222  ;;  %v1225_v47 = vpop.permute.xlu0 %1224 }
 0x166   : > { %v1252_v11 = vcombine.low %v1217_v46, %v1225_v47  ;;  %v1253_v59 = vcombine.high %v1217_v46, %v1225_v47  ;;  %923 = vrot.lane.b32.xlu1 %v5762_v63, %s5189_s17  ;;  %943 = vrot.lane.b32.xlu0 %v5765_v6, %s5188_s16  ;;  %v1304_v5 = vcombine.low %v1215_v45, %v1223_v3 }
 0x167   : > { %v1305_v30 = vcombine.high %v1215_v45, %v1223_v3 }
 0x168   : > { %v5775_v9 = vrot.slane %v1252_v11, %v5456_v41  ;;  %v1267_v15 = vrot.slane %v1253_v59, %v5456_v41  ;;  %v5787_v25 = vrot.slane %v1304_v5, %v5456_v41 }
 0x169   : > { %v1227_v17 = vpop.permute.xlu1 %1226  ;;  %v1461_v20 = vpop.permute.xlu0 %1460  ;;  %v1319_v54 = vrot.slane %v1305_v30, %v5456_v41 }
 0x16a   : > { %v1320_v26 = vcombine.low %v1219_v57, %v1227_v17  ;;  %v1321_v23 = vcombine.high %v1219_v57, %v1227_v17  ;;  %v1269_v27 = vcombine.high %v5772_v14, %v5775_v9  ;;  %951 = vrot.lane.b32.xlu0 %v5779_v22, %s5189_s17  ;;  %v1284_v40 = vcombine.low %v1251_v24, %v1267_v15 }
 0x16b   : > { %v1285_v61 = vcombine.high %v1251_v24, %v1267_v15 }
 0x16c   : > { %v5790_v29 = vrot.slane %v1320_v26, %v5456_v41  ;;  %v5793_v39 = vrot.slane %v1269_v27, %v5474_v50  ;;  %v1335_v46 = vrot.slane %v1321_v23, %v5456_v41  ;;  %v5802_v57 = vrot.slane %v1284_v40, %v5474_v50 }
 0x16d   : > { %v1463_v49 = vpop.permute.xlu1 %1462  ;;  %v1465_v51 = vpop.permute.xlu0 %1464  ;;  %v5812_v10 = vrot.slane %v1285_v61, %v5474_v50 }
 0x16e   : > { %1377 = vrot.lane.b32.xlu1 %v5793_v39, %s5187_s7  ;;  %v1337_v45 = vcombine.high %v5787_v25, %v5790_v29  ;;  %v1352_v47 = vcombine.low %v1319_v54, %v1335_v46  ;;  %v1353_v15 = vcombine.high %v1319_v54, %v1335_v46 }
 0x170   : > { %v5805_v60 = vrot.slane %v1337_v45, %v5474_v50  ;;  %v5815_v17 = vrot.slane %v1352_v47, %v5474_v50 }
 0x171   : > { %v1467_v62 = vpop.permute.xlu1 %1466  ;;  %v1469_v3 = vpop.permute.xlu0 %1468 }
 0x172   : > { %1385 = vrot.lane.b32.xlu1 %v5802_v57, %s5188_s16  ;;  %1405 = vrot.lane.b32.xlu0 %v5805_v60, %s5187_s7  ;;  %v1484_v7 = vcombine.low %v1461_v20, %v1469_v3  ;;  %v1485_v11 = vcombine.high %v1461_v20, %v1469_v3 }
 0x174   : > { %v5822_v27 = vrot.slane %v1484_v7, %v5456_v41  ;;  %v1499_v40 = vrot.slane %v1485_v11, %v5456_v41 }
 0x175   : > { %v1471_v59 = vpop.permute.xlu1 %1470  ;;  %v1473_v5 = vpop.permute.xlu0 %1472 }
 0x176   : > { %v1500_v24 = vcombine.low %v1465_v51, %v1473_v5  ;;  %v1501_v26 = vcombine.high %v1465_v51, %v1473_v5  ;;  %1393 = vrot.lane.b32.xlu1 %v5812_v10, %s5189_s17  ;;  %v1552_v23 = vcombine.low %v1463_v49, %v1471_v59  ;;  %1413 = vrot.lane.b32.xlu0 %v5815_v17, %s5188_s16 }
 0x177   : > { %v5832_v51 = vrot.slane %v1353_v15, %v5474_v50  ;;  %v1553_v54 = vcombine.high %v1463_v49, %v1471_v59 }
 0x178   : > { %v5825_v20 = vrot.slane %v1500_v24, %v5456_v41  ;;  %v1515_v30 = vrot.slane %v1501_v26, %v5456_v41  ;;  %v5837_v7 = vrot.slane %v1552_v23, %v5456_v41  ;;  %v612_v23 = vcombine.low %v5687_v55, %v5690_v56 }
 0x179   : > { %v1475_v46 = vpop.permute.xlu1 %1474  ;;  %v5829_v45 = vpop.permute.xlu0 %426  ;;  %v1567_v24 = vrot.slane %v1553_v54, %v5456_v41  ;;  %v544_v55 = vcombine.low %v5672_v37, %v5675_v43  ;;  %v8003_v37 = vmov 0.0  }
 0x17a   : > { %v1568_v61 = vcombine.low %v1467_v62, %v1475_v46  ;;  %v1569_v3 = vcombine.high %v1467_v62, %v1475_v46  ;;  %v1517_v47 = vcombine.high %v5822_v27, %v5825_v20  ;;  %1421 = vrot.lane.b32.xlu0 %v5832_v51, %s5189_s17  ;;  %v1532_v49 = vcombine.low %v1499_v40, %v1515_v30 }
 0x17c   : > { %v5842_v11 = vrot.slane %v1568_v61, %v5456_v41  ;;  %v1583_v5 = vrot.slane %v1569_v3, %v5456_v41  ;;  %v5846_v15 = vrot.slane %v1517_v47, %v5474_v50  ;;  %v5858_v46 = vrot.slane %v1532_v49, %v5474_v50 }
 0x17d   : > { %v5848_v59 = vpop.permute.xlu0 %434  ;;  %v399_v62 = vpop.permute.xlu1 %398  ;;  %v1533_v3 = vcombine.high %v1499_v40, %v1515_v30  ;;  %v5878_v30 = vrot.slane %v612_v23, %v5474_v50 }
 0x17e   : > { %1625 = vrot.lane.b32.xlu1 %v5846_v15, %s5187_s7  ;;  %v1585_v26 = vcombine.high %v5837_v7, %v5842_v11  ;;  %v1600_v47 = vcombine.low %v1567_v24, %v1583_v5  ;;  %v1601_v40 = vcombine.high %v1567_v24, %v1583_v5  ;;  %v645_v24 = vcombine.high %v5702_v44, %v8003_v37 }
 0x17f   : > { %v5872_v56 = vrot.slane %v1533_v3, %v5474_v50  ;;  %8002 = vst [vmem:[#allocation16_spill] sm:$0xff] %v5878_v30  ;;  %v644_v43 = vcombine.high %v5878_v30, %v8003_v37  ;;  %v866_v44 = vcombine.low %v5737_v35, %v5740_v36 }
 0x180   : > { %v5861_v61 = vrot.slane %v1585_v26, %v5474_v50  ;;  %v5875_v49 = vrot.slane %v1600_v47, %v5474_v50  ;;  %v5889_v3 = vrot.slane %v1601_v40, %v5474_v50  ;;  %v5892_v47 = vrot.slane %v544_v55, %v5474_v50 }
 0x181   : > { %v5863_v32 = vpop.permute.xlu0 %442  ;;  %v407_v54 = vpop.permute.xlu1 %406  ;;  %v577_v55 = vcombine.high %v5694_v58, %v8003_v37  ;;  %v798_v58 = vcombine.low %v5725_v19, %v5728_v21  ;;  %v5930_v35 = vrot.slane %v866_v44, %v5474_v50 }
 0x182   : > { %1633 = vrot.lane.b32.xlu1 %v5858_v46, %s5188_s16  ;;  %1653 = vrot.lane.b32.xlu0 %v5861_v61, %s5187_s7  ;;  %8004 = vst [vmem:[#allocation17_spill] sm:$0xff] %v5892_v47  ;;  %v576_v16 = vcombine.high %v5892_v47, %v8003_v37 }
 0x183   : > { %v5943_v19 = vrot.slane %v798_v58, %v5474_v50 }
 0x185   : > { %v5880_v26 = vpop.permute.xlu0 %1151  ;;  %v415_v0 = vpop.permute.xlu1 %414 }
 0x186   : > { %1641 = vrot.lane.b32.xlu1 %v5872_v56, %s5189_s17  ;;  %1661 = vrot.lane.b32.xlu0 %v5875_v49, %s5188_s16 }
 0x189   : > { %v5894_v23 = vpop.permute.xlu0 %1159  ;;  %v5896_v5 = vpop.permute.xlu1 %1123 }
 0x18a   : > { %677 = vrot.lane.b32.xlu1 %v644_v43, %s5190_s26  ;;  %1669 = vrot.lane.b32.xlu0 %v5889_v3, %s5189_s17  ;;  %v646_v43 = vcombine.high %v5712_v12, %v8003_v37  ;;  %v647_v12 = vcombine.high %v5722_v18, %v8003_v37  ;;  %v898_v18 = vcombine.high %v5930_v35, %v8003_v37 }
 0x18d   : > { %v5905_v40 = vpop.permute.xlu0 %1167  ;;  %v5907_v30 = vpop.permute.xlu1 %1131 }
 0x18e   : > { %685 = vrot.lane.b32.xlu1 %v645_v24, %s5191_s29  ;;  %649 = vrot.lane.b32.xlu0 %v576_v16, %s5190_s26  ;;  %v578_v16 = vcombine.high %v5705_v8, %v8003_v37  ;;  %v579_v8 = vcombine.high %v5715_v2, %v8003_v37  ;;  %v899_v2 = vcombine.high %v5755_v53, %v8003_v37 }
 0x18f   : > { %v831_v53 = vcombine.high %v5743_v34, %v8003_v37  ;;  %v832_v34 = vcombine.high %v5752_v52, %v8003_v37 }
 0x191   : > { %v5917_v28 = vpop.permute.xlu1 %1139  ;;  %v395_v47 = vpop.permute.xlu0 %394 }
 0x192   : > { %v450_v33 = vsel %vm449_vm3, %v5577_v42, %v395_v47  ;;  %693 = vrot.lane.b32.xlu1 %v646_v43, %s5192_s30  ;;  %657 = vrot.lane.b32.xlu0 %v577_v55, %s5191_s29  ;;  %v830_v43 = vcombine.high %v5943_v19, %v8003_v37 }
 0x193   : > { %v452_v42 = vsel %vm451_vm4, %v450_v33, %v399_v62 }
 0x195   : > { %v5932_v36 = vpop.permute.xlu1 %1847  ;;  %v403_v47 = vpop.permute.xlu0 %402 }
 0x196   : > { %v454_v24 = vsel %vm453_vm5, %v452_v42, %v403_v47  ;;  %701 = vrot.lane.b32.xlu1 %v647_v12, %s5193_s27  ;;  %665 = vrot.lane.b32.xlu0 %v578_v16, %s5192_s30  ;;  %v900_v42 = vcombine.high %v5765_v6, %v8003_v37  ;;  %v1268_v6 = vcombine.low %v5772_v14, %v5775_v9 }
 0x197   : > { %v456_v33 = vsel %vm455_vm6, %v454_v24, %v407_v54  ;;  %v833_v14 = vcombine.high %v5762_v63, %v8003_v37  ;;  %v1369_v63 = vcombine.high %v5805_v60, %v8003_v37  ;;  %v1301_v60 = vcombine.high %v5793_v39, %v8003_v37 }
 0x198   : > { %v1302_v39 = vcombine.high %v5802_v57, %v8003_v37  ;;  %v6046_v57 = vld [vmem:[#allocation2 + $0x22] sm:$0xff] }
 0x199   : > { %v5945_v21 = vpop.permute.xlu1 %1855  ;;  %v411_v62 = vpop.permute.xlu0 %410 }
 0x19a   : > { %v458_v55 = vsel %vm457_vm7, %v456_v33, %v411_v62  ;;  %931 = vrot.lane.b32.xlu1 %v898_v18, %s5190_s26  ;;  %673 = vrot.lane.b32.xlu0 %v579_v8, %s5193_s27 }
 0x19b   : > { %v460_v16 = vsel %vm459_vm8, %v458_v55, %v415_v0  ;;  %v1336_v0 = vcombine.low %v5787_v25, %v5790_v29  ;;  %v901_v25 = vcombine.high %v5779_v22, %v8003_v37  ;;  %v5996_v22 = vrot.slane %v1268_v6, %v5474_v50 }
 0x19d   : > { %v423_v44 = vpop.permute.xlu1 %422  ;;  %v419_v58 = vpop.permute.xlu0 %418  ;;  %v5981_v29 = vrot.slane %v1336_v0, %v5474_v50  ;;  %v1370_v0 = vcombine.high %v5815_v17, %v8003_v37  ;;  %v1516_v17 = vcombine.low %v5822_v27, %v5825_v20  ;;  %v6048_v27 = vld [vmem:[#allocation2 + $0x3a] sm:$0xff]  ;;  %v1303_v20 = vcombine.high %v5812_v10, %v8003_v37 }
 0x19e   : > { %v463_v54 = vsel %vm449_vm3, %v5611_v1, %v423_v44  ;;  %v462_v12 = vsel %vm461_vm9, %v460_v16, %v419_v58  ;;  %939 = vrot.lane.b32.xlu1 %v899_v2, %s5191_s29  ;;  %903 = vrot.lane.b32.xlu0 %v830_v43, %s5190_s26 }
 0x19f   : > { %470 = vst [vmem:[#allocation3] sm:$0xf] %v462_v12  ;;  %v464_v47 = vsel %vm451_vm4, %v463_v54, %v5829_v45  ;;  %v1368_v9 = vcombine.high %v5981_v29, %v8003_v37 }
 0x1a1   : > { %v431_v1 = vpop.permute.xlu1 %430  ;;  %v1120_v24 = vpop.permute.xlu0 %1119 }
 0x1a2   : > { %v465_v8 = vsel %vm453_vm5, %v464_v47, %v431_v1  ;;  %v1174_v18 = vsel %vm449_vm3, %v5620_v4, %v1120_v24  ;;  %947 = vrot.lane.b32.xlu1 %v900_v42, %s5192_s30  ;;  %911 = vrot.lane.b32.xlu0 %v831_v53, %s5191_s29 }
 0x1a3   : > { %v466_v45 = vsel %vm455_vm6, %v465_v8, %v5848_v59  ;;  %v1175_v33 = vsel %vm451_vm4, %v1174_v18, %v5896_v5  ;;  %v6041_v18 = vld [vmem:[#allocation2 + $0x52] sm:$0xff] }
 0x1a4   : > { %v1790_v6 = vcombine.low %v6046_v57, %v6041_v18 }
 0x1a5   : > { %v439_v4 = vpop.permute.xlu1 %438  ;;  %v1128_v62 = vpop.permute.xlu0 %1127 }
 0x1a6   : > { %v467_v55 = vsel %vm457_vm7, %v466_v45, %v439_v4  ;;  %v1176_v52 = vsel %vm453_vm5, %v1175_v33, %v1128_v62  ;;  %955 = vrot.lane.b32.xlu1 %v901_v25, %s5193_s27  ;;  %919 = vrot.lane.b32.xlu0 %v832_v34, %s5192_s30  ;;  %v6061_v4 = vld [vmem:[#allocation2 + $0xa] sm:$0xff] }
 0x1a7   : > { %v468_v59 = vsel %vm459_vm8, %v467_v55, %v5863_v32  ;;  %v1177_v2 = vsel %vm455_vm6, %v1176_v52, %v5907_v30  ;;  %v1300_v32 = vcombine.high %v5996_v22, %v8003_v37  ;;  %v1774_v10 = vcombine.low %v6061_v4, %v6048_v27 }
 0x1a8   : > { %v1617_v52 = vcombine.high %v5861_v61, %v8003_v37  ;;  %v1549_v61 = vcombine.high %v5846_v15, %v8003_v37  ;;  %v1550_v15 = vcombine.high %v5858_v46, %v8003_v37 }
 0x1a9   : > { %v447_v5 = vpop.permute.xlu1 %446  ;;  %v1136_v43 = vpop.permute.xlu0 %1135 }
 0x1aa   : > { %v469_v44 = vsel %vm461_vm9, %v468_v59, %v447_v5  ;;  %v1178_v16 = vsel %vm457_vm7, %v1177_v2, %v1136_v43  ;;  %1401 = vrot.lane.b32.xlu1 %v1368_v9, %s5190_s26  ;;  %927 = vrot.lane.b32.xlu0 %v833_v14, %s5193_s27  ;;  %v1798_v14 = vrot.slane %v1790_v6, %v5456_v41 }
 0x1ab   : > { %471 = vst [vmem:[#allocation3 + $0x8] sm:$0xf] %v469_v44  ;;  %v1179_v30 = vsel %vm459_vm8, %v1178_v16, %v5917_v28  ;;  %v1584_v28 = vcombine.low %v5837_v7, %v5842_v11  ;;  %v1371_v7 = vcombine.high %v5832_v51, %v8003_v37  ;;  %v1782_v59 = vrot.slane %v1774_v10, %v5456_v41  ;;  %v8005_v10 = vld [vmem:[#allocation14_spill] sm:$0xff] }
 0x1ac   : > { %v1791_v5 = vcombine.high %v6046_v57, %v6041_v18  ;;  %v1618_v2 = vcombine.high %v5875_v49, %v8003_v37  ;;  %v1619_v49 = vcombine.high %v5889_v3, %v8003_v37 }
 0x1ad   : > { %v1148_v58 = vpop.permute.xlu1 %1147  ;;  %v1144_v54 = vpop.permute.xlu0 %1143  ;;  %v1806_v44 = vcombine.low %v1782_v59, %v1798_v14 }
 0x1ae   : > { %v1181_v12 = vsel %vm449_vm3, %v5641_v13, %v1148_v58  ;;  %v1180_v53 = vsel %vm461_vm9, %v1179_v30, %v1144_v54  ;;  %1409 = vrot.lane.b32.xlu1 %v1369_v63, %s5191_s29  ;;  %1373 = vrot.lane.b32.xlu0 %v1300_v32, %s5190_s26  ;;  %v1775_v63 = vcombine.high %v6061_v4, %v6048_v27 }
 0x1af   : > { %v1190_v42 = vrot.slane %v1180_v53, 4  ;;  %v1182_v13 = vsel %vm451_vm4, %v1181_v12, %v5880_v26  ;;  %v6037_v26 = vrot.slane %v1584_v28, %v5474_v50  ;;  %v1805_v32 = vrot.slane %v1791_v5, %v5456_v41 }
 0x1b0   : > { %v6100_v30 = vrot.slane %v1806_v44, %v5474_v50  ;;  %v1807_v54 = vcombine.high %v1782_v59, %v1798_v14  ;;  %v1789_v53 = vrot.slane %v1775_v63, %v5456_v41  ;;  %v1773_v28 = vcombine.high %v5679_v48, %v8003_v37  ;;  %v8007_v63 = vld [vmem:[#allocation16_spill] sm:$0xff] }
 0x1b1   : > { %1194 = vst [vmem:[#allocation3 + $0x10] sm:$0xf0] %v1190_v42  ;;  %v1156_v47 = vpop.permute.xlu1 %1155  ;;  %v6034_v11 = vpop.permute.xlu0 %1843  ;;  %v1616_v51 = vcombine.high %v6037_v26, %v8003_v37  ;;  %v1551_v42 = vcombine.high %v5872_v56, %v8003_v37 }
 0x1b2   : > { %v1183_v1 = vsel %vm453_vm5, %v1182_v13, %v1156_v47  ;;  %1417 = vrot.lane.b32.xlu1 %v1370_v0, %s5192_s30  ;;  %1381 = vrot.lane.b32.xlu0 %v1301_v60, %s5191_s29  ;;  %v1838_v46 = vcombine.high %v6100_v30, %v8003_v37  ;;  %v1821_v3 = vrot.slane %v1807_v54, %v5474_v50 }
 0x1b3   : > { %v1184_v24 = vsel %vm455_vm6, %v1183_v1, %v5894_v23  ;;  %v6055_v23 = vrot.slane %v1516_v17, %v5474_v50  ;;  %v1822_v60 = vcombine.low %v1789_v53, %v1805_v32  ;;  %v1823_v1 = vcombine.high %v1789_v53, %v1805_v32 }
 0x1b4   : > { %v1839_v47 = vcombine.high %v1821_v3, %v8003_v37 }
 0x1b5   : > { %v1164_v8 = vpop.permute.xlu1 %1163  ;;  %v6063_v33 = vpop.permute.xlu0 %1851  ;;  %v1830_v56 = vrot.slane %v1822_v60, %v5474_v50 }
 0x1b6   : > { %v1185_v34 = vsel %vm457_vm7, %v1184_v24, %v1164_v8  ;;  %1425 = vrot.lane.b32.xlu1 %v1371_v7, %s5193_s27  ;;  %1389 = vrot.lane.b32.xlu0 %v1302_v39, %s5192_s30  ;;  %v1837_v24 = vrot.slane %v1823_v1, %v5474_v50 }
 0x1b7   : > { %v1186_v25 = vsel %vm459_vm8, %v1185_v34, %v5905_v40  ;;  %v1548_v40 = vcombine.high %v6055_v23, %v8003_v37  ;;  %v1840_v7 = vcombine.high %v1830_v56, %v8003_v37 }
 0x1b8   : > { %v1841_v8 = vcombine.high %v1837_v24, %v8003_v37 }
 0x1b9   : > { %v1172_v45 = vpop.permute.xlu1 %1171  ;;  %v6086_v43 = vpop.permute.xlu0 %1859 }
 0x1ba   : > { %v1187_v62 = vsel %vm461_vm9, %v1186_v25, %v1172_v45  ;;  %1649 = vrot.lane.b32.xlu1 %v1616_v51, %s5190_s26  ;;  %1397 = vrot.lane.b32.xlu0 %v1303_v20, %s5193_s27 }
 0x1bb   : > { %v1191_v55 = vrot.slane %v1187_v62, 4 }
 0x1bd   : > { %1195 = vst [vmem:[#allocation3 + $0x18] sm:$0xf0] %v1191_v55  ;;  %v6075_v9 = vpop.permute.xlu1 %1863  ;;  %v8006_v55 = vld [vmem:[#allocation13_spill] sm:$0xff] }
 0x1be   : > { %1657 = vrot.lane.b32.xlu1 %v1617_v52, %s5191_s29  ;;  %1621 = vrot.lane.b32.xlu0 %v1548_v40, %s5190_s26 }
 0x1c1   : > { %v6088_v16 = vpop.permute.xlu1 %653 }
 0x1c2   : > { %1665 = vrot.lane.b32.xlu1 %v1618_v2, %s5192_s30  ;;  %1629 = vrot.lane.b32.xlu0 %v1549_v61, %s5191_s29 }
 0x1c4   : > { %v682_v58 = vpop.permute.xlu0 %681 }
 0x1c5   : > { %v6102_v12 = vpop.permute.xlu1 %661 }
 0x1c6   : > { %1673 = vrot.lane.b32.xlu1 %v1619_v49, %s5193_s27  ;;  %1637 = vrot.lane.b32.xlu0 %v1550_v15, %s5192_s30 }
 0x1c8   : > { %v690_v0 = vpop.permute.xlu0 %689 }
 0x1c9   : > { %v6116_v13 = vpop.permute.xlu1 %669 }
 0x1ca   : > { %1871 = vrot.lane.b32.xlu1 %v1838_v46, %s5190_s26  ;;  %1645 = vrot.lane.b32.xlu0 %v1551_v42, %s5193_s27  ;;  %v8008_v42 = vld [vmem:[#allocation17_spill] sm:$0xff] }
 0x1cc   : > { %v698_v39 = vpop.permute.xlu0 %697 }
 0x1ce   : > { %1879 = vrot.lane.b32.xlu1 %v1839_v47, %s5191_s29  ;;  %1867 = vrot.lane.b32.xlu0 %v1773_v28, %s5193_s27 }
 0x1d0   : > { %v6122_v17 = vpop.permute.xlu1 %907 }
 0x1d2   : > { %1887 = vrot.lane.b32.xlu1 %v1840_v7, %s5192_s30  ;;  %1875 = vrot.lane.b32.xlu0 %v1821_v3, %s5187_s7 }
 0x1d4   : > { %v936_v48 = vpop.permute.xlu0 %935  ;;  %v6129_v34 = vpop.permute.xlu1 %915 }
 0x1d6   : > { %1895 = vrot.lane.b32.xlu1 %v1841_v8, %s5193_s27  ;;  %1883 = vrot.lane.b32.xlu0 %v1830_v56, %s5188_s16 }
 0x1d8   : > { %v944_v20 = vpop.permute.xlu0 %943  ;;  %v6136_v51 = vpop.permute.xlu1 %923 }
 0x1da   : > { %1932 = vrot.lane.b32.xlu1 %v6061_v4, %s5183_s23  ;;  %1891 = vrot.lane.b32.xlu0 %v1837_v24, %s5189_s17 }
 0x1dc   : > { %v952_v6 = vpop.permute.xlu0 %951 }
 0x1de   : > { %1936 = vrot.lane.b32.xlu1 %v6046_v57, %s5183_s23  ;;  %1930 = vrot.lane.b32.xlu0 %v5566_v38, %s5183_s23 }
 0x1e0   : > { %v6142_v25 = vpop.permute.xlu1 %1377 }
 0x1e2   : > { %1940 = vrot.lane.b32.xlu1 %v6048_v27, %s5183_s23  ;;  %1934 = vrot.lane.b32.xlu0 %v5556_v31, %s5183_s23 }
 0x1e4   : > { %v6148_v45 = vpop.permute.xlu0 %1405  ;;  %v6150_v62 = vpop.permute.xlu1 %1385 }
 0x1e6   : > { %1944 = vrot.lane.b32.xlu1 %v6041_v18, %s5183_s23  ;;  %1938 = vrot.lane.b32.xlu0 %v8005_v10, %s5183_s23 }
 0x1e8   : > { %v6156_v38 = vpop.permute.xlu0 %1413  ;;  %v6160_v52 = vpop.permute.xlu1 %1393 }
 0x1ea   : > { %1942 = vrot.lane.b32.xlu0 %v8006_v55, %s5183_s23 }
 0x1ec   : > { %v6162_v40 = vpop.permute.xlu0 %1421 }
 0x1f0   : > { %v6164_v31 = vpop.permute.xlu1 %1625 }
 0x1f4   : > { %v6166_v14 = vpop.permute.xlu1 %1633  ;;  %v6168_v59 = vpop.permute.xlu0 %1653 }
 0x1f8   : > { %v6170_v5 = vpop.permute.xlu1 %1641  ;;  %v6172_v61 = vpop.permute.xlu0 %1661 }
 0x1fc   : > { %v678_v2 = vpop.permute.xlu1 %677  ;;  %v6174_v44 = vpop.permute.xlu0 %1669 }
 0x1fd   : > { %v711_v32 = vsel %vm449_vm3, %v8007_v63, %v678_v2 }
 0x1fe   : > { %v712_v49 = vsel %vm451_vm4, %v711_v32, %v682_v58 }
 0x200   : > { %v686_v15 = vpop.permute.xlu1 %685  ;;  %v650_v54 = vpop.permute.xlu0 %649 }
 0x201   : > { %v713_v53 = vsel %vm453_vm5, %v712_v49, %v686_v15  ;;  %v704_v46 = vsel %vm449_vm3, %v8008_v42, %v650_v54 }
 0x202   : > { %v714_v60 = vsel %vm455_vm6, %v713_v53, %v690_v0  ;;  %v705_v28 = vsel %vm451_vm4, %v704_v46, %v6088_v16 }
 0x204   : > { %v694_v3 = vpop.permute.xlu1 %693  ;;  %v658_v47 = vpop.permute.xlu0 %657 }
 0x205   : > { %v715_v56 = vsel %vm457_vm7, %v714_v60, %v694_v3  ;;  %v706_v1 = vsel %vm453_vm5, %v705_v28, %v658_v47 }
 0x206   : > { %v716_v58 = vsel %vm459_vm8, %v715_v56, %v698_v39  ;;  %v707_v24 = vsel %vm455_vm6, %v706_v1, %v6102_v12 }
 0x208   : > { %v702_v7 = vpop.permute.xlu1 %701  ;;  %v666_v8 = vpop.permute.xlu0 %665 }
 0x209   : > { %v717_v10 = vsel %vm461_vm9, %v716_v58, %v702_v7  ;;  %v708_v55 = vsel %vm457_vm7, %v707_v24, %v666_v8 }
 0x20a   : > { %v721_v0 = vrot.slane %v717_v10, 4  ;;  %v709_v16 = vsel %vm459_vm8, %v708_v55, %v6116_v13 }
 0x20c   : > { %725 = vst [vmem:[#allocation3 + $0x8] sm:$0xf0] %v721_v0  ;;  %v932_v2 = vpop.permute.xlu1 %931  ;;  %v674_v63 = vpop.permute.xlu0 %673 }
 0x20d   : > { %v965_v32 = vsel %vm449_vm3, %v5930_v35, %v932_v2  ;;  %v710_v39 = vsel %vm461_vm9, %v709_v16, %v674_v63 }
 0x20e   : > { %v720_v15 = vrot.slane %v710_v39, 4  ;;  %v966_v49 = vsel %vm451_vm4, %v965_v32, %v936_v48 }
 0x210   : > { %724 = vst [vmem:[#allocation3] sm:$0xf0] %v720_v15  ;;  %v940_v12 = vpop.permute.xlu1 %939  ;;  %v904_v54 = vpop.permute.xlu0 %903 }
 0x211   : > { %v967_v53 = vsel %vm453_vm5, %v966_v49, %v940_v12  ;;  %v958_v42 = vsel %vm449_vm3, %v5943_v19, %v904_v54 }
 0x212   : > { %v968_v13 = vsel %vm455_vm6, %v967_v53, %v944_v20  ;;  %v959_v3 = vsel %vm451_vm4, %v958_v42, %v6122_v17 }
 0x214   : > { %v948_v46 = vpop.permute.xlu1 %947  ;;  %v912_v35 = vpop.permute.xlu0 %911 }
 0x215   : > { %v969_v60 = vsel %vm457_vm7, %v968_v13, %v948_v46  ;;  %v960_v28 = vsel %vm453_vm5, %v959_v3, %v912_v35 }
 0x216   : > { %v970_v48 = vsel %vm459_vm8, %v969_v60, %v952_v6  ;;  %v961_v56 = vsel %vm455_vm6, %v960_v28, %v6129_v34 }
 0x218   : > { %v956_v47 = vpop.permute.xlu1 %955  ;;  %v920_v1 = vpop.permute.xlu0 %919 }
 0x219   : > { %v971_v19 = vsel %vm461_vm9, %v970_v48, %v956_v47  ;;  %v962_v7 = vsel %vm457_vm7, %v961_v56, %v920_v1 }
 0x21a   : > { %973 = vst [vmem:[#allocation3 + $0x18] sm:$0xf] %v971_v19  ;;  %v963_v17 = vsel %vm459_vm8, %v962_v7, %v6136_v51 }
 0x21c   : > { %v1402_v20 = vpop.permute.xlu1 %1401  ;;  %v928_v58 = vpop.permute.xlu0 %927 }
 0x21d   : > { %v1435_v24 = vsel %vm449_vm3, %v5981_v29, %v1402_v20  ;;  %v964_v8 = vsel %vm461_vm9, %v963_v17, %v928_v58 }
 0x21e   : > { %972 = vst [vmem:[#allocation3 + $0x10] sm:$0xf] %v964_v8  ;;  %v1436_v34 = vsel %vm451_vm4, %v1435_v24, %v6148_v45 }
 0x220   : > { %v1410_v6 = vpop.permute.xlu1 %1409  ;;  %v1374_v10 = vpop.permute.xlu0 %1373 }
 0x221   : > { %v1437_v55 = vsel %vm453_vm5, %v1436_v34, %v1410_v6  ;;  %v1428_v0 = vsel %vm449_vm3, %v5996_v22, %v1374_v10 }
 0x222   : > { %v1438_v51 = vsel %vm455_vm6, %v1437_v55, %v6156_v38  ;;  %v1429_v29 = vsel %vm451_vm4, %v1428_v0, %v6142_v25 }
 0x224   : > { %v1418_v2 = vpop.permute.xlu1 %1417  ;;  %v1382_v16 = vpop.permute.xlu0 %1381 }
 0x225   : > { %v1439_v63 = vsel %vm457_vm7, %v1438_v51, %v1418_v2  ;;  %v1430_v32 = vsel %vm453_vm5, %v1429_v29, %v1382_v16 }
 0x226   : > { %v1440_v45 = vsel %vm459_vm8, %v1439_v63, %v6162_v40  ;;  %v1431_v15 = vsel %vm455_vm6, %v1430_v32, %v6150_v62 }
 0x228   : > { %v1426_v39 = vpop.permute.xlu1 %1425  ;;  %v1390_v22 = vpop.permute.xlu0 %1389 }
 0x229   : > { %v1441_v12 = vsel %vm461_vm9, %v1440_v45, %v1426_v39  ;;  %v1432_v38 = vsel %vm457_vm7, %v1431_v15, %v1390_v22 }
 0x22a   : > { %1443 = vst [vmem:[#allocation3 + $0x28] sm:$0xf] %v1441_v12  ;;  %v1433_v25 = vsel %vm459_vm8, %v1432_v38, %v6160_v52 }
 0x22c   : > { %v1650_v49 = vpop.permute.xlu1 %1649  ;;  %v1398_v54 = vpop.permute.xlu0 %1397 }
 0x22d   : > { %v1683_v53 = vsel %vm449_vm3, %v6037_v26, %v1650_v49  ;;  %v1434_v42 = vsel %vm461_vm9, %v1433_v25, %v1398_v54 }
 0x22e   : > { %1442 = vst [vmem:[#allocation3 + $0x20] sm:$0xf] %v1434_v42  ;;  %v1684_v62 = vsel %vm451_vm4, %v1683_v53, %v6168_v59  ;;  %v8009_v59 = vld [vmem:[#allocation15_spill] sm:$0xff] }
 0x22f   : > { %v1898_v48 = vsel %vm449_vm3, %v8009_v59, %v6034_v11 }
 0x230   : > { %v1658_v40 = vpop.permute.xlu1 %1657  ;;  %v1622_v46 = vpop.permute.xlu0 %1621  ;;  %v1899_v7 = vsel %vm451_vm4, %v1898_v48, %v5932_v36 }
 0x231   : > { %v1685_v13 = vsel %vm453_vm5, %v1684_v62, %v1658_v40  ;;  %v1676_v3 = vsel %vm449_vm3, %v6055_v23, %v1622_v46  ;;  %v1900_v17 = vsel %vm453_vm5, %v1899_v7, %v6063_v33 }
 0x232   : > { %v1686_v52 = vsel %vm455_vm6, %v1685_v13, %v6172_v61  ;;  %v1677_v26 = vsel %vm451_vm4, %v1676_v3, %v6164_v31  ;;  %v1901_v24 = vsel %vm455_vm6, %v1900_v17, %v5945_v21 }
 0x233   : > { %v1902_v6 = vsel %vm457_vm7, %v1901_v24, %v6086_v43 }
 0x234   : > { %v1666_v35 = vpop.permute.xlu1 %1665  ;;  %v1630_v60 = vpop.permute.xlu0 %1629  ;;  %v1903_v36 = vsel %vm459_vm8, %v1902_v6, %v6075_v9 }
 0x235   : > { %v1687_v28 = vsel %vm457_vm7, %v1686_v52, %v1666_v35  ;;  %v1678_v47 = vsel %vm453_vm5, %v1677_v26, %v1630_v60 }
 0x236   : > { %v1688_v23 = vsel %vm459_vm8, %v1687_v28, %v6174_v44  ;;  %v1679_v1 = vsel %vm455_vm6, %v1678_v47, %v6166_v14 }
 0x238   : > { %v1674_v56 = vpop.permute.xlu1 %1673  ;;  %v1638_v61 = vpop.permute.xlu0 %1637 }
 0x239   : > { %v1689_v19 = vsel %vm461_vm9, %v1688_v23, %v1674_v56  ;;  %v1680_v31 = vsel %vm457_vm7, %v1679_v1, %v1638_v61 }
 0x23a   : > { %v1693_v20 = vrot.slane %v1689_v19, 4  ;;  %v1681_v44 = vsel %vm459_vm8, %v1680_v31, %v6170_v5 }
 0x23c   : > { %1697 = vst [vmem:[#allocation3 + $0x28] sm:$0xf0] %v1693_v20  ;;  %v1872_v11 = vpop.permute.xlu1 %1871  ;;  %v1646_v58 = vpop.permute.xlu0 %1645 }
 0x23d   : > { %v1682_v14 = vsel %vm461_vm9, %v1681_v44, %v1646_v58  ;;  %v1905_v5 = vsel %vm449_vm3, %v6100_v30, %v1872_v11 }
 0x23e   : > { %v1692_v8 = vrot.slane %v1682_v14, 4 }
 0x240   : > { %1696 = vst [vmem:[#allocation3 + $0x20] sm:$0xf0] %v1692_v8  ;;  %v1880_v33 = vpop.permute.xlu1 %1879  ;;  %v1868_v34 = vpop.permute.xlu0 %1867 }
 0x241   : > { %v1904_v10 = vsel %vm461_vm9, %v1903_v36, %v1868_v34 }
 0x242   : > { %1912 = vst [vmem:[#allocation3 + $0x30] sm:$0xf] %v1904_v10 }
 0x244   : > { %v1888_v55 = vpop.permute.xlu1 %1887  ;;  %v1876_v0 = vpop.permute.xlu0 %1875 }
 0x245   : > { %v1906_v21 = vsel %vm451_vm4, %v1905_v5, %v1876_v0  ;;  %v4925_v5 = vld [vmem:[%s5336_s25 + $0x58] sm:$0xff] }
 0x246   : > { %v1907_v51 = vsel %vm453_vm5, %v1906_v21, %v1880_v33  ;;  %v4929_v0 = vld [vmem:[%s5336_s25 + $0x78] sm:$0xff]  ;;  %v4927_v21 = vld [vmem:[%s5336_s25 + $0x68] sm:$0xff] }
 0x248   : > { %v1896_v2 = vpop.permute.xlu1 %1895  ;;  %v1884_v43 = vpop.permute.xlu0 %1883 }
 0x249   : > { %v1908_v29 = vsel %vm455_vm6, %v1907_v51, %v1884_v43  ;;  %v4922_v43 = vld [vmem:[%s5336_s25 + $0x40] sm:$0xff] }
 0x24a   : > { %v1909_v16 = vsel %vm457_vm7, %v1908_v29, %v1888_v55  ;;  %v4923_v55 = vld [vmem:[%s5336_s25 + $0x48] sm:$0xff]  ;;  %v4928_v29 = vld [vmem:[%s5336_s25 + $0x70] sm:$0xff] }
 0x24c   : > { %v1933_v9 = vpop.permute.xlu1 %1932  ;;  %v1892_v63 = vpop.permute.xlu0 %1891 }
 0x24d   : > { %v1910_v32 = vsel %vm459_vm8, %v1909_v16, %v1892_v63  ;;  %v4926_v16 = vld [vmem:[%s5336_s25 + $0x60] sm:$0xff] }
 0x24e   : > { %v1911_v39 = vsel %vm461_vm9, %v1910_v32, %v1896_v2  ;;  %v4924_v2 = vld [vmem:[%s5336_s25 + $0x50] sm:$0xff]  ;;  %s4810_s25 = scalar_lea.sflag [#allocation6], %s5332_s14 }
 0x24f   : > { %1913 = vst [vmem:[#allocation3 + $0x38] sm:$0xf] %v1911_v39  ;;  %v2168_v32 = vld [vmem:[#allocation2 + $0x2] sm:$0xff]  ;;  %v2170_v39 = vld [vmem:[#allocation2 + $0x1a] sm:$0xff] }
 0x250   : > { %v1931_v30 = vpop.permute.xlu0 %1930  ;;  %v1937_v45 = vpop.permute.xlu1 %1936 }
 0x254   : > { %v1935_v15 = vpop.permute.xlu0 %1934  ;;  %v1941_v22 = vpop.permute.xlu1 %1940 }
 0x255   : > { %v2022_v3 = vcombine.low %v1933_v9, %v1941_v22  ;;  %v2023_v31 = vcombine.high %v1933_v9, %v1941_v22 }
 0x257   : > { %v2030_v48 = vrot.slane %v2022_v3, %v5456_v41  ;;  %v2037_v58 = vrot.slane %v2023_v31, %v5456_v41 }
 0x258   : > { %v1939_v12 = vpop.permute.xlu0 %1938  ;;  %v1945_v25 = vpop.permute.xlu1 %1944 }
 0x259   : > { %v1954_v38 = vcombine.low %v1931_v30, %v1939_v12  ;;  %v1955_v54 = vcombine.high %v1931_v30, %v1939_v12  ;;  %v2038_v40 = vcombine.low %v1937_v45, %v1945_v25  ;;  %v2039_v23 = vcombine.high %v1937_v45, %v1945_v25  ;;  %v2172_v30 = vld [vmem:[#allocation2 + $0x32] sm:$0xff]  ;;  %v2174_v45 = vld [vmem:[#allocation2 + $0x4a] sm:$0xff] }
 0x25b   : > { %v1962_v62 = vrot.slane %v1954_v38, %v5456_v41  ;;  %v1969_v35 = vrot.slane %v1955_v54, %v5456_v41  ;;  %v2046_v60 = vrot.slane %v2038_v40, %v5456_v41  ;;  %v2053_v20 = vrot.slane %v2039_v23, %v5456_v41 }
 0x25c   : > { %v1943_v49 = vpop.permute.xlu0 %1942 }
 0x25d   : > { %v1970_v53 = vcombine.low %v1935_v15, %v1943_v49  ;;  %v1971_v42 = vcombine.high %v1935_v15, %v1943_v49  ;;  %v2054_v1 = vcombine.low %v2030_v48, %v2046_v60  ;;  %v2055_v17 = vcombine.high %v2030_v48, %v2046_v60 }
 0x25e   : > { %v2070_v24 = vcombine.low %v2037_v58, %v2053_v20  ;;  %v2071_v51 = vcombine.high %v2037_v58, %v2053_v20 }
 0x25f   : > { %v1978_v46 = vrot.slane %v1970_v53, %v5456_v41  ;;  %v1985_v13 = vrot.slane %v1971_v42, %v5456_v41  ;;  %v6301_v44 = vrot.slane %v2054_v1, %v5474_v50  ;;  %v2069_v6 = vrot.slane %v2055_v17, %v5474_v50 }
 0x260   : > { %v2078_v34 = vrot.slane %v2070_v24, %v5474_v50  ;;  %v2085_v9 = vrot.slane %v2071_v51, %v5474_v50 }
 0x261   : > { %v1986_v52 = vcombine.low %v1962_v62, %v1978_v46  ;;  %v1987_v26 = vcombine.high %v1962_v62, %v1978_v46  ;;  %v2002_v28 = vcombine.low %v1969_v35, %v1985_v13  ;;  %v2003_v61 = vcombine.high %v1969_v35, %v1985_v13 }
 0x262   : > { %v2086_v8 = vcombine.high %v6301_v44, %v8003_v37  ;;  %v2087_v33 = vcombine.high %v2069_v6, %v8003_v37  ;;  %v2088_v10 = vcombine.high %v2078_v34, %v8003_v37  ;;  %v2089_v63 = vcombine.high %v2085_v9, %v8003_v37 }
 0x263   : > { %v2001_v47 = vrot.slane %v1987_v26, %v5474_v50  ;;  %v6287_v59 = vrot.slane %v1986_v52, %v5474_v50  ;;  %v2010_v19 = vrot.slane %v2002_v28, %v5474_v50  ;;  %v2017_v11 = vrot.slane %v2003_v61, %v5474_v50 }
 0x265   : > { %2095 = vrot.lane.b32.xlu1 %v2001_v47, %s5187_s7  ;;  %v2018_v56 = vcombine.high %v6287_v59, %v8003_v37  ;;  %v2019_v7 = vcombine.high %v2001_v47, %v8003_v37  ;;  %v2020_v14 = vcombine.high %v2010_v19, %v8003_v37  ;;  %v2021_v36 = vcombine.high %v2017_v11, %v8003_v37 }
 0x267   : > { %2091 = vrot.lane.b32.xlu0 %v2018_v56, %s5190_s26 }
 0x269   : > { %2103 = vrot.lane.b32.xlu1 %v2010_v19, %s5188_s16 }
 0x26b   : > { %2099 = vrot.lane.b32.xlu0 %v2019_v7, %s5191_s29 }
 0x26d   : > { %2111 = vrot.lane.b32.xlu1 %v2017_v11, %s5189_s17 }
 0x26f   : > { %2107 = vrot.lane.b32.xlu0 %v2020_v14, %s5192_s30 }
 0x271   : > { %2119 = vrot.lane.b32.xlu1 %v2086_v8, %s5190_s26 }
 0x273   : > { %2115 = vrot.lane.b32.xlu0 %v2021_v36, %s5193_s27 }
 0x275   : > { %2127 = vrot.lane.b32.xlu1 %v2087_v33, %s5191_s29 }
 0x277   : > { %2123 = vrot.lane.b32.xlu0 %v2069_v6, %s5187_s7 }
 0x279   : > { %2135 = vrot.lane.b32.xlu1 %v2088_v10, %s5192_s30 }
 0x27b   : > { %2131 = vrot.lane.b32.xlu0 %v2078_v34, %s5188_s16 }
 0x27d   : > { %2533 = vrot.lane.b32.xlu1 %v4925_v5, %s5182_s20 }
 0x27f   : > { %2529 = vrot.lane.b32.xlu0 %v4923_v55, %s5182_s20 }
 0x281   : > { %2541 = vrot.lane.b32.xlu1 %v4929_v0, %s5182_s20 }
 0x283   : > { %2537 = vrot.lane.b32.xlu0 %v4927_v21, %s5182_s20 }
 0x285   : > { %2531 = vrot.lane.b32.xlu1 %v4924_v2, %s5182_s20 }
 0x287   : > { %2527 = vrot.lane.b32.xlu0 %v4922_v43, %s5182_s20 }
 0x289   : > { %2539 = vrot.lane.b32.xlu1 %v4928_v29, %s5182_s20 }
 0x28b   : > { %2535 = vrot.lane.b32.xlu0 %v4926_v16, %s5182_s20  ;;  %s5107_s20 = scalar_lea.vmem %s7893_s5, 512 }
 0x28c   : > { %p5108_p12 = scmp.ne.s32.totalorder %s7893_s5, %s5107_s20 }
 0x28d   : > { %2143 = vrot.lane.b32.xlu1 %v2089_v63, %s5193_s27 }
 0x28e   : > { %p5109_p7 = pnand %p5108_p12, %p8088_p1 }
 0x28f   : > { %2139 = vrot.lane.b32.xlu0 %v2085_v9, %s5189_s17 }
 0x290   : > { %p5110_p8 = pneg %p5109_p7 }
 0x291   : > { %2186 = vrot.lane.b32.xlu1 %v6061_v4, %s5184_s28 }
 0x293   : > { %2184 = vrot.lane.b32.xlu0 %v2168_v32, %s5184_s28 }
 0x295   : > { %2190 = vrot.lane.b32.xlu1 %v6046_v57, %s5184_s28 }
 0x297   : > { %2188 = vrot.lane.b32.xlu0 %v2170_v39, %s5184_s28 }
 0x299   : > { %2194 = vrot.lane.b32.xlu1 %v6048_v27, %s5184_s28 }
 0x29b   : > { %2192 = vrot.lane.b32.xlu0 %v2172_v30, %s5184_s28 }
 0x29d   : > { %2198 = vrot.lane.b32.xlu1 %v6041_v18, %s5184_s28 }
 0x29f   : > { %2196 = vrot.lane.b32.xlu0 %v2174_v45, %s5184_s28 }
 0x2d7   : > { %v2096_v4 = vpop.permute.xlu1 %2095 }
 0x2d9   : > { %v2092_v15 = vpop.permute.xlu0 %2091 }
 0x2da   : > { %v2146_v57 = vsel %vm449_vm3, %v6287_v59, %v2092_v15 }
 0x2db   : > { %v2104_v22 = vpop.permute.xlu1 %2103  ;;  %v2147_v12 = vsel %vm451_vm4, %v2146_v57, %v2096_v4 }
 0x2dd   : > { %v2100_v38 = vpop.permute.xlu0 %2099 }
 0x2de   : > { %v2148_v27 = vsel %vm453_vm5, %v2147_v12, %v2100_v38 }
 0x2df   : > { %v2112_v49 = vpop.permute.xlu1 %2111  ;;  %v2149_v25 = vsel %vm455_vm6, %v2148_v27, %v2104_v22 }
 0x2e1   : > { %v2108_v54 = vpop.permute.xlu0 %2107 }
 0x2e2   : > { %v2150_v18 = vsel %vm457_vm7, %v2149_v25, %v2108_v54 }
 0x2e3   : > { %v2120_v53 = vpop.permute.xlu1 %2119  ;;  %v2151_v42 = vsel %vm459_vm8, %v2150_v18, %v2112_v49 }
 0x2e4   : > { %v2153_v48 = vsel %vm449_vm3, %v6301_v44, %v2120_v53 }
 0x2e5   : > { %v2116_v40 = vpop.permute.xlu0 %2115 }
 0x2e6   : > { %v2152_v62 = vsel %vm461_vm9, %v2151_v42, %v2116_v40 }
 0x2e7   : > { %v2162_v46 = vrot.slane %v2152_v62, 4  ;;  %v2128_v13 = vpop.permute.xlu1 %2127 }
 0x2e9   : > { %2166 = vst [vmem:[#allocation3 + $0x30] sm:$0xf0] %v2162_v46  ;;  %v2124_v3 = vpop.permute.xlu0 %2123 }
 0x2ea   : > { %v2154_v23 = vsel %vm451_vm4, %v2153_v48, %v2124_v3 }
 0x2eb   : > { %v2136_v35 = vpop.permute.xlu1 %2135  ;;  %v2155_v61 = vsel %vm453_vm5, %v2154_v23, %v2128_v13 }
 0x2ed   : > { %v2132_v52 = vpop.permute.xlu0 %2131 }
 0x2ee   : > { %v2156_v31 = vsel %vm455_vm6, %v2155_v61, %v2132_v52 }
 0x2ef   : > { %v2534_v26 = vpop.permute.xlu1 %2533  ;;  %v2157_v20 = vsel %vm457_vm7, %v2156_v31, %v2136_v35 }
 0x2f0   : > { %2554 = vst.msk [vmem:[#allocation2 + $0x21] sm:$0xff] %vm240_vm2, %v2534_v26 }
 0x2f1   : > { %v2530_v60 = vpop.permute.xlu0 %2529 }
 0x2f2   : > { %2552 = vst.msk [vmem:[#allocation2 + $0x9] sm:$0xff] %vm240_vm2, %v2530_v60 }
 0x2f3   : > { %v2542_v28 = vpop.permute.xlu1 %2541 }
 0x2f4   : > { %2558 = vst.msk [vmem:[#allocation2 + $0x51] sm:$0xff] %vm240_vm2, %v2542_v28 }
 0x2f5   : > { %v2538_v47 = vpop.permute.xlu0 %2537 }
 0x2f6   : > { %2556 = vst.msk [vmem:[#allocation2 + $0x39] sm:$0xff] %vm240_vm2, %v2538_v47 }
 0x2f7   : > { %v2532_v59 = vpop.permute.xlu1 %2531 }
 0x2f8   : > { %2553 = vst.msk [vmem:[#allocation2 + $0x19] sm:$0xff] %vm240_vm2, %v2532_v59 }
 0x2f9   : > { %v2528_v56 = vpop.permute.xlu0 %2527 }
 0x2fa   : > { %2551 = vst.msk [vmem:[#allocation2 + $0x1] sm:$0xff] %vm240_vm2, %v2528_v56 }
 0x2fb   : > { %v2540_v1 = vpop.permute.xlu1 %2539 }
 0x2fc   : > { %2557 = vst.msk [vmem:[#allocation2 + $0x49] sm:$0xff] %vm240_vm2, %v2540_v1 }
 0x2fd   : > { %v2536_v19 = vpop.permute.xlu0 %2535 }
 0x2fe   : > { %2555 = vst.msk [vmem:[#allocation2 + $0x31] sm:$0xff] %vm240_vm2, %v2536_v19 }
 0x2ff   : > { %v2144_v7 = vpop.permute.xlu1 %2143  ;;  %v6376_v5 = vld [vmem:[#allocation2 + $0x18] sm:$0xff] }
 0x300   : > { %v6393_v4 = vld [vmem:[#allocation2 + $0x19] sm:$0xff] }
 0x301   : > { %v2140_v17 = vpop.permute.xlu0 %2139  ;;  %v6382_v29 = vld [vmem:[#allocation2] sm:$0xff] }
 0x302   : > { %v2158_v11 = vsel %vm459_vm8, %v2157_v20, %v2140_v17  ;;  %v6398_v27 = vld [vmem:[#allocation2 + $0x1] sm:$0xff] }
 0x303   : > { %v2159_v44 = vsel %vm461_vm9, %v2158_v11, %v2144_v7  ;;  %v2187_v58 = vpop.permute.xlu1 %2186  ;;  %v6380_v0 = vld [vmem:[#allocation2 + $0x48] sm:$0xff] }
 0x304   : > { %v2163_v14 = vrot.slane %v2159_v44, 4  ;;  %v2583_v16 = vcombine.low %v6376_v5, %v6380_v0  ;;  %v6395_v15 = vld [vmem:[#allocation2 + $0x49] sm:$0xff] }
 0x305   : > { %v2185_v24 = vpop.permute.xlu0 %2184  ;;  %v6378_v55 = vld [vmem:[#allocation2 + $0x30] sm:$0xff]  ;;  %v3302_v18 = vcombine.high %v6393_v4, %v6395_v15 }
 0x306   : > { %2167 = vst [vmem:[#allocation3 + $0x38] sm:$0xf0] %v2163_v14  ;;  %v2567_v9 = vcombine.low %v6382_v29, %v6378_v55  ;;  %v6391_v45 = vld [vmem:[#allocation2 + $0x31] sm:$0xff]  ;;  %v6404_v25 = vrot.slane %v2583_v16, %v5456_v41 }
 0x307   : > { %v2191_v8 = vpop.permute.xlu1 %2190  ;;  %v3286_v54 = vcombine.high %v6398_v27, %v6391_v45  ;;  %v6423_v52 = vrot.slane %v3302_v18, %v5456_v41  ;;  %v6483_v16 = vld [vmem:[#allocation2 + $0x52] sm:$0xff] }
 0x308   : > { %v6401_v49 = vrot.slane %v2567_v9, %v5456_v41  ;;  %8011 = vst [vmem:[#allocation13_spill] sm:$0xff] %v6404_v25  ;;  %v6477_v9 = vld [vmem:[#allocation2 + $0x22] sm:$0xff]  ;;  %v2780_v18 = vld [vmem:[#allocation2 + $0x38] sm:$0xff] }
 0x309   : > { %v2189_v6 = vpop.permute.xlu0 %2188  ;;  %v6420_v35 = vrot.slane %v3286_v54, %v5456_v41  ;;  %8013 = vst [vmem:[#allocation17_spill] sm:$0xff] %v6423_v52  ;;  %v2776_v54 = vld [vmem:[#allocation2 + $0x8] sm:$0xff] }
 0x30a   : > { %8010 = vst [vmem:[#allocation14_spill] sm:$0xff] %v6401_v49 }
 0x30b   : > { %v2195_v36 = vpop.permute.xlu1 %2194  ;;  %8012 = vst [vmem:[#allocation16_spill] sm:$0xff] %v6420_v35 }
 0x30c   : > { %v2276_v57 = vcombine.low %v2187_v58, %v2195_v36  ;;  %v2277_v59 = vcombine.high %v2187_v58, %v2195_v36  ;;  %v2599_v36 = vcombine.low %v6401_v49, %v6404_v25 }
 0x30d   : > { %v2193_v33 = vpop.permute.xlu0 %2192 }
 0x30e   : > { %v2208_v34 = vcombine.low %v2185_v24, %v2193_v33  ;;  %v2209_v43 = vcombine.high %v2185_v24, %v2193_v33  ;;  %v2284_v46 = vrot.slane %v2276_v57, %v5456_v41  ;;  %v2291_v31 = vrot.slane %v2277_v59, %v5456_v41  ;;  %v6515_v57 = vld [vmem:[#allocation2 + $0x9] sm:$0xff] }
 0x30f   : > { %v2199_v21 = vpop.permute.xlu1 %2198  ;;  %8016 = vst [vmem:[#allocation18_spill] sm:$0xff] %v6515_v57 }
 0x310   : > { %v2216_v63 = vrot.slane %v2208_v34, %v5456_v41  ;;  %v2292_v32 = vcombine.low %v2191_v8, %v2199_v21  ;;  %v2223_v22 = vrot.slane %v2209_v43, %v5456_v41  ;;  %v2293_v3 = vcombine.high %v2191_v8, %v2199_v21  ;;  %v6473_v43 = vld [vmem:[#allocation2 + $0x3a] sm:$0xff] }
 0x311   : > { %v2197_v10 = vpop.permute.xlu0 %2196  ;;  %v8014_v34 = vlaneseq  ;;  %v6463_v21 = vrot.slane %v2599_v36, %v5474_v50 }
 0x312   : > { %v2224_v2 = vcombine.low %v2189_v6, %v2197_v10  ;;  %v2225_v51 = vcombine.high %v2189_v6, %v2197_v10  ;;  %v2300_v53 = vrot.slane %v2292_v32, %v5456_v41  ;;  %v2307_v23 = vrot.slane %v2293_v3, %v5456_v41  ;;  %v6497_v32 = vld [vmem:[#allocation2 + $0x32] sm:$0xff] }
 0x313   : > { %vm194_vm10 = vcmp.lt.s32.totalorder %v8014_v34, 256  ;;  %v5194_v10 = vmov 1.0   ;;  %8015 = vst [vmem:[#allocation15_spill] sm:$0xff] %v6463_v21 }
 0x314   : > { %v2232_v39 = vrot.slane %v2224_v2, %v5456_v41  ;;  %v2239_v30 = vrot.slane %v2225_v51, %v5456_v41  ;;  %v2308_v26 = vcombine.low %v2284_v46, %v2300_v53  ;;  %v2309_v1 = vcombine.high %v2284_v46, %v2300_v53  ;;  %197 = vst.msk [vmem:[#allocation3 + $0x44] ss:$8 sm:$0x3] %vm194_vm10, %v5194_v10  ;;  %v6466_v2 = vld [vmem:[#allocation2 + $0xa] sm:$0xff]  ;;  %v2778_v53 = vld [vmem:[#allocation2 + $0x20] sm:$0xff] }
 0x315   : > { %v2324_v20 = vcombine.low %v2291_v31, %v2307_v23  ;;  %v2325_v58 = vcombine.high %v2291_v31, %v2307_v23  ;;  %v2631_v51 = vcombine.high %v6463_v21, %v8003_v37 }
 0x316   : > { %v2240_v12 = vcombine.low %v2216_v63, %v2232_v39  ;;  %v2241_v38 = vcombine.high %v2216_v63, %v2232_v39  ;;  %v2256_v42 = vcombine.low %v2223_v22, %v2239_v30  ;;  %v2257_v60 = vcombine.high %v2223_v22, %v2239_v30  ;;  %v6491_v63 = vld [vmem:[#allocation2 + $0x2] sm:$0xff]  ;;  %v6501_v39 = vld [vmem:[#allocation2 + $0x1a] sm:$0xff]  ;;  %v6507_v30 = vld [vmem:[#allocation2 + $0x4a] sm:$0xff] }
 0x317   : > { %v6437_v19 = vrot.slane %v2308_v26, %v5474_v50  ;;  %v2323_v11 = vrot.slane %v2309_v1, %v5474_v50  ;;  %v2332_v24 = vrot.slane %v2324_v20, %v5474_v50  ;;  %v2339_v6 = vrot.slane %v2325_v58, %v5474_v50  ;;  %v6521_v22 = vld [vmem:[#allocation2 + $0x39] sm:$0xff] }
 0x318   : > { %v2255_v40 = vrot.slane %v2241_v38, %v5474_v50  ;;  %v6413_v62 = vrot.slane %v2240_v12, %v5474_v50  ;;  %v2264_v28 = vrot.slane %v2256_v42, %v5474_v50  ;;  %v2271_v61 = vrot.slane %v2257_v60, %v5474_v50  ;;  %8017 = vst [vmem:[#allocation19_spill] sm:$0xff] %v6521_v22  ;;  %v6525_v12 = vld [vmem:[#allocation2 + $0x21] sm:$0xff]  ;;  %v6531_v38 = vld [vmem:[#allocation2 + $0x51] sm:$0xff] }
 0x319   : > { %v2340_v17 = vcombine.high %v6437_v19, %v8003_v37  ;;  %v2341_v14 = vcombine.high %v2323_v11, %v8003_v37  ;;  %v2342_v8 = vcombine.high %v2332_v24, %v8003_v37  ;;  %v2343_v33 = vcombine.high %v2339_v6, %v8003_v37  ;;  %8018 = vst [vmem:[#allocation20_spill] sm:$0xff] %v6525_v12  ;;  %v2782_v42 = vld [vmem:[#allocation2 + $0x50] sm:$0xff] }
 0x31a   : > { %2349 = vrot.lane.b32.xlu1 %v2255_v40, %s5187_s7  ;;  %v2272_v13 = vcombine.high %v6413_v62, %v8003_v37  ;;  %v2273_v48 = vcombine.high %v2255_v40, %v8003_v37  ;;  %v2274_v7 = vcombine.high %v2264_v28, %v8003_v37  ;;  %v2275_v44 = vcombine.high %v2271_v61, %v8003_v37 }
 0x31b   : > { %8019 = vst [vmem:[#allocation21_spill] sm:$0xff] %v6531_v38 }
 0x31c   : > { %2345 = vrot.lane.b32.xlu0 %v2272_v13, %s5190_s26 }
 0x31e   : > { %2357 = vrot.lane.b32.xlu1 %v2264_v28, %s5188_s16 }
 0x320   : > { %2353 = vrot.lane.b32.xlu0 %v2273_v48, %s5191_s29 }
 0x322   : > { %2365 = vrot.lane.b32.xlu1 %v2271_v61, %s5189_s17 }
 0x324   : > { %2361 = vrot.lane.b32.xlu0 %v2274_v7, %s5192_s30 }
 0x326   : > { %2373 = vrot.lane.b32.xlu1 %v2340_v17, %s5190_s26 }
 0x328   : > { %2369 = vrot.lane.b32.xlu0 %v2275_v44, %s5193_s27 }
 0x32a   : > { %2381 = vrot.lane.b32.xlu1 %v2341_v14, %s5191_s29 }
 0x32c   : > { %2377 = vrot.lane.b32.xlu0 %v2323_v11, %s5187_s7 }
 0x32e   : > { %2389 = vrot.lane.b32.xlu1 %v2342_v8, %s5192_s30 }
 0x330   : > { %2385 = vrot.lane.b32.xlu0 %v2332_v24, %s5188_s16 }
 0x332   : > { %2397 = vrot.lane.b32.xlu1 %v2343_v33, %s5193_s27 }
 0x334   : > { %2393 = vrot.lane.b32.xlu0 %v2339_v6, %s5189_s17 }
 0x336   : > { %4235 = vrot.lane.b32.xlu1 %v6466_v2, %s5183_s23 }
 0x338   : > { %2704 = vrot.lane.b32.xlu0 %v2631_v51, %s5190_s26 }
 0x33a   : > { %4243 = vrot.lane.b32.xlu1 %v6473_v43, %s5183_s23 }
 0x33c   : > { %4239 = vrot.lane.b32.xlu0 %v6477_v9, %s5183_s23 }
 0x33e   : > { %4489 = vrot.lane.b32.xlu1 %v6466_v2, %s5184_s28 }
 0x340   : > { %4247 = vrot.lane.b32.xlu0 %v6483_v16, %s5183_s23 }
 0x342   : > { %4497 = vrot.lane.b32.xlu1 %v6473_v43, %s5184_s28 }
 0x344   : > { %4493 = vrot.lane.b32.xlu0 %v6477_v9, %s5184_s28 }
 0x346   : > { %4233 = vrot.lane.b32.xlu1 %v6491_v63, %s5183_s23 }
 0x348   : > { %4501 = vrot.lane.b32.xlu0 %v6483_v16, %s5184_s28 }
 0x34a   : > { %4241 = vrot.lane.b32.xlu1 %v6497_v32, %s5183_s23 }
 0x34c   : > { %4237 = vrot.lane.b32.xlu0 %v6501_v39, %s5183_s23 }
 0x34e   : > { %4487 = vrot.lane.b32.xlu1 %v6491_v63, %s5184_s28 }
 0x350   : > { %4245 = vrot.lane.b32.xlu0 %v6507_v30, %s5183_s23 }
 0x352   : > { %4495 = vrot.lane.b32.xlu1 %v6497_v32, %s5184_s28 }
 0x354   : > { %4491 = vrot.lane.b32.xlu0 %v6501_v39, %s5184_s28 }
 0x356   : > { %3765 = vrot.lane.b32.xlu1 %v6515_v57, %s5184_s28 }
 0x358   : > { %4499 = vrot.lane.b32.xlu0 %v6507_v30, %s5184_s28 }
 0x35a   : > { %3773 = vrot.lane.b32.xlu1 %v6521_v22, %s5184_s28 }
 0x35c   : > { %3769 = vrot.lane.b32.xlu0 %v6525_v12, %s5184_s28 }
 0x35e   : > { %3763 = vrot.lane.b32.xlu1 %v6398_v27, %s5184_s28 }
 0x360   : > { %3777 = vrot.lane.b32.xlu0 %v6531_v38, %s5184_s28 }
 0x362   : > { %3771 = vrot.lane.b32.xlu1 %v6391_v45, %s5184_s28 }
 0x364   : > { %3767 = vrot.lane.b32.xlu0 %v6393_v4, %s5184_s28 }
 0x366   : > { %3517 = vrot.lane.b32.xlu1 %v6515_v57, %s5183_s23 }
 0x368   : > { %3775 = vrot.lane.b32.xlu0 %v6395_v15, %s5184_s28 }
 0x36a   : > { %3525 = vrot.lane.b32.xlu1 %v6521_v22, %s5183_s23 }
 0x36c   : > { %3521 = vrot.lane.b32.xlu0 %v6525_v12, %s5183_s23 }
 0x36e   : > { %3515 = vrot.lane.b32.xlu1 %v6398_v27, %s5183_s23 }
 0x370   : > { %3529 = vrot.lane.b32.xlu0 %v6531_v38, %s5183_s23 }
 0x372   : > { %3523 = vrot.lane.b32.xlu1 %v6391_v45, %s5183_s23 }
 0x374   : > { %3519 = vrot.lane.b32.xlu0 %v6393_v4, %s5183_s23 }
 0x376   : > { %2793 = vrot.lane.b32.xlu1 %v2776_v54, %s5183_s23 }
 0x378   : > { %3527 = vrot.lane.b32.xlu0 %v6395_v15, %s5183_s23 }
 0x37a   : > { %2801 = vrot.lane.b32.xlu1 %v2780_v18, %s5183_s23 }
 0x37c   : > { %2797 = vrot.lane.b32.xlu0 %v2778_v53, %s5183_s23 }
 0x37e   : > { %3047 = vrot.lane.b32.xlu1 %v2776_v54, %s5184_s28 }
 0x380   : > { %2805 = vrot.lane.b32.xlu0 %v2782_v42, %s5183_s23 }
 0x382   : > { %3055 = vrot.lane.b32.xlu1 %v2780_v18, %s5184_s28 }
 0x384   : > { %3051 = vrot.lane.b32.xlu0 %v2778_v53, %s5184_s28 }
 0x386   : > { %2791 = vrot.lane.b32.xlu1 %v6382_v29, %s5183_s23 }
 0x388   : > { %3059 = vrot.lane.b32.xlu0 %v2782_v42, %s5184_s28  ;;  %v2423_v42 = vld [vmem:[#allocation3 + $0x38] sm:$0xff] }
 0x38a   : > { %2799 = vrot.lane.b32.xlu1 %v6378_v55, %s5183_s23 }
 0x38c   : > { %v2350_v40 = vpop.permute.xlu1 %2349  ;;  %2795 = vrot.lane.b32.xlu0 %v6376_v5, %s5183_s23 }
 0x38e   : > { %3045 = vrot.lane.b32.xlu1 %v6382_v29, %s5184_s28  ;;  %v2346_v46 = vpop.permute.xlu0 %2345 }
 0x38f   : > { %v2400_v13 = vsel %vm449_vm3, %v6413_v62, %v2346_v46  ;;  %v2422_v46 = vld [vmem:[#allocation3 + $0x30] sm:$0xff] }
 0x390   : > { %v2358_v3 = vpop.permute.xlu1 %2357  ;;  %2803 = vrot.lane.b32.xlu0 %v6380_v0, %s5183_s23  ;;  %v2401_v26 = vsel %vm451_vm4, %v2400_v13, %v2350_v40  ;;  %s5111_s23 = sshll.u32 %s5195_s13, 4  ;;  %s5112_s23 = int_to_ptr.vmem [resolvable:$false] %s5111_s23 }
 0x391   : > { %p5114_p9 = scmp.lt.s32.totalorder %s7893_s5, %s5112_s23 }
 0x392   : > { %3053 = vrot.lane.b32.xlu1 %v6378_v55, %s5184_s28  ;;  %v2354_v60 = vpop.permute.xlu0 %2353 }
 0x393   : > { %v2402_v28 = vsel %vm453_vm5, %v2401_v26, %v2354_v60 }
 0x394   : > { %v2366_v59 = vpop.permute.xlu1 %2365  ;;  %3049 = vrot.lane.b32.xlu0 %v6376_v5, %s5184_s28  ;;  %v2403_v29 = vsel %vm455_vm6, %v2402_v28, %v2358_v3  ;;  %v2421_v3 = vld [vmem:[#allocation3 + $0x28] sm:$0xff]  ;;  %v2420_v28 = vld [vmem:[#allocation3 + $0x20] sm:$0xff] }
 0x396   : > { %v2362_v48 = vpop.permute.xlu0 %2361 }
 0x397   : > { %v2404_v62 = vsel %vm457_vm7, %v2403_v29, %v2362_v48  ;;  %v2419_v29 = vld [vmem:[#allocation3 + $0x18] sm:$0xff] }
 0x398   : > { %v2374_v23 = vpop.permute.xlu1 %2373  ;;  %3057 = vrot.lane.b32.xlu0 %v6380_v0, %s5184_s28  ;;  %v2405_v55 = vsel %vm459_vm8, %v2404_v62, %v2366_v59  ;;  %v2418_v62 = vld [vmem:[#allocation3 + $0x10] sm:$0xff]  ;;  %s5113_s28 = scalar_lea.vmem %s5112_s23, 1024 }
 0x399   : > { %v2407_v7 = vsel %vm449_vm3, %v6437_v19, %v2374_v23  ;;  %p5115_p10 = scmp.lt.s32.totalorder %s5113_s28, %s5107_s20 }
 0x39a   : > { %v2370_v1 = vpop.permute.xlu0 %2369 }
 0x39b   : > { %v2406_v61 = vsel %vm461_vm9, %v2405_v55, %v2370_v1  ;;  %v2417_v55 = vld [vmem:[#allocation3 + $0x8] sm:$0xff]  ;;  %p5116_p2 = por %p5115_p10, %p5114_p9 }
 0x39c   : > { %2414 = vst [vmem:[#allocation3 + $0x40] sm:$0xf] %v2406_v61  ;;  %v2382_v31 = vpop.permute.xlu1 %2381  ;;  %v2416_v61 = vld [vmem:[#allocation3] sm:$0xff] }
 0x39d   : > { %p5117_p0 = pnand %p5116_p2, %p5110_p8 }
 0x39e   : > { %v2378_v5 = vpop.permute.xlu0 %2377 }
 0x39f   : > { %v2408_v20 = vsel %vm451_vm4, %v2407_v7, %v2378_v5 }
 0x3a0   : > { %v2390_v17 = vpop.permute.xlu1 %2389  ;;  %v2409_v11 = vsel %vm453_vm5, %v2408_v20, %v2382_v31 }
 0x3a2   : > { %v2386_v44 = vpop.permute.xlu0 %2385 }
 0x3a3   : > { %v2410_v58 = vsel %vm455_vm6, %v2409_v11, %v2386_v44  ;;  %v2424_v18 = vld [vmem:[#allocation3 + $0x40] sm:$0x1f] }
 0x3a4   : > { %v2398_v0 = vpop.permute.xlu1 %2397  ;;  %v2411_v14 = vsel %vm457_vm7, %v2410_v58, %v2390_v17 }
 0x3a6   : > { %v2394_v24 = vpop.permute.xlu0 %2393 }
 0x3a7   : > { %v2412_v8 = vsel %vm459_vm8, %v2411_v14, %v2394_v24  ;;  %v4077_v24 = vcombine.low %v6466_v2, %v6473_v43 }
 0x3a8   : > { %v2413_v6 = vsel %vm461_vm9, %v2412_v8, %v2398_v0  ;;  %v6597_v36 = vpop.permute.xlu1 %4235  ;;  %v4093_v0 = vcombine.low %v6477_v9, %v6483_v16 }
 0x3a9   : > { %2415 = vst [vmem:[#allocation3 + $0x48] sm:$0xf] %v2413_v6 }
 0x3aa   : > { %v6599_v19 = vpop.permute.xlu0 %2704 }
 0x3ab   : > { %8020 = vst [vmem:[#allocation22_spill] sm:$0xff] %v6599_v19 }
 0x3ac   : > { %v6601_v33 = vpop.permute.xlu1 %4243 }
 0x3ad   : > { %v4325_v54 = vcombine.low %v6597_v36, %v6601_v33 }
 0x3ae   : > { %v6603_v34 = vpop.permute.xlu0 %4239 }
 0x3af   : > { %v4333_v26 = vrot.slane %v4325_v54, %v5456_v41 }
 0x3b0   : > { %v6605_v10 = vpop.permute.xlu1 %4489  ;;  %v2425_v51 = vld [vmem:[#allocation3 + $0x48] sm:$0x1f] }
 0x3b1   : > { %4919 = vmatprep.subr.msk.mxu0 %vm2430_vm11, %v2425_v51 }
 0x3b2   : > { %4920 = vmatpush1.msk.msra.mxu0 %vm2430_vm11, %v2424_v18  ;;  %v6611_v53 = vpop.permute.xlu0 %4247  ;;  %v6655_v18 = vrot.slane %v4093_v0, %v5456_v41 }
 0x3b3   : > { %v4341_v40 = vcombine.low %v6603_v34, %v6611_v53  ;;  %2461 = vmatprep.subr.mxu0 %v2423_v42 }
 0x3b4   : > { %v6615_v13 = vpop.permute.xlu1 %4497  ;;  %2462 = vmatpush1.msra.mxu0 %v2422_v46 }
 0x3b5   : > { %v4349_v60 = vrot.slane %v4341_v40, %v5456_v41  ;;  %2463 = vmatprep.subr.mxu0 %v2421_v3  ;;  %v4579_v1 = vcombine.low %v6605_v10, %v6615_v13  ;;  %v6662_v3 = vrot.slane %v4077_v24, %v5456_v41 }
 0x3b6   : > { %2464 = vmatpush1.msra.mxu0 %v2420_v28  ;;  %v6619_v59 = vpop.permute.xlu0 %4493 }
 0x3b7   : > { %v4357_v48 = vcombine.low %v4333_v26, %v4349_v60  ;;  %2465 = vmatprep.subr.mxu0 %v2419_v29  ;;  %v4587_v11 = vrot.slane %v4579_v1, %v5456_v41  ;;  %v4358_v42 = vcombine.high %v4333_v26, %v4349_v60  ;;  %v4109_v1 = vcombine.low %v6662_v3, %v6655_v18 }
 0x3b8   : > { %v6621_v23 = vpop.permute.xlu1 %4233  ;;  %2466 = vmatpush1.msra.mxu0 %v2418_v62 }
 0x3b9   : > { %2467 = vmatprep.subr.mxu0 %v2417_v55  ;;  %v6626_v31 = vrot.slane %v4357_v48, %v5474_v50  ;;  %v4372_v55 = vrot.slane %v4358_v42, %v5474_v50  ;;  %v6696_v24 = vrot.slane %v4109_v1, %v5474_v50 }
 0x3ba   : > { %2468 = vmatpush1.msra.mxu0 %v2416_v61  ;;  %v6628_v7 = vpop.permute.xlu0 %4501 }
 0x3bb   : > { %8021 = vst [vmem:[#allocation23_spill] sm:$0xff] %v6626_v31  ;;  %v4595_v5 = vcombine.low %v6619_v59, %v6628_v7  ;;  %v4389_v20 = vcombine.high %v6626_v31, %v8003_v37  ;;  %8024 = vst [vmem:[#allocation26_spill] sm:$0xff] %v6696_v24  ;;  %v4390_v47 = vcombine.high %v4372_v55, %v8003_v37 }
 0x3bc   : > { %v6634_v17 = vpop.permute.xlu1 %4241 }
 0x3bd   : > { %v4603_v44 = vrot.slane %v4595_v5, %v5456_v41  ;;  %4422 = vrot.lane.b32.xlu1 %v4389_v20, %s5190_s26  ;;  %v4257_v6 = vcombine.low %v6621_v23, %v6634_v17 }
 0x3be   : > { %v6639_v58 = vpop.permute.xlu0 %4237 }
 0x3bf   : > { %v4611_v14 = vcombine.low %v4587_v11, %v4603_v44  ;;  %v6667_v29 = vrot.slane %v4257_v6, %v5456_v41  ;;  %v4612_v60 = vcombine.high %v4587_v11, %v4603_v44 }
 0x3c0   : > { %v6645_v8 = vpop.permute.xlu1 %4487 }
 0x3c1   : > { %v6650_v51 = vrot.slane %v4611_v14, %v5474_v50  ;;  %v4626_v44 = vrot.slane %v4612_v60, %v5474_v50 }
 0x3c2   : > { %v6652_v54 = vpop.permute.xlu0 %4245 }
 0x3c3   : > { %8022 = vst [vmem:[#allocation24_spill] sm:$0xff] %v6650_v51  ;;  %v4273_v40 = vcombine.low %v6639_v58, %v6652_v54  ;;  %v4643_v46 = vcombine.high %v6650_v51, %v8003_v37 }
 0x3c4   : > { %v6664_v28 = vpop.permute.xlu1 %4495 }
 0x3c5   : > { %v6670_v48 = vrot.slane %v4273_v40, %v5456_v41  ;;  %4676 = vrot.lane.b32.xlu0 %v4643_v46, %s5190_s26  ;;  %v4511_v5 = vcombine.low %v6645_v8, %v6664_v28 }
 0x3c6   : > { %v6673_v26 = vpop.permute.xlu0 %4491 }
 0x3c7   : > { %v4289_v62 = vcombine.low %v6667_v29, %v6670_v48  ;;  %v6701_v42 = vrot.slane %v4511_v5, %v5456_v41 }
 0x3c8   : > { %v6680_v61 = vpop.permute.xlu1 %3765 }
 0x3c9   : > { %4426 = vrot.lane.b32.xlu0 %v4372_v55, %s5187_s7  ;;  %v6686_v20 = vrot.slane %v4289_v62, %v5474_v50  ;;  %v4141_v62 = vcombine.high %v6696_v24, %v8003_v37  ;;  %v4644_v24 = vcombine.high %v4626_v44, %v8003_v37 }
 0x3ca   : > { %v6688_v0 = vpop.permute.xlu0 %4499 }
 0x3cb   : > { %8023 = vst [vmem:[#allocation25_spill] sm:$0xff] %v6686_v20  ;;  %v4527_v11 = vcombine.low %v6673_v26, %v6688_v0  ;;  %v4321_v14 = vcombine.high %v6686_v20, %v8003_v37 }
 0x3cc   : > { %v6698_v6 = vpop.permute.xlu1 %3773 }
 0x3cd   : > { %v6704_v40 = vrot.slane %v4527_v11, %v5456_v41  ;;  %4680 = vrot.lane.b32.xlu0 %v4626_v44, %s5187_s7  ;;  %4394 = vrot.lane.b32.xlu1 %v4321_v14, %s5190_s26  ;;  %v3855_v5 = vcombine.low %v6680_v61, %v6698_v6 }
 0x3ce   : > { %v6708_v46 = vpop.permute.xlu0 %3769 }
 0x3cf   : > { %v4543_v60 = vcombine.low %v6701_v42, %v6704_v40  ;;  %v3863_v20 = vrot.slane %v3855_v5, %v5456_v41  ;;  %v4326_v5 = vcombine.high %v6597_v36, %v6601_v33  ;;  %v4596_v36 = vcombine.high %v6619_v59, %v6628_v7 }
 0x3d0   : > { %v6714_v1 = vpop.permute.xlu1 %3763  ;;  %v4580_v59 = vcombine.high %v6605_v10, %v6615_v13 }
 0x3d1   : > { %4174 = vrot.lane.b32.xlu0 %v4141_v62, %s5190_s26  ;;  %v6720_v11 = vrot.slane %v4543_v60, %v5474_v50  ;;  %v4342_v60 = vcombine.high %v6603_v34, %v6611_v53 }
 0x3d2   : > { %v6722_v56 = vpop.permute.xlu0 %3777 }
 0x3d3   : > { %8025 = vst [vmem:[#allocation27_spill] sm:$0xff] %v6720_v11  ;;  %v3871_v14 = vcombine.low %v6708_v46, %v6722_v56  ;;  %v4575_v21 = vcombine.high %v6720_v11, %v8003_v37  ;;  %v6749_v34 = vrot.slane %v4342_v60, %v5456_v41 }
 0x3d4   : > { %v6729_v19 = vpop.permute.xlu1 %3771 }
 0x3d5   : > { %v3879_v51 = vrot.slane %v3871_v14, %v5456_v41  ;;  %4430 = vrot.lane.b32.xlu0 %v4390_v47, %s5191_s29  ;;  %4648 = vrot.lane.b32.xlu1 %v4575_v21, %s5190_s26  ;;  %v3787_v21 = vcombine.low %v6714_v1, %v6729_v19 }
 0x3d6   : > { %v6737_v62 = vpop.permute.xlu0 %3767 }
 0x3d7   : > { %v3887_v31 = vcombine.low %v3863_v20, %v3879_v51  ;;  %v3888_v55 = vcombine.high %v3863_v20, %v3879_v51  ;;  %v4110_v51 = vcombine.high %v6662_v3, %v6655_v18  ;;  %v4025_v20 = vcombine.low %v6501_v39, %v6507_v30 }
 0x3d8   : > { %v6740_v11 = vpop.permute.xlu1 %3517  ;;  %v4009_v18 = vcombine.low %v6491_v63, %v6497_v32  ;;  %v6773_v3 = vrot.slane %v4326_v5, %v5456_v41  ;;  %v6782_v60 = vrot.slane %v3787_v21, %v5456_v41  ;;  %v4544_v5 = vcombine.high %v6701_v42, %v6704_v40 }
 0x3d9   : > { %8026 = vst [vmem:[#allocation28_spill] sm:$0xff] %v6740_v11  ;;  %4684 = vrot.lane.b32.xlu0 %v4644_v24, %s5191_s29  ;;  %v6746_v47 = vrot.slane %v3887_v31, %v5474_v50  ;;  %v3902_v31 = vrot.slane %v3888_v55, %v5474_v50  ;;  %v4290_v24 = vcombine.high %v6667_v29, %v6670_v48 }
 0x3da   : > { %v6753_v53 = vpop.permute.xlu0 %3775  ;;  %v4373_v48 = vcombine.low %v6773_v3, %v6749_v34  ;;  %v6790_v55 = vrot.slane %v4596_v36, %v5456_v41  ;;  %v4124_v10 = vrot.slane %v4110_v51, %v5474_v50  ;;  %v6794_v13 = vrot.slane %v4025_v20, %v5456_v41 }
 0x3db   : > { %8027 = vst [vmem:[#allocation29_spill] sm:$0xff] %v6746_v47  ;;  %v3803_v33 = vcombine.low %v6737_v62, %v6753_v53  ;;  %v3919_v44 = vcombine.high %v6746_v47, %v8003_v37  ;;  %v6804_v47 = vrot.slane %v4009_v18, %v5456_v41  ;;  %v6807_v36 = vrot.slane %v4580_v59, %v5456_v41 }
 0x3dc   : > { %v6768_v14 = vpop.permute.xlu1 %3525  ;;  %v4558_v18 = vrot.slane %v4544_v5, %v5474_v50 }
 0x3dd   : > { %8028 = vst [vmem:[#allocation30_spill] sm:$0xff] %v6768_v14  ;;  %v6778_v7 = vrot.slane %v3803_v33, %v5456_v41  ;;  %3956 = vrot.lane.b32.xlu0 %v3902_v31, %s5187_s7  ;;  %3952 = vrot.lane.b32.xlu1 %v3919_v44, %s5190_s26  ;;  %v4304_v44 = vrot.slane %v4290_v24, %v5474_v50 }
 0x3de   : > { %v6785_v29 = vpop.permute.xlu0 %3521  ;;  %v3607_v51 = vcombine.low %v6740_v11, %v6768_v14  ;;  %v4627_v40 = vcombine.low %v6807_v36, %v6790_v55  ;;  %v4381_v24 = vrot.slane %v4373_v48, %v5474_v50  ;;  %v4041_v25 = vcombine.low %v6804_v47, %v6794_v13 }
 0x3df   : > { %8029 = vst [vmem:[#allocation31_spill] sm:$0xff] %v6785_v29  ;;  %v3819_v21 = vcombine.low %v6782_v60, %v6778_v7  ;;  %v3369_v14 = vcombine.low %v6525_v12, %v6531_v38  ;;  %v3920_v38 = vcombine.high %v3902_v31, %v8003_v37 }
 0x3e0   : > { %v6800_v33 = vpop.permute.xlu1 %3515  ;;  %v6827_v49 = vrot.slane %v3607_v51, %v5456_v41  ;;  %v6844_v11 = vrot.slane %v4041_v25, %v5474_v50  ;;  %v4391_v31 = vcombine.high %v4381_v24, %v8003_v37 }
 0x3e1   : > { %4178 = vrot.lane.b32.xlu0 %v4124_v10, %s5187_s7  ;;  %4398 = vrot.lane.b32.xlu1 %v4304_v44, %s5187_s7  ;;  %v6822_v59 = vrot.slane %v3819_v21, %v5474_v50  ;;  %v4635_v21 = vrot.slane %v4627_v40, %v5474_v50  ;;  %v3377_v12 = vrot.slane %v3369_v14, %v5456_v41 }
 0x3e2   : > { %v6813_v42 = vpop.permute.xlu0 %3529  ;;  %8032 = vst [vmem:[#allocation34_spill] sm:$0xff] %v6844_v11 }
 0x3e3   : > { %8030 = vst [vmem:[#allocation32_spill] sm:$0xff] %v6813_v42  ;;  %v3623_v20 = vcombine.low %v6785_v29, %v6813_v42  ;;  %8031 = vst [vmem:[#allocation33_spill] sm:$0xff] %v6822_v59  ;;  %v3851_v51 = vcombine.high %v6822_v59, %v8003_v37 }
 0x3e4   : > { %v6833_v52 = vpop.permute.xlu1 %3523 }
 0x3e5   : > { %v6830_v35 = vrot.slane %v3623_v20, %v5456_v41  ;;  %4434 = vrot.lane.b32.xlu0 %v4381_v24, %s5188_s16  ;;  %4652 = vrot.lane.b32.xlu1 %v4558_v18, %s5187_s7  ;;  %v3353_v20 = vcombine.low %v6515_v57, %v6521_v22  ;;  %v3540_v29 = vcombine.high %v6800_v33, %v6833_v52 }
 0x3e6   : > { %v6836_v48 = vpop.permute.xlu0 %3519  ;;  %v4073_v57 = vcombine.high %v6844_v11, %v8003_v37  ;;  %v4322_v11 = vcombine.high %v4304_v44, %v8003_v37 }
 0x3e7   : > { %v3639_v5 = vcombine.low %v6827_v49, %v6830_v35  ;;  %v3361_v22 = vrot.slane %v3353_v20, %v5456_v41 }
 0x3e9   : > { %4688 = vrot.lane.b32.xlu0 %v4635_v21, %s5188_s16  ;;  %v6854_v42 = vrot.slane %v3639_v5, %v5474_v50  ;;  %3924 = vrot.lane.b32.xlu1 %v3851_v51, %s5190_s26  ;;  %v6868_v5 = vrot.slane %v3540_v29, %v5456_v41  ;;  %v3385_v20 = vcombine.low %v3361_v22, %v3377_v12 }
 0x3ea   : > { %v6857_v40 = vpop.permute.xlu0 %3527  ;;  %v4142_v29 = vcombine.high %v4124_v10, %v8003_v37  ;;  %v3386_v24 = vcombine.high %v3361_v22, %v3377_v12  ;;  %v3856_v22 = vcombine.high %v6680_v61, %v6698_v6 }
 0x3eb   : > { %8033 = vst [vmem:[#allocation35_spill] sm:$0xff] %v6854_v42  ;;  %v3556_v25 = vcombine.high %v6836_v48, %v6857_v40  ;;  %v3671_v59 = vcombine.high %v6854_v42, %v8003_v37 }
 0x3ec   : > { %v6939_v12 = vrot.slane %v3386_v24, %v5474_v50 }
 0x3ed   : > { %v6871_v51 = vrot.slane %v3556_v25, %v5456_v41  ;;  %3704 = vrot.lane.b32.xlu0 %v3671_v59, %s5190_s26  ;;  %4146 = vrot.lane.b32.xlu1 %v4073_v57, %s5190_s26  ;;  %v6884_v25 = vpop.permute.xlu1 %2793  ;;  %v4576_v57 = vcombine.high %v4558_v18, %v8003_v37  ;;  %v6888_v59 = vrot.slane %v3385_v20, %v5474_v50 }
 0x3ee   : > { %v6880_v14 = vpop.permute.xlu0 %2797  ;;  %v4258_v18 = vcombine.high %v6621_v23, %v6634_v17  ;;  %v4528_v23 = vcombine.high %v6673_v26, %v6688_v0  ;;  %v4078_v26 = vcombine.high %v6466_v2, %v6473_v43  ;;  %v3555_v2 = vcombine.low %v6836_v48, %v6857_v40 }
 0x3ef   : > { %v3417_v44 = vcombine.high %v6888_v59, %v8003_v37 }
 0x3f0   : > { %v6957_v0 = vrot.slane %v4528_v23, %v5456_v41  ;;  %v6979_v48 = vrot.slane %v4078_v26, %v5456_v41  ;;  %v4374_v23 = vcombine.high %v6773_v3, %v6749_v34  ;;  %v4628_v34 = vcombine.high %v6807_v36, %v6790_v55 }
 0x3f1   : > { %3960 = vrot.lane.b32.xlu0 %v3920_v38, %s5191_s29  ;;  %4402 = vrot.lane.b32.xlu1 %v4322_v11, %s5191_s29  ;;  %v4274_v38 = vcombine.high %v6639_v58, %v6652_v54  ;;  %v3820_v11 = vcombine.high %v6782_v60, %v6778_v7  ;;  %v6904_v20 = vpop.permute.xlu1 %2801  ;;  %v3872_v58 = vcombine.high %v6708_v46, %v6722_v56 }
 0x3f2   : > { %v6897_v10 = vpop.permute.xlu0 %2805  ;;  %v4645_v54 = vcombine.high %v4635_v21, %v8003_v37  ;;  %v3285_v7 = vcombine.low %v6398_v27, %v6391_v45  ;;  %v3301_v60 = vcombine.low %v6393_v4, %v6395_v15  ;;  %v4042_v56 = vcombine.high %v6804_v47, %v6794_v13 }
 0x3f3   : > { %v6920_v17 = vrot.slane %v3820_v11, %v5474_v50  ;;  %v4094_v45 = vcombine.high %v6477_v9, %v6483_v16  ;;  %v6930_v4 = vrot.slane %v4258_v18, %v5456_v41  ;;  %v4512_v15 = vcombine.high %v6645_v8, %v6664_v28 }
 0x3f4   : > { %v6944_v61 = vrot.slane %v3872_v58, %v5456_v41  ;;  %v3640_v9 = vcombine.high %v6827_v49, %v6830_v35  ;;  %v6949_v16 = vrot.slane %v3285_v7, %v5456_v41  ;;  %v6952_v8 = vrot.slane %v3301_v60, %v5456_v41 }
 0x3f5   : > { %4182 = vrot.lane.b32.xlu0 %v4142_v29, %s5191_s29  ;;  %4656 = vrot.lane.b32.xlu1 %v4576_v57, %s5191_s29  ;;  %v6915_v29 = vrot.slane %v4274_v38, %v5456_v41  ;;  %v6961_v43 = vpop.permute.xlu1 %3047  ;;  %v4056_v6 = vrot.slane %v4042_v56, %v5474_v50  ;;  %v6965_v49 = vrot.slane %v3856_v22, %v5456_v41 }
 0x3f6   : > { %v6934_v27 = vpop.permute.xlu0 %3051  ;;  %v6970_v35 = vrot.slane %v4512_v15, %v5456_v41  ;;  %v3539_v46 = vcombine.low %v6800_v33, %v6833_v52  ;;  %v3654_v13 = vrot.slane %v3640_v9, %v5474_v50  ;;  %v6982_v21 = vrot.slane %v4094_v45, %v5456_v41 }
 0x3f7   : > { %v4305_v28 = vcombine.low %v6930_v4, %v6915_v29  ;;  %v3903_v47 = vcombine.low %v6965_v49, %v6944_v61  ;;  %v6987_v57 = vrot.slane %v3555_v2, %v5456_v41  ;;  %v4388_v9 = vrot.slane %v4374_v23, %v5474_v50 }
 0x3f8   : > { %v4559_v40 = vcombine.low %v6970_v35, %v6957_v0  ;;  %v6996_v38 = vrot.slane %v3539_v46, %v5456_v41  ;;  %v4125_v24 = vcombine.low %v6979_v48, %v6982_v21  ;;  %v4642_v2 = vrot.slane %v4628_v34, %v5474_v50 }
 0x3f9   : > { %4438 = vrot.lane.b32.xlu0 %v4391_v31, %s5192_s30  ;;  %3450 = vrot.lane.b32.xlu1 %v3417_v44, %s5190_s26  ;;  %v4313_v33 = vrot.slane %v4305_v28, %v5474_v50  ;;  %v3317_v31 = vcombine.low %v6949_v16, %v6952_v8  ;;  %v6998_v11 = vpop.permute.xlu1 %3055  ;;  %v3911_v18 = vrot.slane %v3903_v47, %v5474_v50 }
 0x3fa   : > { %v6989_v52 = vpop.permute.xlu0 %3059  ;;  %v3571_v58 = vcombine.low %v6996_v38, %v6987_v57  ;;  %v3137_v60 = vcombine.low %v6961_v43, %v6998_v11  ;;  %v4133_v22 = vrot.slane %v4125_v24, %v5474_v50  ;;  %v2899_v55 = vcombine.low %v6880_v14, %v6897_v10 }
 0x3fb   : > { %v3153_v44 = vcombine.low %v6934_v27, %v6989_v52  ;;  %v7010_v7 = vrot.slane %v3317_v31, %v5474_v50  ;;  %v3852_v36 = vcombine.high %v6920_v17, %v8003_v37  ;;  %v2883_v47 = vcombine.low %v6884_v25, %v6904_v20 }
 0x3fc   : > { %v7025_v15 = vrot.slane %v3571_v58, %v5474_v50  ;;  %v7028_v26 = vrot.slane %v3137_v60, %v5456_v41  ;;  %v2907_v31 = vrot.slane %v2899_v55, %v5456_v41  ;;  %v4323_v60 = vcombine.high %v4313_v33, %v8003_v37 }
 0x3fd   : > { %4692 = vrot.lane.b32.xlu0 %v4645_v54, %s5192_s30  ;;  %3928 = vrot.lane.b32.xlu1 %v6920_v17, %s5187_s7  ;;  %v4567_v54 = vrot.slane %v4559_v40, %v5474_v50  ;;  %v7019_v56 = vrot.slane %v3153_v44, %v5456_v41  ;;  %v3349_v45 = vcombine.high %v7010_v7, %v8003_v37 }
 0x3fe   : > { %8034 = vst [vmem:[#allocation36_spill] sm:$0xff] %v7025_v15  ;;  %v3603_v28 = vcombine.high %v7025_v15, %v8003_v37  ;;  %v4074_v44 = vcombine.high %v4056_v6, %v8003_v37  ;;  %v2891_v24 = vrot.slane %v2883_v47, %v5456_v41  ;;  %v3418_v17 = vcombine.high %v6939_v12, %v8003_v37  ;;  %v7065_v23 = vpop.permute.xlu0 %2795  ;;  %v8038_v47 = vld [vmem:[#allocation20_spill] sm:$0xff] }
 0x3ff   : > { %v3169_v3 = vcombine.low %v7028_v26, %v7019_v56  ;;  %v3788_v55 = vcombine.high %v6714_v1, %v6729_v19  ;;  %v4026_v19 = vcombine.high %v6501_v39, %v6507_v30 }
 0x400   : > { %v2915_v58 = vcombine.low %v2891_v24, %v2907_v31 }
 0x401   : > { %3454 = vrot.lane.b32.xlu0 %v6939_v12, %s5187_s7  ;;  %4150 = vrot.lane.b32.xlu1 %v4056_v6, %s5187_s7  ;;  %v7043_v46 = vrot.slane %v3169_v3, %v5474_v50  ;;  %v3672_v6 = vcombine.high %v3654_v13, %v8003_v37  ;;  %v7072_v3 = vpop.permute.xlu1 %2791  ;;  %v3921_v12 = vcombine.high %v3911_v18, %v8003_v37 }
 0x402   : > { %v7070_v34 = vrot.slane %v2915_v58, %v5474_v50  ;;  %v7106_v1 = vrot.slane %v3788_v55, %v5456_v41  ;;  %v7122_v30 = vrot.slane %v4026_v19, %v5456_v41  ;;  %v8039_v58 = vld [vmem:[#allocation19_spill] sm:$0xff] }
 0x403   : > { %8035 = vst [vmem:[#allocation37_spill] sm:$0xff] %v7043_v46  ;;  %v3201_v40 = vcombine.high %v7043_v46, %v8003_v37 }
 0x404   : > { %8036 = vst [vmem:[#allocation38_spill] sm:$0xff] %v7070_v34 }
 0x405   : > { %3708 = vrot.lane.b32.xlu0 %v3654_v13, %s5187_s7  ;;  %4406 = vrot.lane.b32.xlu1 %v4313_v33, %s5188_s16  ;;  %v3804_v33 = vcombine.high %v6737_v62, %v6753_v53  ;;  %v3318_v13 = vcombine.high %v6949_v16, %v6952_v8  ;;  %v4010_v62 = vcombine.high %v6491_v63, %v6497_v32 }
 0x406   : > { %v3572_v16 = vcombine.high %v6996_v38, %v6987_v57  ;;  %v4392_v32 = vcombine.high %v4388_v9, %v8003_v37 }
 0x407   : > { %v7095_v53 = vrot.slane %v3804_v33, %v5456_v41  ;;  %v7100_v8 = vrot.slane %v3318_v13, %v5474_v50  ;;  %v7119_v39 = vrot.slane %v4010_v62, %v5456_v41  ;;  %v8042_v13 = vld [vmem:[#allocation31_spill] sm:$0xff] }
 0x408   : > { %v7116_v38 = vrot.slane %v3572_v16, %v5474_v50 }
 0x409   : > { %3964 = vrot.lane.b32.xlu0 %v3911_v18, %s5188_s16  ;;  %4660 = vrot.lane.b32.xlu1 %v4567_v54, %s5188_s16  ;;  %v4143_v18 = vcombine.high %v4133_v22, %v8003_v37  ;;  %v3835_v57 = vcombine.low %v7106_v1, %v7095_v53  ;;  %v4057_v33 = vcombine.low %v7119_v39, %v7122_v30 }
 0x40d   : > { %4186 = vrot.lane.b32.xlu0 %v4133_v22, %s5188_s16  ;;  %3422 = vrot.lane.b32.xlu1 %v3349_v45, %s5190_s26  ;;  %v4577_v45 = vcombine.high %v4567_v54, %v8003_v37  ;;  %v7083_v54 = vpop.permute.xlu0 %2803 }
 0x411   : > { %4442 = vrot.lane.b32.xlu0 %v4388_v9, %s5189_s17  ;;  %3676 = vrot.lane.b32.xlu1 %v3603_v28, %s5190_s26  ;;  %v2947_v28 = vcombine.high %v7070_v34, %v8003_v37  ;;  %v7110_v63 = vpop.permute.xlu0 %3049  ;;  %v8037_v9 = vld [vmem:[#allocation21_spill] sm:$0xff] }
 0x415   : > { %4696 = vrot.lane.b32.xlu0 %v4642_v2, %s5189_s17  ;;  %3932 = vrot.lane.b32.xlu1 %v3852_v36, %s5191_s29  ;;  %v7089_v36 = vpop.permute.xlu1 %2799 }
 0x419   : > { %3234 = vrot.lane.b32.xlu0 %v3201_v40, %s5190_s26  ;;  %4154 = vrot.lane.b32.xlu1 %v4074_v44, %s5191_s29  ;;  %v7124_v22 = vpop.permute.xlu1 %3045  ;;  %v3370_v40 = vcombine.high %v8038_v47, %v8037_v9  ;;  %v2916_v44 = vcombine.high %v2891_v24, %v2907_v31  ;;  %v2815_v31 = vcombine.low %v7072_v3, %v7089_v36  ;;  %v8041_v24 = vld [vmem:[#allocation32_spill] sm:$0xff] }
 0x41a   : > { %v3624_v55 = vcombine.high %v8042_v13, %v8041_v24  ;;  %v7169_v47 = vrot.slane %v4057_v33, %v5474_v50 }
 0x41b   : > { %v7158_v16 = vrot.slane %v2916_v44, %v5474_v50  ;;  %v2823_v44 = vrot.slane %v2815_v31, %v5456_v41 }
 0x41d   : > { %3458 = vrot.lane.b32.xlu0 %v3418_v17, %s5191_s29  ;;  %4410 = vrot.lane.b32.xlu1 %v4323_v60, %s5192_s30  ;;  %v4646_v17 = vcombine.high %v4642_v2, %v8003_v37  ;;  %v8040_v60 = vld [vmem:[#allocation18_spill] sm:$0xff]  ;;  %v7149_v2 = vrot.slane %v3370_v40, %v5456_v41  ;;  %v7155_v62 = vpop.permute.xlu1 %3053 }
 0x421   : > { %3712 = vrot.lane.b32.xlu0 %v3672_v6, %s5191_s29  ;;  %4664 = vrot.lane.b32.xlu1 %v4577_v45, %s5192_s30  ;;  %v3354_v6 = vcombine.high %v8040_v60, %v8039_v58  ;;  %v2831_v45 = vcombine.low %v7065_v23, %v7083_v54 }
 0x423   : > { %v7161_v19 = vrot.slane %v3354_v6, %v5456_v41  ;;  %v4560_v6 = vcombine.high %v6970_v35, %v6957_v0 }
 0x425   : > { %3968 = vrot.lane.b32.xlu0 %v3921_v12, %s5192_s30  ;;  %2980 = vrot.lane.b32.xlu1 %v2947_v28, %s5190_s26  ;;  %v7137_v12 = vrot.slane %v3835_v57, %v5474_v50  ;;  %v7141_v28 = vpop.permute.xlu0 %3057  ;;  %v2839_v57 = vrot.slane %v2831_v45, %v5456_v41  ;;  %v3401_v60 = vcombine.low %v7161_v19, %v7149_v2 }
 0x426   : > { %v3085_v9 = vcombine.low %v7110_v63, %v7141_v28 }
 0x427   : > { %v2847_v45 = vcombine.low %v2823_v44, %v2839_v57 }
 0x428   : > { %v3093_v33 = vrot.slane %v3085_v9, %v5456_v41 }
 0x429   : > { %4190 = vrot.lane.b32.xlu0 %v4143_v18, %s5192_s30  ;;  %3426 = vrot.lane.b32.xlu1 %v7100_v8, %s5187_s7  ;;  %v3170_v18 = vcombine.high %v7028_v26, %v7019_v56  ;;  %v8043_v56 = vld [vmem:[#allocation30_spill] sm:$0xff]  ;;  %v8044_v26 = vld [vmem:[#allocation28_spill] sm:$0xff]  ;;  %v7213_v9 = vrot.slane %v2847_v45, %v5474_v50 }
 0x42a   : > { %v3608_v40 = vcombine.high %v8044_v26, %v8043_v56  ;;  %v3904_v56 = vcombine.high %v6965_v49, %v6944_v61  ;;  %v4126_v49 = vcombine.high %v6979_v48, %v6982_v21  ;;  %v3350_v48 = vcombine.high %v7100_v8, %v8003_v37 }
 0x42b   : > { %v7186_v58 = vrot.slane %v3170_v18, %v5474_v50  ;;  %8045 = vst [vmem:[#allocation21_spill] sm:$0xff] %v7213_v9  ;;  %v2848_v21 = vcombine.high %v2823_v44, %v2839_v57 }
 0x42c   : > { %v7197_v24 = vrot.slane %v3608_v40, %v5456_v41  ;;  %v7236_v61 = vrot.slane %v3904_v56, %v5474_v50 }
 0x42d   : > { %4446 = vrot.lane.b32.xlu0 %v4392_v32, %s5193_s27  ;;  %3680 = vrot.lane.b32.xlu1 %v7116_v38, %s5187_s7  ;;  %v4306_v32 = vcombine.high %v6930_v4, %v6915_v29  ;;  %v7181_v29 = vrot.slane %v3624_v55, %v5456_v41  ;;  %v7209_v55 = vrot.slane %v3401_v60, %v5474_v50 }
 0x42e   : > { %v7271_v57 = vrot.slane %v2848_v21, %v5474_v50  ;;  %v8049_v21 = vld [vmem:[#allocation17_spill] sm:$0xff] }
 0x42f   : > { %v7194_v31 = vrot.slane %v4306_v32, %v5474_v50  ;;  %v3655_v0 = vcombine.low %v7197_v24, %v7181_v29  ;;  %v4574_v32 = vrot.slane %v4560_v6, %v5474_v50  ;;  %v7240_v45 = vpop.permute.xlu1 %4422 }
 0x431   : > { %4700 = vrot.lane.b32.xlu0 %v4646_v17, %s5193_s27  ;;  %3936 = vrot.lane.b32.xlu1 %v7137_v12, %s5188_s16  ;;  %v3069_v17 = vcombine.low %v7124_v22, %v7155_v62  ;;  %v7223_v40 = vrot.slane %v3655_v0, %v5474_v50 }
 0x433   : > { %v3077_v13 = vrot.slane %v3069_v17, %v5456_v41  ;;  %v2879_v17 = vcombine.high %v7213_v9, %v8003_v37  ;;  %v5043_v9 = vld [vmem:[#allocation2 + $0x8] ss:$48 sps:$4 sm:$0xff]  }
 0x435   : > { %2984 = vrot.lane.b32.xlu0 %v7158_v16, %s5187_s7  ;;  %4158 = vrot.lane.b32.xlu1 %v7169_v47, %s5188_s16  ;;  %v3101_v18 = vcombine.low %v3077_v13, %v3093_v33  ;;  %v3102_v8 = vcombine.high %v3077_v13, %v3093_v33 }
 0x437   : > { %v7183_v4 = vpop.permute.xlu0 %4676  ;;  %v7228_v60 = vrot.slane %v3101_v18, %v5474_v50  ;;  %v7285_v13 = vrot.slane %v3102_v8, %v5474_v50 }
 0x439   : > { %3238 = vrot.lane.b32.xlu0 %v7186_v58, %s5187_s7  ;;  %4414 = vrot.lane.b32.xlu1 %v7194_v31, %s5189_s17  ;;  %8046 = vst [vmem:[#allocation20_spill] sm:$0xff] %v7228_v60  ;;  %v3133_v0 = vcombine.high %v7228_v60, %v8003_v37 }
 0x43b   : > { %v7206_v35 = vpop.permute.xlu0 %4426 }
 0x43d   : > { %3462 = vrot.lane.b32.xlu0 %v7209_v55, %s5188_s16  ;;  %4668 = vrot.lane.b32.xlu1 %v4574_v32, %s5189_s17 }
 0x43f   : > { %v7220_v26 = vpop.permute.xlu0 %4680  ;;  %v7252_v56 = vpop.permute.xlu1 %4394 }
 0x440   : > { %8047 = vst [vmem:[#allocation19_spill] sm:$0xff] %v7252_v56  ;;  %v5045_v56 = vld [vmem:[#allocation2 + $0x20] ss:$48 sps:$4 sm:$0xff]  }
 0x441   : > { %3716 = vrot.lane.b32.xlu0 %v7223_v40, %s5188_s16  ;;  %2952 = vrot.lane.b32.xlu1 %v2879_v17, %s5190_s26  ;;  %v7250_v17 = vrot.slane %v4126_v49, %v5474_v50  ;;  %v3604_v49 = vcombine.high %v7116_v38, %v8003_v37  ;;  %v2659_v38 = vrot.slane %v5045_v56, %v5456_v41 }
 0x442   : > { %v3587_v56 = vcombine.low %v6868_v5, %v6871_v51 }
 0x443   : > { %v7233_v6 = vpop.permute.xlu0 %4174 }
 0x445   : > { %3972 = vrot.lane.b32.xlu0 %v7236_v61, %s5189_s17  ;;  %3206 = vrot.lane.b32.xlu1 %v3133_v0, %s5190_s26  ;;  %v4578_v0 = vcombine.high %v4574_v32, %v8003_v37  ;;  %v3853_v32 = vcombine.high %v7137_v12, %v8003_v37  ;;  %v4075_v12 = vcombine.high %v7169_v47, %v8003_v37 }
 0x447   : > { %v7247_v18 = vpop.permute.xlu0 %4430  ;;  %v7262_v60 = vpop.permute.xlu1 %4648 }
 0x448   : > { %8048 = vst [vmem:[#allocation18_spill] sm:$0xff] %v7262_v60 }
 0x449   : > { %4194 = vrot.lane.b32.xlu0 %v7250_v17, %s5189_s17  ;;  %3430 = vrot.lane.b32.xlu1 %v3350_v48, %s5191_s29  ;;  %v2643_v48 = vrot.slane %v5043_v9, %v5456_v41 }
 0x44b   : > { %v7259_v42 = vpop.permute.xlu0 %4684  ;;  %v2667_v9 = vcombine.low %v2643_v48, %v2659_v38 }
 0x44d   : > { %4672 = vrot.lane.b32.xlu0 %v4578_v0, %s5193_s27  ;;  %3684 = vrot.lane.b32.xlu1 %v3604_v49, %s5191_s29  ;;  %v8050_v0 = vld [vmem:[#allocation16_spill] sm:$0xff]  ;;  %v7308_v47 = vrot.slane %v2667_v9, %v5474_v50 }
 0x44e   : > { %v3333_v49 = vcombine.low %v8050_v0, %v8049_v21 }
 0x44f   : > { %v7268_v46 = vpop.permute.xlu0 %3956  ;;  %v7273_v44 = vpop.permute.xlu1 %3952  ;;  %8053 = vst [vmem:[#allocation30_spill] sm:$0xff] %v7308_v47 }
 0x450   : > { %v7301_v8 = vrot.slane %v3333_v49, %v5474_v50  ;;  %v7318_v49 = vrot.slane %v3587_v56, %v5474_v50 }
 0x451   : > { %2956 = vrot.lane.b32.xlu0 %v7271_v57, %s5187_s7  ;;  %3940 = vrot.lane.b32.xlu1 %v3853_v32, %s5192_s30 }
 0x453   : > { %v7282_v33 = vpop.permute.xlu0 %4178  ;;  %v7289_v60 = vpop.permute.xlu1 %4398 }
 0x454   : > { %8051 = vst [vmem:[#allocation32_spill] sm:$0xff] %v7289_v60  ;;  %v4324_v60 = vcombine.high %v7194_v31, %v8003_v37  ;;  %v2699_v31 = vcombine.high %v7308_v47, %v8003_v37  ;;  %v2948_v47 = vcombine.high %v7158_v16, %v8003_v37 }
 0x455   : > { %3210 = vrot.lane.b32.xlu0 %v7285_v13, %s5187_s7  ;;  %4162 = vrot.lane.b32.xlu1 %v4075_v12, %s5192_s30  ;;  %v3836_v12 = vcombine.high %v7106_v1, %v7095_v53  ;;  %v4058_v1 = vcombine.high %v7119_v39, %v7122_v30 }
 0x457   : > { %v7298_v32 = vpop.permute.xlu0 %4434  ;;  %v7303_v34 = vpop.permute.xlu1 %4652  ;;  %v7332_v53 = vrot.slane %v3836_v12, %v5474_v50  ;;  %v4072_v30 = vrot.slane %v4058_v1, %v5474_v50  ;;  %v2668_v12 = vcombine.high %v2643_v48, %v2659_v38 }
 0x458   : > { %8052 = vst [vmem:[#allocation31_spill] sm:$0xff] %v7303_v34 }
 0x459   : > { %3434 = vrot.lane.b32.xlu0 %v7301_v8, %s5188_s16  ;;  %4418 = vrot.lane.b32.xlu1 %v4324_v60, %s5193_s27  ;;  %v2900_v60 = vcombine.high %v6880_v14, %v6897_v10  ;;  %v3154_v10 = vcombine.high %v6934_v27, %v6989_v52 }
 0x45b   : > { %v7315_v15 = vpop.permute.xlu0 %4688  ;;  %v7320_v34 = vpop.permute.xlu1 %3924  ;;  %v7346_v14 = vrot.slane %v2900_v60, %v5456_v41  ;;  %v7367_v52 = vrot.slane %v3154_v10, %v5456_v41  ;;  %v3673_v10 = vcombine.high %v7223_v40, %v8003_v37  ;;  %v3656_v40 = vcombine.high %v7197_v24, %v7181_v29 }
 0x45c   : > { %8054 = vst [vmem:[#allocation28_spill] sm:$0xff] %v7320_v34  ;;  %v2884_v34 = vcombine.high %v6884_v25, %v6904_v20  ;;  %v3202_v25 = vcombine.high %v7186_v58, %v8003_v37  ;;  %v2682_v58 = vrot.slane %v2668_v12, %v5474_v50  ;;  %v2880_v29 = vcombine.high %v7271_v57, %v8003_v37 }
 0x45d   : > { %3688 = vrot.lane.b32.xlu0 %v7318_v49, %s5188_s16  ;;  %2732 = vrot.lane.b32.xlu1 %v2699_v31, %s5190_s26 }
 0x45e   : > { %v7358_v20 = vrot.slane %v2884_v34, %v5456_v41  ;;  %v3419_v34 = vcombine.high %v7209_v55, %v8003_v37  ;;  %v2700_v57 = vcombine.high %v2682_v58, %v8003_v37 }
 0x45f   : > { %v7329_v9 = vpop.permute.xlu0 %3704  ;;  %v7336_v56 = vpop.permute.xlu1 %4146 }
 0x460   : > { %v2931_v27 = vcombine.low %v7358_v20, %v7346_v14 }
 0x461   : > { %3944 = vrot.lane.b32.xlu0 %v7332_v53, %s5189_s17  ;;  %2988 = vrot.lane.b32.xlu1 %v2948_v47, %s5191_s29  ;;  %v3138_v47 = vcombine.high %v6961_v43, %v6998_v11 }
 0x462   : > { %v2939_v60 = vrot.slane %v2931_v27, %v5474_v50  ;;  %v3922_v27 = vcombine.high %v7236_v61, %v8003_v37  ;;  %v3670_v61 = vrot.slane %v3656_v40, %v5474_v50 }
 0x463   : > { %v7350_v39 = vpop.permute.xlu0 %3960  ;;  %v7353_v16 = vpop.permute.xlu1 %4402  ;;  %v7377_v43 = vrot.slane %v3138_v47, %v5456_v41 }
 0x464   : > { %8055 = vst [vmem:[#allocation17_spill] sm:$0xff] %v7353_v16 }
 0x465   : > { %4166 = vrot.lane.b32.xlu0 %v4072_v30, %s5189_s17  ;;  %3242 = vrot.lane.b32.xlu1 %v3202_v25, %s5191_s29  ;;  %v3185_v11 = vcombine.low %v7377_v43, %v7367_v52  ;;  %v3402_v25 = vcombine.high %v7161_v19, %v7149_v2  ;;  %v4144_v2 = vcombine.high %v7250_v17, %v8003_v37 }
 0x466   : > { %v4076_v17 = vcombine.high %v4072_v30, %v8003_v37 }
 0x467   : > { %v7369_v48 = vpop.permute.xlu0 %4182  ;;  %v7372_v38 = vpop.permute.xlu1 %4656  ;;  %v3193_v12 = vrot.slane %v3185_v11, %v5474_v50 }
 0x469   : > { %2736 = vrot.lane.b32.xlu0 %v2682_v58, %s5187_s7  ;;  %3466 = vrot.lane.b32.xlu1 %v3419_v34, %s5192_s30  ;;  %v3605_v58 = vcombine.high %v7318_v49, %v8003_v37 }
 0x46b   : > { %v7383_v31 = vpop.permute.xlu0 %4438  ;;  %v7386_v1 = vpop.permute.xlu1 %3450 }
 0x46d   : > { %2992 = vrot.lane.b32.xlu0 %v2939_v60, %s5188_s16  ;;  %3720 = vrot.lane.b32.xlu1 %v3673_v10, %s5192_s30  ;;  %v3416_v10 = vrot.slane %v3402_v25, %v5474_v50 }
 0x46f   : > { %v7392_v55 = vpop.permute.xlu0 %4692  ;;  %v7397_v47 = vpop.permute.xlu1 %3928 }
 0x471   : > { %3246 = vrot.lane.b32.xlu0 %v3193_v12, %s5188_s16  ;;  %3976 = vrot.lane.b32.xlu1 %v3922_v27, %s5193_s27  ;;  %v3134_v27 = vcombine.high %v7285_v13, %v8003_v37  ;;  %v2949_v13 = vcombine.high %v2939_v60, %v8003_v37  ;;  %v5047_v60 = vld [vmem:[#allocation2 + $0xc] ss:$48 sps:$4 sm:$0xff]  }
 0x473   : > { %v3455_v34 = vpop.permute.xlu0 %3454  ;;  %v7406_v16 = vpop.permute.xlu1 %4150 }
 0x475   : > { %3470 = vrot.lane.b32.xlu0 %v3416_v10, %s5189_s17  ;;  %4198 = vrot.lane.b32.xlu1 %v4144_v2, %s5193_s27 }
 0x477   : > { %v7412_v19 = vpop.permute.xlu0 %3708  ;;  %v7415_v11 = vpop.permute.xlu1 %4406 }
 0x478   : > { %8056 = vst [vmem:[#allocation16_spill] sm:$0xff] %v7415_v11  ;;  %v5048_v11 = vld [vmem:[#allocation2 + $0x24] ss:$48 sps:$4 sm:$0xff]  }
 0x479   : > { %3724 = vrot.lane.b32.xlu0 %v3670_v61, %s5189_s17  ;;  %2960 = vrot.lane.b32.xlu1 %v2880_v29, %s5191_s29  ;;  %v3351_v29 = vcombine.high %v7301_v8, %v8003_v37  ;;  %v2816_v8 = vcombine.high %v7072_v3, %v7089_v36  ;;  %v3070_v36 = vcombine.high %v7124_v22, %v7155_v62  ;;  %v8058_v22 = vld [vmem:[#allocation14_spill] sm:$0xff]  ;;  %v8059_v62 = vld [vmem:[#allocation13_spill] sm:$0xff] }
 0x47b   : > { %v7421_v24 = vpop.permute.xlu0 %3964  ;;  %v7424_v25 = vpop.permute.xlu1 %4660  ;;  %v7466_v3 = vrot.slane %v2816_v8, %v5456_v41 }
 0x47c   : > { %8057 = vst [vmem:[#allocation39_spill] sm:$0xff] %v7424_v25  ;;  %v3674_v25 = vcombine.high %v3670_v61, %v8003_v37  ;;  %v8062_v61 = vld [vmem:[#allocation35_spill] sm:$0xff] }
 0x47d   : > { %4170 = vrot.lane.b32.xlu0 %v4076_v17, %s5193_s27  ;;  %3214 = vrot.lane.b32.xlu1 %v3134_v27, %s5191_s29  ;;  %v2832_v17 = vcombine.high %v7065_v23, %v7083_v54  ;;  %v3086_v54 = vcombine.high %v7110_v63, %v7141_v28  ;;  %v7475_v63 = vrot.slane %v5047_v60, %v5456_v41 }
 0x47e   : > { %v7478_v28 = vrot.slane %v5048_v11, %v5456_v41  ;;  %v3484_v11 = vsel %vm449_vm3, %v6888_v59, %v7386_v1  ;;  %v8061_v1 = vld [vmem:[#allocation29_spill] sm:$0xff] }
 0x47f   : > { %v7430_v40 = vpop.permute.xlu0 %4186  ;;  %v7433_v2 = vpop.permute.xlu1 %3422  ;;  %v7456_v23 = vrot.slane %v2832_v17, %v5456_v41  ;;  %v3420_v17 = vcombine.high %v3416_v10, %v8003_v37  ;;  %v7495_v10 = vrot.slane %v3070_v36, %v5456_v41  ;;  %v3485_v60 = vsel %vm451_vm4, %v3484_v11, %v3455_v34 }
 0x480   : > { %v3986_v34 = vsel %vm449_vm3, %v8061_v1, %v7273_v44  ;;  %v2932_v11 = vcombine.high %v7358_v20, %v7346_v14  ;;  %v3186_v20 = vcombine.high %v7377_v43, %v7367_v52 }
 0x481   : > { %2740 = vrot.lane.b32.xlu0 %v2700_v57, %s5191_s29  ;;  %3438 = vrot.lane.b32.xlu1 %v3351_v29, %s5192_s30  ;;  %v3203_v29 = vcombine.high %v3193_v12, %v8003_v37 }
 0x483   : > { %v7439_v30 = vpop.permute.xlu0 %4442  ;;  %v7444_v27 = vpop.permute.xlu1 %3676 }
 0x485   : > { %2996 = vrot.lane.b32.xlu0 %v2949_v13, %s5192_s30  ;;  %3692 = vrot.lane.b32.xlu1 %v3605_v58, %s5192_s30  ;;  %v3854_v13 = vcombine.high %v7332_v53, %v8003_v37  ;;  %v2863_v53 = vcombine.low %v7466_v3, %v7456_v23  ;;  %v7483_v58 = vrot.slane %v3086_v54, %v5456_v41 }
 0x487   : > { %v7452_v57 = vpop.permute.xlu0 %4696  ;;  %v7460_v49 = vpop.permute.xlu1 %3932  ;;  %v7514_v59 = vrot.slane %v2863_v53, %v5474_v50 }
 0x489   : > { %3250 = vrot.lane.b32.xlu0 %v3203_v29, %s5192_s30  ;;  %3948 = vrot.lane.b32.xlu1 %v3854_v13, %s5193_s27  ;;  %v8060_v29 = vcombine.high %v8058_v22, %v8059_v62  ;;  %v2683_v22 = vcombine.low %v7475_v63, %v7478_v28 }
 0x48b   : > { %v7471_v12 = vpop.permute.xlu0 %3234  ;;  %v7485_v8 = vpop.permute.xlu1 %4154  ;;  %v7491_v13 = vrot.slane %v8060_v29, %v5474_v50  ;;  %v3738_v29 = vsel %vm449_vm3, %v8062_v61, %v7329_v9  ;;  %v3987_v9 = vsel %vm451_vm4, %v3986_v34, %v7268_v46  ;;  %v8063_v46 = vld [vmem:[#allocation26_spill] sm:$0xff] }
 0x48c   : > { %v3739_v53 = vsel %vm451_vm4, %v3738_v29, %v7412_v19  ;;  %v3988_v14 = vsel %vm453_vm5, %v3987_v9, %v7350_v39  ;;  %v4208_v34 = vsel %vm449_vm3, %v8063_v46, %v7233_v6  ;;  %v8064_v29 = vcombine.high %v8050_v0, %v8049_v21  ;;  %v8068_v46 = vld [vmem:[#allocation36_spill] sm:$0xff] }
 0x48d   : > { %3474 = vrot.lane.b32.xlu0 %v3420_v17, %s5193_s27  ;;  %2708 = vrot.lane.b32.xlu1 %v7491_v13, %s5187_s7  ;;  %v3117_v17 = vcombine.low %v7495_v10, %v7483_v58  ;;  %v3989_v19 = vsel %vm455_vm6, %v3988_v14, %v7421_v24  ;;  %v4209_v43 = vsel %vm451_vm4, %v4208_v34, %v7282_v33  ;;  %v8065_v24 = vld [vmem:[#allocation23_spill] sm:$0xff] }
 0x48e   : > { %v7562_v52 = vrot.slane %v8064_v29, %v5474_v50  ;;  %v4456_v6 = vsel %vm449_vm3, %v8065_v24, %v7240_v45  ;;  %v7584_v45 = vrot.slane %v3186_v20, %v5474_v50  ;;  %v3477_v9 = vsel %vm449_vm3, %v7010_v7, %v7433_v2  ;;  %v8070_v24 = vld [vmem:[#allocation33_spill] sm:$0xff] }
 0x48f   : > { %v3459_v54 = vpop.permute.xlu0 %3458  ;;  %v7508_v36 = vpop.permute.xlu1 %4410  ;;  %v7536_v1 = vrot.slane %v3117_v17, %v5474_v50  ;;  %v7550_v17 = vrot.slane %v2932_v11, %v5474_v50  ;;  %v4210_v11 = vsel %vm453_vm5, %v4209_v43, %v7369_v48  ;;  %v4457_v21 = vsel %vm451_vm4, %v4456_v6, %v7206_v35 }
 0x490   : > { %v7511_v62 = vsel %vm453_vm5, %v3485_v60, %v3459_v54  ;;  %v4211_v0 = vsel %vm455_vm6, %v4210_v11, %v7430_v40  ;;  %v4458_v48 = vsel %vm453_vm5, %v4457_v21, %v7247_v18  ;;  %v2632_v29 = vcombine.high %v7491_v13, %v8003_v37 }
 0x491   : > { %3728 = vrot.lane.b32.xlu0 %v3674_v25, %s5193_s27  ;;  %2964 = vrot.lane.b32.xlu1 %v7514_v59, %s5188_s16  ;;  %v2691_v25 = vrot.slane %v2683_v22, %v5474_v50  ;;  %v4459_v40 = vsel %vm455_vm6, %v4458_v48, %v7298_v32 }
 0x492   : > { %v4460_v7 = vsel %vm457_vm7, %v4459_v40, %v7383_v31 }
 0x493   : > { %v3713_v60 = vpop.permute.xlu0 %3712  ;;  %v7530_v54 = vpop.permute.xlu1 %4664  ;;  %v4461_v32 = vsel %vm459_vm8, %v4460_v7, %v7439_v30  ;;  %v2701_v21 = vcombine.high %v2691_v25, %v8003_v37 }
 0x494   : > { %v7533_v44 = vsel %vm453_vm5, %v3739_v53, %v3713_v60  ;;  %v8066_v53 = vcombine.high %v6868_v5, %v6871_v51  ;;  %v8067_v51 = vld [vmem:[#allocation24_spill] sm:$0xff] }
 0x495   : > { %2744 = vrot.lane.b32.xlu0 %v2691_v25, %s5188_s16  ;;  %3218 = vrot.lane.b32.xlu1 %v7536_v1, %s5188_s16  ;;  %v4710_v18 = vsel %vm449_vm3, %v8067_v51, %v7183_v4  ;;  %v3731_v4 = vsel %vm449_vm3, %v8068_v46, %v7444_v27  ;;  %v8071_v25 = vld [vmem:[#allocation34_spill] sm:$0xff] }
 0x496   : > { %v3602_v60 = vrot.slane %v8066_v53, %v5474_v50  ;;  %v4711_v2 = vsel %vm451_vm4, %v4710_v18, %v7220_v26  ;;  %v4201_v51 = vsel %vm449_vm3, %v8071_v25, %v7336_v56  ;;  %v8072_v18 = vld [vmem:[#allocation38_spill] sm:$0xff] }
 0x497   : > { %v3969_v22 = vpop.permute.xlu0 %3968  ;;  %v2981_v61 = vpop.permute.xlu1 %2980 }
 0x498   : > { %v7556_v39 = vsel %vm457_vm7, %v3989_v19, %v3969_v22  ;;  %v3606_v19 = vcombine.high %v3602_v60, %v8003_v37  ;;  %v4712_v22 = vsel %vm453_vm5, %v4711_v2, %v7259_v42  ;;  %v8069_v42 = vld [vmem:[#allocation28_spill] sm:$0xff]  ;;  %v2950_v2 = vcombine.high %v7550_v17, %v8003_v37 }
 0x499   : > { %3000 = vrot.lane.b32.xlu0 %v7550_v17, %s5189_s17  ;;  %3442 = vrot.lane.b32.xlu1 %v7562_v52, %s5189_s17  ;;  %v4713_v26 = vsel %vm455_vm6, %v4712_v22, %v7315_v15  ;;  %v3979_v6 = vsel %vm449_vm3, %v8070_v24, %v8069_v42  ;;  %v8073_v17 = vld [vmem:[#allocation37_spill] sm:$0xff] }
 0x49a   : > { %v4714_v27 = vsel %vm457_vm7, %v4713_v26, %v7392_v55  ;;  %v3980_v13 = vsel %vm451_vm4, %v3979_v6, %v7397_v47  ;;  %v5051_v47 = vld [vmem:[#allocation2 + $0x18] sm:$0xff]  ;;  %v3268_v46 = vsel %vm449_vm3, %v8073_v17, %v7471_v12 }
 0x49b   : > { %v4191_v33 = vpop.permute.xlu0 %4190  ;;  %v3427_v35 = vpop.permute.xlu1 %3426  ;;  %v4715_v15 = vsel %vm459_vm8, %v4714_v27, %v7452_v57 }
 0x49c   : > { %v7592_v14 = vsel %vm457_vm7, %v4211_v0, %v4191_v33  ;;  %v7597_v5 = vsel %vm451_vm4, %v3477_v9, %v3427_v35  ;;  %v5049_v0 = vld [vmem:[#allocation2 + $0x30] sm:$0xff]  ;;  %v5050_v33 = vld [vmem:[#allocation2] sm:$0xff]  ;;  %v2881_v9 = vcombine.high %v7514_v59, %v8003_v37  ;;  %v5052_v35 = vld [vmem:[#allocation2 + $0x48] sm:$0xff]  ;;  %v3014_v59 = vsel %vm449_vm3, %v8072_v18, %v2981_v61 }
 0x49d   : > { %3254 = vrot.lane.b32.xlu0 %v7584_v45, %s5189_s17  ;;  %3696 = vrot.lane.b32.xlu1 %v3602_v60, %s5189_s17  ;;  %v2568_v53 = vcombine.high %v5050_v33, %v5049_v0  ;;  %v3981_v60 = vsel %vm453_vm5, %v3980_v13, %v7460_v49  ;;  %v2584_v40 = vcombine.high %v5051_v47, %v5052_v35 }
 0x49e   : > { %v4202_v49 = vsel %vm451_vm4, %v4201_v51, %v7406_v16  ;;  %v3135_v16 = vcombine.high %v7536_v1, %v8003_v37  ;;  %v3204_v1 = vcombine.high %v7584_v45, %v8003_v37  ;;  %v2864_v45 = vcombine.high %v7466_v3, %v7456_v23 }
 0x49f   : > { %v4447_v20 = vpop.permute.xlu0 %4446  ;;  %v3681_v34 = vpop.permute.xlu1 %3680  ;;  %v7667_v22 = vrot.slane %v2584_v40, %v5456_v41  ;;  %v7736_v40 = vld [vmem:[#allocation7] sm:$0xff] }
 0x4a0   : > { %v4462_v31 = vsel %vm461_vm9, %v4461_v32, %v4447_v20  ;;  %v7623_v30 = vsel %vm451_vm4, %v3731_v4, %v3681_v34  ;;  %v7657_v32 = vrot.slane %v2568_v53, %v5456_v41  ;;  %v4203_v20 = vsel %vm453_vm5, %v4202_v49, %v7485_v8  ;;  %4921 = vmatmul.mubr.msk.f32.vlgmr.msra.gmra.mxu0 %vm2426_vm12, %v7736_v40 }
 0x4a1   : > { %v4466_v43 = vrot.slane %v4462_v31, 4  ;;  %3700 = vrot.lane.b32.xlu0 %v3606_v19, %s5193_s27  ;;  %2712 = vrot.lane.b32.xlu1 %v2632_v29, %s5191_s29  ;;  %v3118_v8 = vcombine.high %v7495_v10, %v7483_v58  ;;  %v2684_v41 = vcombine.high %v7475_v63, %v7478_v28  ;;  %v3352_v29 = vcombine.high %v7562_v52, %v8003_v37 }
 0x4a2   : > { %v2615_v10 = vcombine.low %v7657_v32, %v7667_v22  ;;  %v2878_v23 = vrot.slane %v2864_v45, %v5474_v50 }
 0x4a3   : > { %4470 = vst [vmem:[#allocation3 + $0x38] sm:$0xf0] %v4466_v43  ;;  %v4701_v11 = vpop.permute.xlu0 %4700  ;;  %v3937_v48 = vpop.permute.xlu1 %3936  ;;  %v2698_v63 = vrot.slane %v2684_v41, %v5474_v50  ;;  %v3132_v28 = vrot.slane %v3118_v8, %v5474_v50  ;;  %v8079_v8 = vld [vmem:[#allocation19_spill] sm:$0xff] }
 0x4a4   : > { %v4716_v55 = vsel %vm461_vm9, %v4715_v15, %v4701_v11  ;;  %v7643_v57 = vsel %vm455_vm6, %v3981_v60, %v3937_v48  ;;  %v2623_v43 = vrot.slane %v2615_v10, %v5474_v50  ;;  %v8074_v15 = vld [vmem:[#allocation18_spill] sm:$0xff]  ;;  %v8075_v11 = vld [vmem:[#allocation27_spill] sm:$0xff]  ;;  %v2882_v18 = vcombine.high %v2878_v23, %v8003_v37  ;;  %v8083_v10 = vld [vmem:[#allocation17_spill] sm:$0xff] }
 0x4a5   : > { %4718 = vst [vmem:[#allocation3 + $0x48] sm:$0xf] %v4716_v55  ;;  %2748 = vrot.lane.b32.xlu0 %v2701_v21, %s5192_s30  ;;  %2968 = vrot.lane.b32.xlu1 %v2881_v9, %s5192_s30  ;;  %v3136_v24 = vcombine.high %v3132_v28, %v8003_v37  ;;  %v4703_v21 = vsel %vm449_vm3, %v8075_v11, %v8074_v15  ;;  %v8077_v55 = vld [vmem:[#allocation39_spill] sm:$0xff] }
 0x4a6   : > { %v2633_v48 = vcombine.high %v2623_v43, %v8003_v37 }
 0x4a7   : > { %v2985_v7 = vpop.permute.xlu0 %2984  ;;  %v4159_v19 = vpop.permute.xlu1 %4158 }
 0x4a8   : > { %v7662_v56 = vsel %vm451_vm4, %v3014_v59, %v2985_v7  ;;  %v7670_v61 = vsel %vm455_vm6, %v4203_v20, %v4159_v19  ;;  %v8078_v59 = vld [vmem:[#allocation21_spill] sm:$0xff] }
 0x4a9   : > { %3004 = vrot.lane.b32.xlu0 %v2950_v2, %s5193_s27  ;;  %3222 = vrot.lane.b32.xlu1 %v3135_v16, %s5192_s30 }
 0x4ab   : > { %v3239_v4 = vpop.permute.xlu0 %3238  ;;  %v7683_v34 = vpop.permute.xlu1 %4414 }
 0x4ac   : > { %v7686_v31 = vsel %vm451_vm4, %v3268_v46, %v3239_v4  ;;  %v4728_v58 = vld [vmem:[#allocation3 + $0x48] sm:$0x1f]  ;;  %v8082_v4 = vld [vmem:[#allocation32_spill] sm:$0xff] }
 0x4ad   : > { %3258 = vrot.lane.b32.xlu0 %v3204_v1, %s5193_s27  ;;  %4930 = vmatprep.subr.msk.mxu1 %vm2430_vm11, %v4728_v58 }
 0x4ae   : > { %3446 = vrot.lane.b32.xlu1 %v3352_v29, %s5193_s27 }
 0x4af   : > { %v3463_v12 = vpop.permute.xlu0 %3462  ;;  %v4669_v26 = vpop.permute.xlu1 %4668 }
 0x4b0   : > { %v7701_v52 = vsel %vm455_vm6, %v7511_v62, %v3463_v12  ;;  %v2702_v62 = vcombine.high %v2698_v63, %v8003_v37 }
 0x4b1   : > { %2752 = vrot.lane.b32.xlu0 %v2698_v63, %s5189_s17  ;;  %v8084_v63 = vld [vmem:[#allocation16_spill] sm:$0xff] }
 0x4b2   : > { %2716 = vrot.lane.b32.xlu1 %v2623_v43, %s5188_s16 }
 0x4b3   : > { %v3717_v42 = vpop.permute.xlu0 %3716  ;;  %v2953_v6 = vpop.permute.xlu1 %2952 }
 0x4b4   : > { %v7709_v27 = vsel %vm455_vm6, %v7533_v44, %v3717_v42  ;;  %v8076_v44 = vld [vmem:[#allocation31_spill] sm:$0xff]  ;;  %v3007_v7 = vsel %vm449_vm3, %v8078_v59, %v2953_v6 }
 0x4b5   : > { %3230 = vrot.lane.b32.xlu0 %v3136_v24, %s5193_s27  ;;  %v4704_v0 = vsel %vm451_vm4, %v4703_v21, %v8076_v44 }
 0x4b6   : > { %2972 = vrot.lane.b32.xlu1 %v2878_v23, %s5189_s17  ;;  %v4705_v53 = vsel %vm453_vm5, %v4704_v0, %v7372_v38  ;;  %v8085_v0 = vld [vmem:[#allocation30_spill] sm:$0xff] }
 0x4b7   : > { %v7714_v3 = vpop.permute.xlu0 %3972  ;;  %v3207_v13 = vpop.permute.xlu1 %3206  ;;  %v4706_v9 = vsel %vm455_vm6, %v4705_v53, %v8077_v55 }
 0x4b8   : > { %v4707_v35 = vsel %vm457_vm7, %v4706_v9, %v7530_v54 }
 0x4b9   : > { %2756 = vrot.lane.b32.xlu0 %v2702_v62, %s5193_s27  ;;  %v4708_v25 = vsel %vm459_vm8, %v4707_v35, %v4669_v26 }
 0x4ba   : > { %3226 = vrot.lane.b32.xlu1 %v3132_v28, %s5189_s17 }
 0x4bb   : > { %v7724_v33 = vpop.permute.xlu0 %4194  ;;  %v3431_v60 = vpop.permute.xlu1 %3430 }
 0x4bc   : > { %v3479_v47 = vsel %vm453_vm5, %v7597_v5, %v3431_v60  ;;  %v2616_v5 = vcombine.high %v7657_v32, %v7667_v22  ;;  %v8080_v32 = vld [vmem:[#allocation25_spill] sm:$0xff] }
 0x4bd   : > { %v4449_v22 = vsel %vm449_vm3, %v8080_v32, %v8079_v8 }
 0x4be   : > { %2720 = vrot.lane.b32.xlu1 %v2633_v48, %s5192_s30  ;;  %v2630_v16 = vrot.slane %v2616_v5, %v5474_v50  ;;  %v4450_v1 = vsel %vm451_vm4, %v4449_v22, %v8082_v4 }
 0x4bf   : > { %v4673_v38 = vpop.permute.xlu0 %4672  ;;  %v3685_v51 = vpop.permute.xlu1 %3684  ;;  %v4451_v12 = vsel %vm453_vm5, %v4450_v1, %v8083_v10 }
 0x4c0   : > { %v4709_v49 = vsel %vm461_vm9, %v4708_v25, %v4673_v38  ;;  %v3733_v54 = vsel %vm453_vm5, %v7623_v30, %v3685_v51  ;;  %v8081_v30 = vld [vmem:[#allocation20_spill] sm:$0xff]  ;;  %v2634_v58 = vcombine.high %v2630_v16, %v8003_v37  ;;  %v4452_v28 = vsel %vm455_vm6, %v4451_v12, %v8084_v63 }
 0x4c1   : > { %4717 = vst [vmem:[#allocation3 + $0x40] sm:$0xf] %v4709_v49  ;;  %v3261_v17 = vsel %vm449_vm3, %v8081_v30, %v3207_v13  ;;  %v4453_v45 = vsel %vm457_vm7, %v4452_v28, %v7508_v36  ;;  %v4213_v49 = vsel %vm459_vm8, %v7592_v14, %v7724_v33 }
 0x4c2   : > { %2976 = vrot.lane.b32.xlu1 %v2882_v18, %s5193_s27  ;;  %v4454_v43 = vsel %vm459_vm8, %v4453_v45, %v7683_v34 }
 0x4c3   : > { %v2957_v2 = vpop.permute.xlu0 %2956  ;;  %v7750_v20 = vpop.permute.xlu1 %3940 }
 0x4c4   : > { %v3008_v19 = vsel %vm451_vm4, %v3007_v7, %v2957_v2 }
 0x4c6   : > { %2724 = vrot.lane.b32.xlu1 %v2630_v16, %s5189_s17 }
 0x4c7   : > { %v3211_v46 = vpop.permute.xlu0 %3210  ;;  %v4163_v41 = vpop.permute.xlu1 %4162 }
 0x4c8   : > { %v7763_v29 = vsel %vm451_vm4, %v3261_v17, %v3211_v46  ;;  %v4727_v50 = vld [vmem:[#allocation3 + $0x40] sm:$0x1f] }
 0x4c9   : > { %4931 = vmatpush1.msk.msra.mxu1 %vm2430_vm11, %v4727_v50 }
 0x4ca   : > { %2728 = vrot.lane.b32.xlu1 %v2634_v58, %s5193_s27 }
 0x4cb   : > { %v3435_v26 = vpop.permute.xlu0 %3434  ;;  %v4419_v42 = vpop.permute.xlu1 %4418 }
 0x4cc   : > { %v7777_v37 = vsel %vm455_vm6, %v3479_v47, %v3435_v26  ;;  %v4455_v24 = vsel %vm461_vm9, %v4454_v43, %v4419_v42 }
 0x4cd   : > { %v4465_v6 = vrot.slane %v4455_v24, 4 }
 0x4cf   : > { %v3689_v23 = vpop.permute.xlu0 %3688  ;;  %4469 = vst [vmem:[#allocation3 + $0x30] sm:$0xf0] %v4465_v6  ;;  %v2733_v62 = vpop.permute.xlu1 %2732 }
 0x4d0   : > { %v7781_v13 = vsel %vm455_vm6, %v3733_v54, %v3689_v23  ;;  %v2766_v53 = vsel %vm449_vm3, %v8085_v0, %v2733_v62 }
 0x4d3   : > { %v3945_v15 = vpop.permute.xlu0 %3944  ;;  %v2989_v11 = vpop.permute.xlu1 %2988 }
 0x4d4   : > { %v7785_v36 = vsel %vm453_vm5, %v7662_v56, %v2989_v11  ;;  %v3991_v56 = vsel %vm459_vm8, %v7556_v39, %v7714_v3  ;;  %v4205_v39 = vsel %vm457_vm7, %v7670_v61, %v4163_v41  ;;  %v3983_v61 = vsel %vm457_vm7, %v7643_v57, %v7750_v20 }
 0x4d5   : > { %v3984_v46 = vsel %vm459_vm8, %v3983_v61, %v3945_v15 }
 0x4d7   : > { %v4167_v34 = vpop.permute.xlu0 %4166  ;;  %v3243_v21 = vpop.permute.xlu1 %3242 }
 0x4d8   : > { %v7789_v44 = vsel %vm453_vm5, %v7686_v31, %v3243_v21  ;;  %v4206_v3 = vsel %vm459_vm8, %v4205_v39, %v4167_v34 }
 0x4db   : > { %v2737_v60 = vpop.permute.xlu0 %2736  ;;  %v3467_v48 = vpop.permute.xlu1 %3466 }
 0x4dc   : > { %v7794_v55 = vsel %vm451_vm4, %v2766_v53, %v2737_v60  ;;  %v3488_v41 = vsel %vm457_vm7, %v7701_v52, %v3467_v48 }
 0x4df   : > { %v7796_v9 = vpop.permute.xlu0 %2992  ;;  %v3721_v47 = vpop.permute.xlu1 %3720 }
 0x4e0   : > { %v3742_v57 = vsel %vm457_vm7, %v7709_v27, %v3721_v47  ;;  %v3017_v48 = vsel %vm455_vm6, %v7785_v36, %v7796_v9 }
 0x4e3   : > { %v7798_v35 = vpop.permute.xlu0 %3246  ;;  %v3977_v25 = vpop.permute.xlu1 %3976 }
 0x4e4   : > { %v3992_v31 = vsel %vm461_vm9, %v3991_v56, %v3977_v25 }
 0x4e5   : > { %v3996_v38 = vrot.slane %v3992_v31, 4 }
 0x4e7   : > { %v3471_v51 = vpop.permute.xlu0 %3470  ;;  %4000 = vst [vmem:[#allocation3 + $0x28] sm:$0xf0] %v3996_v38  ;;  %v4199_v18 = vpop.permute.xlu1 %4198 }
 0x4e8   : > { %v4214_v5 = vsel %vm461_vm9, %v4213_v49, %v4199_v18  ;;  %v3489_v50 = vsel %vm459_vm8, %v3488_v41, %v3471_v51  ;;  %v3271_v51 = vsel %vm455_vm6, %v7789_v44, %v7798_v35 }
 0x4e9   : > { %4216 = vst [vmem:[#allocation3 + $0x38] sm:$0xf] %v4214_v5 }
 0x4eb   : > { %v3725_v54 = vpop.permute.xlu0 %3724  ;;  %v2961_v59 = vpop.permute.xlu1 %2960 }
 0x4ec   : > { %v7809_v7 = vsel %vm453_vm5, %v3008_v19, %v2961_v59  ;;  %v3743_v20 = vsel %vm459_vm8, %v3742_v57, %v3725_v54 }
 0x4ef   : > { %v4171_v2 = vpop.permute.xlu0 %4170  ;;  %v7814_v16 = vpop.permute.xlu1 %3214 }
 0x4f0   : > { %v4207_v14 = vsel %vm461_vm9, %v4206_v3, %v4171_v2  ;;  %v4726_v33 = vld [vmem:[#allocation3 + $0x38] sm:$0xff] }
 0x4f1   : > { %4215 = vst [vmem:[#allocation3 + $0x30] sm:$0xf] %v4207_v14  ;;  %4759 = vmatprep.subr.mxu1 %v4726_v33 }
 0x4f3   : > { %v7817_v8 = vpop.permute.xlu0 %2740  ;;  %v3439_v32 = vpop.permute.xlu1 %3438 }
 0x4f4   : > { %v3481_v36 = vsel %vm457_vm7, %v7777_v37, %v3439_v32  ;;  %v2768_v37 = vsel %vm453_vm5, %v7794_v55, %v7817_v8 }
 0x4f7   : > { %v2997_v22 = vpop.permute.xlu0 %2996  ;;  %v3693_v30 = vpop.permute.xlu1 %3692 }
 0x4f8   : > { %v4725_v19 = vld [vmem:[#allocation3 + $0x30] sm:$0xff]  ;;  %v3735_v27 = vsel %vm457_vm7, %v7781_v13, %v3693_v30  ;;  %v3018_v47 = vsel %vm457_vm7, %v3017_v48, %v2997_v22  ;;  %v3263_v30 = vsel %vm453_vm5, %v7763_v29, %v7814_v16 }
 0x4f9   : > { %4760 = vmatpush1.msra.mxu1 %v4725_v19 }
 0x4fb   : > { %v3251_v17 = vpop.permute.xlu0 %3250  ;;  %v3949_v4 = vpop.permute.xlu1 %3948 }
 0x4fc   : > { %v3985_v1 = vsel %vm461_vm9, %v3984_v46, %v3949_v4  ;;  %v3272_v18 = vsel %vm457_vm7, %v3271_v51, %v3251_v17 }
 0x4fd   : > { %v3995_v58 = vrot.slane %v3985_v1, 4 }
 0x4ff   : > { %v3475_v10 = vpop.permute.xlu0 %3474  ;;  %3999 = vst [vmem:[#allocation3 + $0x20] sm:$0xf0] %v3995_v58  ;;  %v7827_v12 = vpop.permute.xlu1 %2708 }
 0x500   : > { %v3490_v63 = vsel %vm461_vm9, %v3489_v50, %v3475_v10 }
 0x501   : > { %v3494_v28 = vrot.slane %v3490_v63, 4 }
 0x503   : > { %3498 = vst [vmem:[#allocation3 + $0x18] sm:$0xf0] %v3494_v28  ;;  %v3729_v45 = vpop.permute.xlu0 %3728  ;;  %v7833_v26 = vpop.permute.xlu1 %2964 }
 0x504   : > { %v3744_v52 = vsel %vm461_vm9, %v3743_v20, %v3729_v45  ;;  %v3010_v29 = vsel %vm455_vm6, %v7809_v7, %v7833_v26  ;;  %v8086_v20 = vld [vmem:[#allocation22_spill] sm:$0xff]  ;;  %v8087_v45 = vld [vmem:[#allocation15_spill] sm:$0xff] }
 0x505   : > { %3746 = vst [vmem:[#allocation3 + $0x28] sm:$0xf] %v3744_v52  ;;  %v2759_v52 = vsel %vm449_vm3, %v8087_v45, %v8086_v20 }
 0x507   : > { %v2745_v43 = vpop.permute.xlu0 %2744  ;;  %v3219_v42 = vpop.permute.xlu1 %3218 }
 0x508   : > { %v2769_v22 = vsel %vm455_vm6, %v2768_v37, %v2745_v43  ;;  %v3264_v61 = vsel %vm455_vm6, %v3263_v30, %v3219_v42  ;;  %v2760_v42 = vsel %vm451_vm4, %v2759_v52, %v7827_v12 }
 0x50b   : > { %v3001_v24 = vpop.permute.xlu0 %3000  ;;  %v3443_v6 = vpop.permute.xlu1 %3442 }
 0x50c   : > { %v4724_v23 = vld [vmem:[#allocation3 + $0x28] sm:$0xff]  ;;  %v3019_v56 = vsel %vm459_vm8, %v3018_v47, %v3001_v24  ;;  %v3482_v54 = vsel %vm459_vm8, %v3481_v36, %v3443_v6 }
 0x50d   : > { %4761 = vmatprep.subr.mxu1 %v4724_v23 }
 0x50f   : > { %v3255_v62 = vpop.permute.xlu0 %3254  ;;  %v3697_v15 = vpop.permute.xlu1 %3696 }
 0x510   : > { %v3736_v11 = vsel %vm459_vm8, %v3735_v27, %v3697_v15  ;;  %v3273_v9 = vsel %vm459_vm8, %v3272_v18, %v3255_v62 }
 0x513   : > { %v3701_v34 = vpop.permute.xlu0 %3700  ;;  %v7839_v21 = vpop.permute.xlu1 %2712 }
 0x514   : > { %v3737_v0 = vsel %vm461_vm9, %v3736_v11, %v3701_v34  ;;  %v2761_v26 = vsel %vm453_vm5, %v2760_v42, %v7839_v21 }
 0x515   : > { %3745 = vst [vmem:[#allocation3 + $0x20] sm:$0xf] %v3737_v0 }
 0x517   : > { %v2749_v53 = vpop.permute.xlu0 %2748  ;;  %v2969_v60 = vpop.permute.xlu1 %2968 }
 0x518   : > { %v2770_v19 = vsel %vm457_vm7, %v2769_v22, %v2749_v53  ;;  %v3011_v16 = vsel %vm457_vm7, %v3010_v29, %v2969_v60 }
 0x51b   : > { %v3005_v25 = vpop.permute.xlu0 %3004  ;;  %v3223_v13 = vpop.permute.xlu1 %3222 }
 0x51c   : > { %v3020_v31 = vsel %vm461_vm9, %v3019_v56, %v3005_v25  ;;  %v4723_v38 = vld [vmem:[#allocation3 + $0x20] sm:$0xff]  ;;  %v3265_v4 = vsel %vm457_vm7, %v3264_v61, %v3223_v13 }
 0x51d   : > { %v3024_v49 = vrot.slane %v3020_v31, 4  ;;  %4762 = vmatpush1.msra.mxu1 %v4723_v38 }
 0x51f   : > { %3028 = vst [vmem:[#allocation3 + $0x8] sm:$0xf0] %v3024_v49  ;;  %v3259_v5 = vpop.permute.xlu0 %3258 }
 0x520   : > { %v3447_v59 = vpop.permute.xlu1 %3446  ;;  %v3274_v39 = vsel %vm461_vm9, %v3273_v9, %v3259_v5 }
 0x521   : > { %v3483_v3 = vsel %vm461_vm9, %v3482_v54, %v3447_v59  ;;  %3276 = vst [vmem:[#allocation3 + $0x18] sm:$0xf] %v3274_v39 }
 0x522   : > { %v3493_v44 = vrot.slane %v3483_v3, 4 }
 0x523   : > { %v2753_v35 = vpop.permute.xlu0 %2752 }
 0x524   : > { %3497 = vst [vmem:[#allocation3 + $0x10] sm:$0xf0] %v3493_v44  ;;  %v2717_v2 = vpop.permute.xlu1 %2716  ;;  %v2771_v17 = vsel %vm459_vm8, %v2770_v19, %v2753_v35 }
 0x525   : > { %v2762_v24 = vsel %vm455_vm6, %v2761_v26, %v2717_v2 }
 0x527   : > { %v3231_v14 = vpop.permute.xlu0 %3230 }
 0x528   : > { %v2973_v33 = vpop.permute.xlu1 %2972  ;;  %v4722_v32 = vld [vmem:[#allocation3 + $0x18] sm:$0xff] }
 0x529   : > { %4763 = vmatprep.subr.mxu1 %v4722_v32  ;;  %v3012_v50 = vsel %vm459_vm8, %v3011_v16, %v2973_v33 }
 0x52b   : > { %v2757_v46 = vpop.permute.xlu0 %2756 }
 0x52c   : > { %v3227_v1 = vpop.permute.xlu1 %3226  ;;  %v2772_v55 = vsel %vm461_vm9, %v2771_v17, %v2757_v46 }
 0x52d   : > { %v3266_v8 = vsel %vm459_vm8, %v3265_v4, %v3227_v1  ;;  %2774 = vst [vmem:[#allocation3 + $0x8] sm:$0xf] %v2772_v55 }
 0x52e   : > { %v3267_v41 = vsel %vm461_vm9, %v3266_v8, %v3231_v14 }
 0x52f   : > { %3275 = vst [vmem:[#allocation3 + $0x10] sm:$0xf] %v3267_v41 }
 0x530   : > { %v2721_v58 = vpop.permute.xlu1 %2720 }
 0x531   : > { %v2763_v6 = vsel %vm457_vm7, %v2762_v24, %v2721_v58 }
 0x534   : > { %v2977_v10 = vpop.permute.xlu1 %2976  ;;  %v4720_v43 = vld [vmem:[#allocation3 + $0x8] sm:$0xff] }
 0x535   : > { %v3013_v63 = vsel %vm461_vm9, %v3012_v50, %v2977_v10 }
 0x536   : > { %v3023_v28 = vrot.slane %v3013_v63, 4  ;;  %v4721_v57 = vld [vmem:[#allocation3 + $0x10] sm:$0xff] }
 0x537   : > { %4764 = vmatpush1.msra.mxu1 %v4721_v57 }
 0x538   : > { %3027 = vst [vmem:[#allocation3] sm:$0xf0] %v3023_v28  ;;  %v2725_v7 = vpop.permute.xlu1 %2724  ;;  %4765 = vmatprep.subr.mxu1 %v4720_v43 }
 0x539   : > { %v2764_v23 = vsel %vm459_vm8, %v2763_v6, %v2725_v7 }
 0x53c   : > { %v2729_v62 = vpop.permute.xlu1 %2728 }
 0x53d   : > { %v2765_v15 = vsel %vm461_vm9, %v2764_v23, %v2729_v62 }
 0x53e   : > { %2773 = vst [vmem:[#allocation3] sm:$0xf] %v2765_v15 }
 0x545   : > { %v4719_v27 = vld [vmem:[#allocation3] sm:$0xff] }
 0x546   : > { %4766 = vmatpush1.msra.mxu1 %v4719_v27 }
 0x547   : > { %4932 = vmatmul.mubr.msk.f32.vlgmr.msra.gmra.mxu1 %vm2426_vm12, %v7736_v40 }
 0x560   : > { %v2503_v12 = vpop.f32.mrf.mxu0 }
 0x561   : > { %2508 = vst [vmem:[%s175_s4] sm:$0xff] %v2503_v12 }
 0x562   : > { %v2505_v11 = vpop.f32.mrf.mxu0 }
 0x563   : > { %2509 = vst [vmem:[%s175_s4 + $0x8] sm:$0xff] %v2505_v11 }
 0x607   : > { %v4801_v34 = vpop.f32.mrf.mxu1 }
 0x608   : > { %4933 = vst [vmem:[%s175_s4 + $0x10] sm:$0xff] %v4801_v34 }
 0x609   : > { %v4803_v40 = vpop.f32.mrf.mxu1 }
 0x60a   : > { %4934 = vst [vmem:[%s175_s4 + $0x18] sm:$0xff] %v4803_v40 }
 0x60b   : > { %5120 = shalt.err (!%p5117_p0)
}
 0x60c   : > { %s5121_s7 = scalar_lea.hbm %s7898_s24, 512  ;;  %s5125_s29 = scalar_lea.hbm %s7944_s2, 1024 }
 0x60d   : > { %p5122_p4 = scmp.ne.s32.totalorder %s7898_s24, %s5121_s7  ;;  %p5126_p6 = scmp.lt.s32.totalorder %s7898_s24, %s7944_s2 }
 0x60e   : > { %p5127_p13 = scmp.lt.s32.totalorder %s5125_s29, %s5121_s7 }
 0x60f   : > { %p5123_p11 = pnand %p5122_p4, %p8088_p1 }
 0x610   : > { %p5128_p3 = por %p5127_p13, %p5126_p6 }
 0x611   : > { %p5124_p5 = pneg %p5123_p11 }
 0x613   : > { %p5129_p12 = pnand %p5128_p3, %p5124_p5 }
 0x615   : > { %5132 = shalt.err (!%p5129_p12)
}
 0x616   : > { %s5196_s3 = smov 256  }
 0x617   : > { %4951 = dma.vmem_to_hbm [thread:$0]  (%p8088_p1), %s7893_s5, 512, %s7898_s24, %s4810_s25, %s5196_s3, %s5196_s3, %s5190_s26  }
 0x618 PF: > { %s4839_s4 = sand.u32 1, %s5163_s9   ;;  %p8089_p7 = scmp.ne.s32.totalorder %s7990_s22, 0 }
 0x619   : > { %p8090_p8 = scmp.ge.s32.totalorder %s5175_s12, 2  ;;  %s4840_s6 = scalar_lea.sflag [#allocation6], %s4839_s4 }
 0x61b   : > { %p4962_p9 = pnand %p8090_p8, %p8089_p7 }
 0x61d   : > { %p4963_p10 = pneg %p4962_p9 }
 0x61f   : > { %5158 = dma.done.wait (%p4963_p10), %s4840_s6, 512  }
 0x620   : > { %5160 = vsyncadd (%p4963_p10), %s4840_s6, 4294966784  ;;  %p16_p2 = scmp.ge.s32.totalorder %s5237_s15, 4   ;;  %s8091_s9 = smov %s5167_s10 }
 0x621   : > { %s8092_s10 = smov %s5171_s11  ;;  %s8093_s11 = smov %s5249_s18 }
 0x622   : > { %s8094_s12 = smov %s5237_s15  ;;  %18 = sbr.rel (!%p16_p2) target bundleno = 6 (0x6), region = 80 }
 0x627   :  { %4845 = vsyncpa [#allocation5], 1 }
 0x628   :  { %4847 = vsyncpa [#allocation5 + $0x1], 1 }
 0x629   :  { %4848 = vsyncpa [#allocation8], 1 }
 0x62a   :  { %4849 = vsyncpa [#allocation6], 1 }
 0x62b   :  { %4851 = vsyncpa [#allocation6 + $0x1], 1 }

</bundles_post_ra>
